<compile_context>
chip_gen: v6e
topology: v6e:2x2x1
jax: 0.10.0
libtpu: 0.0.40
codegen_flags: <defaults>
</compile_context>

<pallas_src>
import jax
import jax.numpy as jnp
from jax.experimental import pallas as pl
from jax.experimental.pallas import tpu as pltpu

BN_EPS = 1e-5


def _round_up(x, m):
    return (x + m - 1) // m * m


# ==========================================================================
# Kernel 1: stem conv1(7x7,s2,p3) + folded BN + ReLU as a single GEMM.
# K = 7*7*3 = 147 is zero-padded to 256 (lane / MXU aligned) on both the
# patch matrix (in-jit, cheap) and the folded weight (host-side, once).
# ==========================================================================
def _stem_kernel(x_ref, w_ref, b_ref, o_ref):
    y = jnp.dot(x_ref[...], w_ref[...], preferred_element_type=jnp.float32)
    y = jnp.maximum(y + b_ref[...], 0.0)
    o_ref[...] = y.astype(o_ref.dtype)


def stem_conv(patches, w, bias):
    """(M, Kp) bf16 @ (Kp, 64) bf16 + bias, ReLU.  Grid parallel over M tiles."""
    M, K = patches.shape
    if M % 256 == 0:
        TM = 256
    elif M % 128 == 0:
        TM = 128
    else:
        TM = M
    cout = w.shape[1]
    return pl.pallas_call(
        _stem_kernel,
        out_shape=jax.ShapeDtypeStruct((M, cout), jnp.bfloat16),
        grid_spec=pltpu.PrefetchScalarGridSpec(
            num_scalar_prefetch=0,
            grid=(M // TM,),
            in_specs=[pl.BlockSpec((TM, K), lambda i: (i, 0)),
                      pl.BlockSpec((K, cout), lambda i: (0, 0)),
                      pl.BlockSpec((1, cout), lambda i: (0, 0))],
            out_specs=pl.BlockSpec((TM, cout), lambda i: (i, 0)),
        ),
        compiler_params=pltpu.CompilerParams(
            dimension_semantics=("parallel",)),
    )(patches, w, bias)


# ==========================================================================
# Kernel 2: all of layer1 (3 Bottlenecks) + global average pool, fused.
# One grid step per image ("parallel" -> both v7x TensorCores get work).
# 3x3 convs: 9-tap shifted-window matmuls off a zero-padded VMEM scratch,
# with iota-derived masks zeroing taps that cross the 8x8 spatial border.
# ==========================================================================
def _layer1_gap_kernel(x_ref, wcat_ref, bcat_ref, w2a_ref, b2a_ref, w3a_ref,
                       b3a_ref, w1s_ref, b1s_ref, w2s_ref, b2s_ref, w3s_ref,
                       b3s_ref, o_ref, shift_buf):
    HW = x_ref.shape[1]          # 64 spatial positions (8x8), flat p = 8*h + w
    CM = x_ref.shape[2]          # 64 mid channels
    OFF = 16                     # conv2 input lives in shift_buf rows [OFF, OFF+HW)

    pos = jax.lax.broadcasted_iota(jnp.int32, (HW, CM), 0)
    hh = pos >> 3                # spatial row  of flat position p
    ww = pos & 7                 # spatial col  of flat position p

    shift_buf[...] = jnp.zeros_like(shift_buf)   # zero pad rows stay zero

    def conv3x3(inp_f32, get_w, bias):
        """3x3 / stride 1 / pad 1 conv on the flat (HW, CM) activation."""
        shift_buf[OFF:OFF + HW, :] = inp_f32
        acc = jnp.zeros((HW, CM), jnp.float32)
        for dr in (-1, 0, 1):
            for dc in (-1, 0, 1):
                t = (dr + 1) * 3 + (dc + 1)
                s = 8 * dr + dc
                tap = shift_buf[OFF + s:OFF + s + HW, :]     # tap[p] = inp[p + s]
                if (dr, dc) != (0, 0):
                    valid = None
                    if dr == -1:
                        valid = hh >= 1
                    elif dr == 1:
                        valid = hh <= 6
                    if dc == -1:
                        c_ok = ww >= 1
                        valid = c_ok if valid is None else jnp.logical_and(valid, c_ok)
                    elif dc == 1:
                        c_ok = ww <= 6
                        valid = c_ok if valid is None else jnp.logical_and(valid, c_ok)
                    tap = jnp.where(valid, tap, 0.0)
                acc = acc + jnp.dot(tap.astype(jnp.bfloat16), get_w(t),
                                    preferred_element_type=jnp.float32)
        return acc + bias

    x = x_ref[0]                                             # (HW, 64) bf16

    # ---- Bottleneck 0: downsample (64->256) and conv1 (64->64) share x, so
    #      they run as one concatenated, lane-dense N=320 GEMM. ----
    ycat = jnp.dot(x, wcat_ref[...], preferred_element_type=jnp.float32)
    ycat = ycat + bcat_ref[...]
    identity = ycat[:, :256]                                 # downsample+bn, no ReLU (f32)
    out1 = jnp.maximum(ycat[:, 256:], 0.0)                   # conv1+bn+relu (HW, 64) f32
    out2 = jnp.maximum(conv3x3(out1, lambda t: w2a_ref[t], b2a_ref[...]), 0.0)
    y = jnp.dot(out2.astype(jnp.bfloat16), w3a_ref[...],
                preferred_element_type=jnp.float32) + b3a_ref[...]
    act = jnp.maximum(y + identity, 0.0)                     # (HW, 256) f32

    # ---- Bottlenecks 1 & 2 (stacked weights) ----
    for i in range(2):
        identity = act
        out1 = jnp.dot(act.astype(jnp.bfloat16), w1s_ref[i],
                       preferred_element_type=jnp.float32) + b1s_ref[i]
        out1 = jnp.maximum(out1, 0.0)
        out2 = jnp.maximum(
            conv3x3(out1, lambda t, i=i: w2s_ref[9 * i + t], b2s_ref[i]), 0.0)
        y = jnp.dot(out2.astype(jnp.bfloat16), w3s_ref[i],
                    preferred_element_type=jnp.float32) + b3s_ref[i]
        act = jnp.maximum(y + identity, 0.0)

    # ---- fused global average pool (AdaptiveAvgPool2d((1,1))) ----
    pooled = jnp.sum(act, axis=0, keepdims=True) * (1.0 / HW)    # (1, 256) f32
    o_ref[...] = pooled.reshape(1, 1, pooled.shape[-1])


def layer1_gap(x_pooled, pp):
    """x_pooled: (N, 64, 64) bf16 (8x8 positions x 64 ch) -> (N, 1, 256) f32."""
    N, HW, C = x_pooled.shape
    assert HW == 64 and C == 64, (HW, C)

    weights = [pp['b0_wcat'], pp['b0_bcat'], pp['b0_w2'], pp['b0_b2'],
               pp['b0_w3'], pp['b0_b3'], pp['bk_w1'], pp['bk_b1'],
               pp['bk_w2'], pp['bk_b2'], pp['bk_w3'], pp['bk_b3']]

    def _full(a):
        return pl.BlockSpec(a.shape, lambda n, _nd=a.ndim: (0,) * _nd)

    return pl.pallas_call(
        _layer1_gap_kernel,
        out_shape=jax.ShapeDtypeStruct((N, 1, 256), jnp.float32),
        grid_spec=pltpu.PrefetchScalarGridSpec(
            num_scalar_prefetch=0,
            grid=(N,),
            in_specs=[pl.BlockSpec((1, HW, C), lambda n: (n, 0, 0))]
                     + [_full(a) for a in weights],
            out_specs=pl.BlockSpec((1, 1, 256), lambda n: (n, 0, 0)),
            scratch_shapes=[pltpu.VMEM((HW + 32, C), jnp.float32)],
        ),
        compiler_params=pltpu.CompilerParams(
            dimension_semantics=("parallel",)),
    )(x_pooled, *weights)


# ==========================================================================
# XLA glue (patch extraction / maxpool / reshapes only)
# ==========================================================================
def stem_im2col(x):
    """7x7 / s2 / p3 patches. x: (N, H, W, 3) bf16 -> ((N*Ho*Wo, 147), Ho, Wo)."""
    N, H, W, C = x.shape
    xp = jnp.pad(x, ((0, 0), (3, 3), (3, 3), (0, 0)))
    Ho = (H + 6 - 7) // 2 + 1
    Wo = (W + 6 - 7) // 2 + 1
    cols = []
    for i in range(7):
        for j in range(7):
            cols.append(xp[:, i:i + 2 * Ho:2, j:j + 2 * Wo:2, :])
    patches = jnp.stack(cols, axis=-2)                       # (N, Ho, Wo, 49, C)
    return patches.reshape(N * Ho * Wo, 49 * C), Ho, Wo


def maxpool_3x3_s2(x):
    """3x3 / s2 / p1 max pool on post-ReLU NHWC (zero padding exact: x >= 0).
    Single mem-bound pass, fused by XLA."""
    N, H, W, C = x.shape
    xp = jnp.pad(x, ((0, 0), (1, 1), (1, 1), (0, 0)))
    Ho, Wo = H // 2, W // 2
    out = None
    for i in range(3):
        for j in range(3):
            v = xp[:, i:i + 2 * Ho:2, j:j + 2 * Wo:2, :]
            out = v if out is None else jnp.maximum(out, v)
    return out


def resnet_feature_extractor_forward(x_nchw, pp):
    """conv1 -> bn1 -> relu -> maxpool -> layer1 -> global average pool."""
    N = x_nchw.shape[0]
    x = jnp.transpose(x_nchw, (0, 2, 3, 1)).astype(jnp.bfloat16)       # NHWC bf16
    patches, Ho, Wo = stem_im2col(x)
    kp = pp['stem_w'].shape[0]
    patches = jnp.pad(patches, ((0, 0), (0, kp - patches.shape[1])))    # K 147 -> 256
    y = stem_conv(patches, pp['stem_w'], pp['stem_b'])                  # (N*Ho*Wo, 64)
    y = y.reshape(N, Ho, Wo, 64)
    y = maxpool_3x3_s2(y)                                               # (N, 8, 8, 64)
    y = y.reshape(N, (Ho // 2) * (Wo // 2), 64)                         # (N, 64, 64)
    feats = layer1_gap(y, pp)                                           # (N, 1, 256) f32
    return feats.reshape(N, 256, 1, 1)                                  # NCHW features


# ==========================================================================
# Host-side (run once): fold eval-mode BN, cast to bf16, pad & pack weights.
# ==========================================================================
def bn_fold(gamma, beta, mean, var):
    scale = gamma / jnp.sqrt(var + BN_EPS)
    return scale, beta - mean * scale


def prepare_params(params):
    pp = {}
    s, b = bn_fold(*params['bn1'])
    w = (params['conv1_w'] * s).reshape(-1, 64)              # (147, 64)
    kp = _round_up(w.shape[0], 128)                          # 147 -> 256
    w = jnp.pad(w, ((0, kp - w.shape[0]), (0, 0)))
    pp['stem_w'] = w.astype(jnp.bfloat16)
    pp['stem_b'] = b.reshape(1, 64).astype(jnp.float32)

    blk = params['layer1']
    sd, bd = bn_fold(*blk[0]['bnd'])
    s1, b1 = bn_fold(*blk[0]['bn1'])
    wd = blk[0]['wd'].reshape(64, 256) * sd
    w1 = blk[0]['w1'].reshape(64, 64) * s1
    pp['b0_wcat'] = jnp.concatenate([wd, w1], axis=1).astype(jnp.bfloat16)   # (64, 320)
    pp['b0_bcat'] = jnp.concatenate([bd, b1]).reshape(1, 320).astype(jnp.float32)
    s2, b2 = bn_fold(*blk[0]['bn2'])
    pp['b0_w2'] = (blk[0]['w2'] * s2).reshape(9, 64, 64).astype(jnp.bfloat16)
    pp['b0_b2'] = b2.reshape(1, 64).astype(jnp.float32)
    s3, b3 = bn_fold(*blk[0]['bn3'])
    pp['b0_w3'] = (blk[0]['w3'].reshape(64, 256) * s3).astype(jnp.bfloat16)
    pp['b0_b3'] = b3.reshape(1, 256).astype(jnp.float32)

    w1s, b1s, w2s, b2s, w3s, b3s = [], [], [], [], [], []
    for i in (1, 2):
        s1, b1 = bn_fold(*blk[i]['bn1'])
        s2, b2 = bn_fold(*blk[i]['bn2'])
        s3, b3 = bn_fold(*blk[i]['bn3'])
        w1s.append((blk[i]['w1'].reshape(256, 64) * s1).astype(jnp.bfloat16))
        b1s.append(b1.reshape(1, 64))
        w2s.append((blk[i]['w2'] * s2).reshape(9, 64, 64).astype(jnp.bfloat16))
        b2s.append(b2.reshape(1, 64))
        w3s.append((blk[i]['w3'].reshape(64, 256) * s3).astype(jnp.bfloat16))
        b3s.append(b3.reshape(1, 256))
    pp['bk_w1'] = jnp.stack(w1s)                             # (2, 256, 64) bf16
    pp['bk_b1'] = jnp.stack(b1s).astype(jnp.float32)         # (2, 1, 64)
    pp['bk_w2'] = jnp.concatenate(w2s, axis=0)               # (18, 64, 64) bf16
    pp['bk_b2'] = jnp.stack(b2s).astype(jnp.float32)
    pp['bk_w3'] = jnp.stack(w3s)                             # (2, 64, 256) bf16
    pp['bk_b3'] = jnp.stack(b3s).astype(jnp.float32)
    return pp


# ==========================================================================
# Deterministic synthetic parameters (shapes = torchvision resnet50 stem+layer1)
# ==========================================================================
def _conv_w(key, kh, kw, cin, cout):
    return jax.random.normal(key, (kh, kw, cin, cout), jnp.float32) * 0.05


def _bn(key, c):
    k1, k2, k3, k4 = jax.random.split(key, 4)
    gamma = jax.random.uniform(k1, (c,), jnp.float32, 0.5, 1.5)
    beta = jax.random.normal(k2, (c,), jnp.float32) * 0.1
    mean = jax.random.normal(k3, (c,), jnp.float32) * 0.1
    var = jax.random.uniform(k4, (c,), jnp.float32, 0.5, 1.5)
    return (gamma, beta, mean, var)


def init_params(key):
    keys = iter(jax.random.split(key, 32))
    params = {'conv1_w': _conv_w(next(keys), 7, 7, 3, 64),
              'bn1': _bn(next(keys), 64), 'layer1': []}
    inplanes = 64
    for b in range(3):
        blk = {'w1': _conv_w(next(keys), 1, 1, inplanes, 64), 'bn1': _bn(next(keys), 64),
               'w2': _conv_w(next(keys), 3, 3, 64, 64), 'bn2': _bn(next(keys), 64),
               'w3': _conv_w(next(keys), 1, 1, 64, 256), 'bn3': _bn(next(keys), 256)}
        if b == 0:
            blk['wd'] = _conv_w(next(keys), 1, 1, inplanes, 256)
            blk['bnd'] = _bn(next(keys), 256)
        params['layer1'].append(blk)
        inplanes = 256
    return params


# ==========================================================================
# Pure-JAX f32 reference (lax.conv / reduce_window) for validation.
# ==========================================================================
def reference_forward(x_nchw, params):
    def conv(x, w, stride, pad):
        return jax.lax.conv_general_dilated(
            x, w, window_strides=(stride, stride),
            padding=[(pad, pad), (pad, pad)],
            dimension_numbers=('NHWC', 'HWIO', 'NHWC'))

    def bn(x, p):
        gamma, beta, mean, var = p
        return (x - mean) * (gamma / jnp.sqrt(var + BN_EPS)) + beta

    x = jnp.transpose(x_nchw, (0, 2, 3, 1))
    y = jax.nn.relu(bn(conv(x, params['conv1_w'], 2, 3), params['bn1']))
    y = jax.lax.reduce_window(y, -jnp.inf, jax.lax.max,
                              (1, 3, 3, 1), (1, 2, 2, 1),
                              [(0, 0), (1, 1), (1, 1), (0, 0)])
    for i, bp in enumerate(params['layer1']):
        identity = y
        if i == 0:
            identity = bn(conv(y, bp['wd'], 1, 0), bp['bnd'])
        out = jax.nn.relu(bn(conv(y, bp['w1'], 1, 0), bp['bn1']))
        out = jax.nn.relu(bn(conv(out, bp['w2'], 1, 1), bp['bn2']))
        out = bn(conv(out, bp['w3'], 1, 0), bp['bn3'])
        y = jax.nn.relu(out + identity)
    feat = jnp.mean(y, axis=(1, 2))
    return feat.reshape(feat.shape[0], -1, 1, 1)


if __name__ == "__main__":
    key = jax.random.PRNGKey(0)
    pk, xk = jax.random.split(key)
    params = init_params(pk)
    x = jax.random.normal(xk, (2, 3, 32, 32), jnp.float32)   # NCHW input

    prepped = prepare_params(params)                          # host-side, once
    fwd = jax.jit(resnet_feature_extractor_forward)
    out = fwd(x, prepped)
    jax.block_until_ready(out)

    assert out.shape == (2, 256, 1, 1), out.shape
    assert bool(jnp.all(jnp.isfinite(out)))

    # bf16 kernel path vs f32 XLA reference -> loose tolerance.
    ref = jax.jit(reference_forward)(x, params)
    if not jnp.allclose(out, ref, rtol=0.08, atol=0.08):
        diff = float(jnp.max(jnp.abs(out - ref)))
        raise AssertionError(f"kernel deviates from f32 reference "
                             f"(max abs diff {diff:.4f})")
    print("KERNEL_OK")
</pallas_src>

<mosaic_0001>
module attributes {stable_mosaic.version = 11 : i64} {
  func.func @_stem_kernel(%arg0: i32, %arg1: memref<256x256xbf16, #tpu.memory_space<vmem>>, %arg2: memref<256x64xbf16, #tpu.memory_space<vmem>>, %arg3: memref<1x64xf32, #tpu.memory_space<vmem>>, %arg4: memref<256x64xbf16, #tpu.memory_space<vmem>>) attributes {dimension_semantics = [#tpu.dimension_semantics<parallel>], iteration_bounds = array<i64: 2>, scalar_prefetch = 0 : i64, scratch_operands = 0 : i64, tpu.core_type = #tpu.core_type<tc>, window_params = [{transform_indices = @transform_0, window_bounds = array<i64: 256, 256>}, {pipeline_mode = #tpu.pipeline_mode<synchronous>, transform_indices = @transform_1, window_bounds = array<i64: 256, 64>}, {pipeline_mode = #tpu.pipeline_mode<synchronous>, transform_indices = @transform_2, window_bounds = array<i64: 1, 64>}, {transform_indices = @transform_3, window_bounds = array<i64: 256, 64>}]} {
    %c0 = arith.constant 0 : index
    %c0_0 = arith.constant 0 : index
    %0 = vector.load %arg1[%c0, %c0_0] : memref<256x256xbf16, #tpu.memory_space<vmem>>, vector<256x256xbf16>
    %c0_1 = arith.constant 0 : index
    %c0_2 = arith.constant 0 : index
    %1 = vector.load %arg2[%c0_1, %c0_2] : memref<256x64xbf16, #tpu.memory_space<vmem>>, vector<256x64xbf16>
    %cst = arith.constant dense<0.000000e+00> : vector<256x64xf32>
    %2 = tpu.matmul %0, %1, %cst {dimension_numbers = #tpu.dot_dimension_numbers<[1], [0], [0], [1], [0, 0, 1, 1], [], []>} : vector<256x256xbf16>, vector<256x64xbf16>, vector<256x64xf32> -> vector<256x64xf32>
    %c0_3 = arith.constant 0 : index
    %c0_4 = arith.constant 0 : index
    %3 = vector.load %arg3[%c0_3, %c0_4] : memref<1x64xf32, #tpu.memory_space<vmem>>, vector<1x64xf32>
    %4 = vector.broadcast %3 : vector<1x64xf32> to vector<256x64xf32>
    %5 = arith.addf %2, %4 : vector<256x64xf32>
    %cst_5 = arith.constant 0.000000e+00 : f32
    %6 = vector.broadcast %cst_5 : f32 to vector<256x64xf32>
    %7 = arith.maximumf %5, %6 : vector<256x64xf32>
    %8 = arith.truncf %7 : vector<256x64xf32> to vector<256x64xbf16>
    %c0_6 = arith.constant 0 : index
    %c0_7 = arith.constant 0 : index
    %9 = vector.load %arg4[%c0_6, %c0_7] : memref<256x64xbf16, #tpu.memory_space<vmem>>, vector<256x64xbf16>
    tpu.vector_store %arg4[%c0_6, %c0_7], %8 {strides = array<i32>} : memref<256x64xbf16, #tpu.memory_space<vmem>>, vector<256x64xbf16>,
    return
  }
  func.func @transform_0(%arg0: i32) -> (i32, i32) {
    %c0_i32 = arith.constant 0 : i32
    %c0_i32_0 = arith.constant 0 : i32
    return %arg0, %c0_i32 : i32, i32
  }
  func.func @transform_1(%arg0: i32) -> (i32, i32) {
    %c0_i32 = arith.constant 0 : i32
    %c0_i32_0 = arith.constant 0 : i32
    %c0_i32_1 = arith.constant 0 : i32
    return %c0_i32, %c0_i32_0 : i32, i32
  }
  func.func @transform_2(%arg0: i32) -> (i32, i32) {
    %c0_i32 = arith.constant 0 : i32
    %c0_i32_0 = arith.constant 0 : i32
    %c0_i32_1 = arith.constant 0 : i32
    return %c0_i32, %c0_i32_0 : i32, i32
  }
  func.func @transform_3(%arg0: i32) -> (i32, i32) {
    %c0_i32 = arith.constant 0 : i32
    %c0_i32_0 = arith.constant 0 : i32
    return %arg0, %c0_i32 : i32, i32
  }
}

module attributes {stable_mosaic.version = 11 : i64} {
  func.func @_layer1_gap_kernel(%arg0: i32, %arg1: memref<1x64x64xbf16, #tpu.memory_space<vmem>>, %arg2: memref<64x320xbf16, #tpu.memory_space<vmem>>, %arg3: memref<1x320xf32, #tpu.memory_space<vmem>>, %arg4: memref<9x64x64xbf16, #tpu.memory_space<vmem>>, %arg5: memref<1x64xf32, #tpu.memory_space<vmem>>, %arg6: memref<64x256xbf16, #tpu.memory_space<vmem>>, %arg7: memref<1x256xf32, #tpu.memory_space<vmem>>, %arg8: memref<2x256x64xbf16, #tpu.memory_space<vmem>>, %arg9: memref<2x1x64xf32, #tpu.memory_space<vmem>>, %arg10: memref<18x64x64xbf16, #tpu.memory_space<vmem>>, %arg11: memref<2x1x64xf32, #tpu.memory_space<vmem>>, %arg12: memref<2x64x256xbf16, #tpu.memory_space<vmem>>, %arg13: memref<2x1x256xf32, #tpu.memory_space<vmem>>, %arg14: memref<1x1x256xf32, #tpu.memory_space<vmem>>, %arg15: memref<96x64xf32, #tpu.memory_space<vmem>>) attributes {dimension_semantics = [#tpu.dimension_semantics<parallel>], iteration_bounds = array<i64: 2>, scalar_prefetch = 0 : i64, scratch_operands = 1 : i64, tpu.core_type = #tpu.core_type<tc>, window_params = [{transform_indices = @transform_0, window_bounds = array<i64: 1, 64, 64>}, {pipeline_mode = #tpu.pipeline_mode<synchronous>, transform_indices = @transform_1, window_bounds = array<i64: 64, 320>}, {pipeline_mode = #tpu.pipeline_mode<synchronous>, transform_indices = @transform_2, window_bounds = array<i64: 1, 320>}, {pipeline_mode = #tpu.pipeline_mode<synchronous>, transform_indices = @transform_3, window_bounds = array<i64: 9, 64, 64>}, {pipeline_mode = #tpu.pipeline_mode<synchronous>, transform_indices = @transform_4, window_bounds = array<i64: 1, 64>}, {pipeline_mode = #tpu.pipeline_mode<synchronous>, transform_indices = @transform_5, window_bounds = array<i64: 64, 256>}, {pipeline_mode = #tpu.pipeline_mode<synchronous>, transform_indices = @transform_6, window_bounds = array<i64: 1, 256>}, {pipeline_mode = #tpu.pipeline_mode<synchronous>, transform_indices = @transform_7, window_bounds = array<i64: 2, 256, 64>}, {pipeline_mode = #tpu.pipeline_mode<synchronous>, transform_indices = @transform_8, window_bounds = array<i64: 2, 1, 64>}, {pipeline_mode = #tpu.pipeline_mode<synchronous>, transform_indices = @transform_9, window_bounds = array<i64: 18, 64, 64>}, {pipeline_mode = #tpu.pipeline_mode<synchronous>, transform_indices = @transform_10, window_bounds = array<i64: 2, 1, 64>}, {pipeline_mode = #tpu.pipeline_mode<synchronous>, transform_indices = @transform_11, window_bounds = array<i64: 2, 64, 256>}, {pipeline_mode = #tpu.pipeline_mode<synchronous>, transform_indices = @transform_12, window_bounds = array<i64: 2, 1, 256>}, {transform_indices = @transform_13, window_bounds = array<i64: 1, 1, 256>}]} {
    %0 = tpu.iota {dimensions = array<i32: 0>} : vector<64x64xi32>
    %c3_i32 = arith.constant 3 : i32
    %1 = vector.broadcast %c3_i32 : i32 to vector<64x64xi32>
    %2 = arith.shrsi %0, %1 : vector<64x64xi32>
    %c7_i32 = arith.constant 7 : i32
    %3 = vector.broadcast %c7_i32 : i32 to vector<64x64xi32>
    %4 = arith.andi %0, %3 : vector<64x64xi32>
    %cst = arith.constant 0.000000e+00 : f32
    %5 = vector.broadcast %cst : f32 to vector<96x64xf32>
    %c0 = arith.constant 0 : index
    %c0_0 = arith.constant 0 : index
    %6 = vector.load %arg15[%c0, %c0_0] : memref<96x64xf32, #tpu.memory_space<vmem>>, vector<96x64xf32>
    tpu.vector_store %arg15[%c0, %c0_0], %5 {strides = array<i32>} : memref<96x64xf32, #tpu.memory_space<vmem>>, vector<96x64xf32>,
    %c0_1 = arith.constant 0 : index
    %c0_2 = arith.constant 0 : index
    %c0_3 = arith.constant 0 : index
    %7 = vector.load %arg1[%c0_1, %c0_2, %c0_3] : memref<1x64x64xbf16, #tpu.memory_space<vmem>>, vector<1x64x64xbf16>
    %8 = vector.shape_cast %7 : vector<1x64x64xbf16> to vector<64x64xbf16>
    %c0_4 = arith.constant 0 : index
    %c0_5 = arith.constant 0 : index
    %9 = vector.load %arg2[%c0_4, %c0_5] : memref<64x320xbf16, #tpu.memory_space<vmem>>, vector<64x320xbf16>
    %cst_6 = arith.constant dense<0.000000e+00> : vector<64x320xf32>
    %10 = tpu.matmul %8, %9, %cst_6 {dimension_numbers = #tpu.dot_dimension_numbers<[1], [0], [0], [1], [0, 0, 1, 1], [], []>} : vector<64x64xbf16>, vector<64x320xbf16>, vector<64x320xf32> -> vector<64x320xf32>
    %c0_7 = arith.constant 0 : index
    %c0_8 = arith.constant 0 : index
    %11 = vector.load %arg3[%c0_7, %c0_8] : memref<1x320xf32, #tpu.memory_space<vmem>>, vector<1x320xf32>
    %12 = vector.broadcast %11 : vector<1x320xf32> to vector<64x320xf32>
    %13 = arith.addf %10, %12 : vector<64x320xf32>
    %14 = vector.extract_strided_slice %13 {offsets = [0, 0], sizes = [64, 256], strides = [1, 1]} : vector<64x320xf32> to vector<64x256xf32>
    %15 = vector.extract_strided_slice %13 {offsets = [0, 256], sizes = [64, 64], strides = [1, 1]} : vector<64x320xf32> to vector<64x64xf32>
    %cst_9 = arith.constant 0.000000e+00 : f32
    %16 = vector.broadcast %cst_9 : f32 to vector<64x64xf32>
    %17 = arith.maximumf %15, %16 : vector<64x64xf32>
    %c0_10 = arith.constant 0 : index
    %c0_11 = arith.constant 0 : index
    %18 = vector.load %arg5[%c0_10, %c0_11] : memref<1x64xf32, #tpu.memory_space<vmem>>, vector<1x64xf32>
    %c16 = arith.constant 16 : index
    %c0_12 = arith.constant 0 : index
    %19 = vector.load %arg15[%c16, %c0_12] : memref<96x64xf32, #tpu.memory_space<vmem>>, vector<64x64xf32>
    tpu.vector_store %arg15[%c16, %c0_12], %17 {strides = array<i32>} : memref<96x64xf32, #tpu.memory_space<vmem>>, vector<64x64xf32>,
    %cst_13 = arith.constant 0.000000e+00 : f32
    %20 = vector.broadcast %cst_13 : f32 to vector<64x64xf32>
    %c7 = arith.constant 7 : index
    %c0_14 = arith.constant 0 : index
    %21 = vector.load %arg15[%c7, %c0_14] : memref<96x64xf32, #tpu.memory_space<vmem>>, vector<64x64xf32>
    %c1_i32 = arith.constant 1 : i32
    %22 = vector.broadcast %c1_i32 : i32 to vector<64x64xi32>
    %23 = arith.cmpi sge, %2, %22 : vector<64x64xi32>
    %c1_i32_15 = arith.constant 1 : i32
    %24 = vector.broadcast %c1_i32_15 : i32 to vector<64x64xi32>
    %25 = arith.cmpi sge, %4, %24 : vector<64x64xi32>
    %26 = arith.andi %23, %25 : vector<64x64xi1>
    %cst_16 = arith.constant 0.000000e+00 : f32
    %27 = vector.broadcast %cst_16 : f32 to vector<64x64xf32>
    %28 = arith.select %26, %21, %27 : vector<64x64xi1>, vector<64x64xf32>
    %29 = arith.truncf %28 : vector<64x64xf32> to vector<64x64xbf16>
    %c0_17 = arith.constant 0 : index
    %c0_18 = arith.constant 0 : index
    %c0_19 = arith.constant 0 : index
    %30 = vector.load %arg4[%c0_17, %c0_18, %c0_19] : memref<9x64x64xbf16, #tpu.memory_space<vmem>>, vector<1x64x64xbf16>
    %31 = vector.shape_cast %30 : vector<1x64x64xbf16> to vector<64x64xbf16>
    %cst_20 = arith.constant dense<0.000000e+00> : vector<64x64xf32>
    %32 = tpu.matmul %29, %31, %cst_20 {dimension_numbers = #tpu.dot_dimension_numbers<[1], [0], [0], [1], [0, 0, 1, 1], [], []>} : vector<64x64xbf16>, vector<64x64xbf16>, vector<64x64xf32> -> vector<64x64xf32>
    %33 = arith.addf %20, %32 : vector<64x64xf32>
    %c8 = arith.constant 8 : index
    %c0_21 = arith.constant 0 : index
    %34 = vector.load %arg15[%c8, %c0_21] : memref<96x64xf32, #tpu.memory_space<vmem>>, vector<64x64xf32>
    %c1_i32_22 = arith.constant 1 : i32
    %35 = vector.broadcast %c1_i32_22 : i32 to vector<64x64xi32>
    %36 = arith.cmpi sge, %2, %35 : vector<64x64xi32>
    %cst_23 = arith.constant 0.000000e+00 : f32
    %37 = vector.broadcast %cst_23 : f32 to vector<64x64xf32>
    %38 = arith.select %36, %34, %37 : vector<64x64xi1>, vector<64x64xf32>
    %39 = arith.truncf %38 : vector<64x64xf32> to vector<64x64xbf16>
    %c1 = arith.constant 1 : index
    %c0_24 = arith.constant 0 : index
    %c0_25 = arith.constant 0 : index
    %40 = vector.load %arg4[%c1, %c0_24, %c0_25] : memref<9x64x64xbf16, #tpu.memory_space<vmem>>, vector<1x64x64xbf16>
    %41 = vector.shape_cast %40 : vector<1x64x64xbf16> to vector<64x64xbf16>
    %cst_26 = arith.constant dense<0.000000e+00> : vector<64x64xf32>
    %42 = tpu.matmul %39, %41, %cst_26 {dimension_numbers = #tpu.dot_dimension_numbers<[1], [0], [0], [1], [0, 0, 1, 1], [], []>} : vector<64x64xbf16>, vector<64x64xbf16>, vector<64x64xf32> -> vector<64x64xf32>
    %43 = arith.addf %33, %42 : vector<64x64xf32>
    %c9 = arith.constant 9 : index
    %c0_27 = arith.constant 0 : index
    %44 = vector.load %arg15[%c9, %c0_27] : memref<96x64xf32, #tpu.memory_space<vmem>>, vector<64x64xf32>
    %c1_i32_28 = arith.constant 1 : i32
    %45 = vector.broadcast %c1_i32_28 : i32 to vector<64x64xi32>
    %46 = arith.cmpi sge, %2, %45 : vector<64x64xi32>
    %c6_i32 = arith.constant 6 : i32
    %47 = vector.broadcast %c6_i32 : i32 to vector<64x64xi32>
    %48 = arith.cmpi sle, %4, %47 : vector<64x64xi32>
    %49 = arith.andi %46, %48 : vector<64x64xi1>
    %cst_29 = arith.constant 0.000000e+00 : f32
    %50 = vector.broadcast %cst_29 : f32 to vector<64x64xf32>
    %51 = arith.select %49, %44, %50 : vector<64x64xi1>, vector<64x64xf32>
    %52 = arith.truncf %51 : vector<64x64xf32> to vector<64x64xbf16>
    %c2 = arith.constant 2 : index
    %c0_30 = arith.constant 0 : index
    %c0_31 = arith.constant 0 : index
    %53 = vector.load %arg4[%c2, %c0_30, %c0_31] : memref<9x64x64xbf16, #tpu.memory_space<vmem>>, vector<1x64x64xbf16>
    %54 = vector.shape_cast %53 : vector<1x64x64xbf16> to vector<64x64xbf16>
    %cst_32 = arith.constant dense<0.000000e+00> : vector<64x64xf32>
    %55 = tpu.matmul %52, %54, %cst_32 {dimension_numbers = #tpu.dot_dimension_numbers<[1], [0], [0], [1], [0, 0, 1, 1], [], []>} : vector<64x64xbf16>, vector<64x64xbf16>, vector<64x64xf32> -> vector<64x64xf32>
    %56 = arith.addf %43, %55 : vector<64x64xf32>
    %c15 = arith.constant 15 : index
    %c0_33 = arith.constant 0 : index
    %57 = vector.load %arg15[%c15, %c0_33] : memref<96x64xf32, #tpu.memory_space<vmem>>, vector<64x64xf32>
    %c1_i32_34 = arith.constant 1 : i32
    %58 = vector.broadcast %c1_i32_34 : i32 to vector<64x64xi32>
    %59 = arith.cmpi sge, %4, %58 : vector<64x64xi32>
    %cst_35 = arith.constant 0.000000e+00 : f32
    %60 = vector.broadcast %cst_35 : f32 to vector<64x64xf32>
    %61 = arith.select %59, %57, %60 : vector<64x64xi1>, vector<64x64xf32>
    %62 = arith.truncf %61 : vector<64x64xf32> to vector<64x64xbf16>
    %c3 = arith.constant 3 : index
    %c0_36 = arith.constant 0 : index
    %c0_37 = arith.constant 0 : index
    %63 = vector.load %arg4[%c3, %c0_36, %c0_37] : memref<9x64x64xbf16, #tpu.memory_space<vmem>>, vector<1x64x64xbf16>
    %64 = vector.shape_cast %63 : vector<1x64x64xbf16> to vector<64x64xbf16>
    %cst_38 = arith.constant dense<0.000000e+00> : vector<64x64xf32>
    %65 = tpu.matmul %62, %64, %cst_38 {dimension_numbers = #tpu.dot_dimension_numbers<[1], [0], [0], [1], [0, 0, 1, 1], [], []>} : vector<64x64xbf16>, vector<64x64xbf16>, vector<64x64xf32> -> vector<64x64xf32>
    %66 = arith.addf %56, %65 : vector<64x64xf32>
    %c16_39 = arith.constant 16 : index
    %c0_40 = arith.constant 0 : index
    %67 = vector.load %arg15[%c16_39, %c0_40] : memref<96x64xf32, #tpu.memory_space<vmem>>, vector<64x64xf32>
    %68 = arith.truncf %67 : vector<64x64xf32> to vector<64x64xbf16>
    %c4 = arith.constant 4 : index
    %c0_41 = arith.constant 0 : index
    %c0_42 = arith.constant 0 : index
    %69 = vector.load %arg4[%c4, %c0_41, %c0_42] : memref<9x64x64xbf16, #tpu.memory_space<vmem>>, vector<1x64x64xbf16>
    %70 = vector.shape_cast %69 : vector<1x64x64xbf16> to vector<64x64xbf16>
    %cst_43 = arith.constant dense<0.000000e+00> : vector<64x64xf32>
    %71 = tpu.matmul %68, %70, %cst_43 {dimension_numbers = #tpu.dot_dimension_numbers<[1], [0], [0], [1], [0, 0, 1, 1], [], []>} : vector<64x64xbf16>, vector<64x64xbf16>, vector<64x64xf32> -> vector<64x64xf32>
    %72 = arith.addf %66, %71 : vector<64x64xf32>
    %c17 = arith.constant 17 : index
    %c0_44 = arith.constant 0 : index
    %73 = vector.load %arg15[%c17, %c0_44] : memref<96x64xf32, #tpu.memory_space<vmem>>, vector<64x64xf32>
    %c6_i32_45 = arith.constant 6 : i32
    %74 = vector.broadcast %c6_i32_45 : i32 to vector<64x64xi32>
    %75 = arith.cmpi sle, %4, %74 : vector<64x64xi32>
    %cst_46 = arith.constant 0.000000e+00 : f32
    %76 = vector.broadcast %cst_46 : f32 to vector<64x64xf32>
    %77 = arith.select %75, %73, %76 : vector<64x64xi1>, vector<64x64xf32>
    %78 = arith.truncf %77 : vector<64x64xf32> to vector<64x64xbf16>
    %c5 = arith.constant 5 : index
    %c0_47 = arith.constant 0 : index
    %c0_48 = arith.constant 0 : index
    %79 = vector.load %arg4[%c5, %c0_47, %c0_48] : memref<9x64x64xbf16, #tpu.memory_space<vmem>>, vector<1x64x64xbf16>
    %80 = vector.shape_cast %79 : vector<1x64x64xbf16> to vector<64x64xbf16>
    %cst_49 = arith.constant dense<0.000000e+00> : vector<64x64xf32>
    %81 = tpu.matmul %78, %80, %cst_49 {dimension_numbers = #tpu.dot_dimension_numbers<[1], [0], [0], [1], [0, 0, 1, 1], [], []>} : vector<64x64xbf16>, vector<64x64xbf16>, vector<64x64xf32> -> vector<64x64xf32>
    %82 = arith.addf %72, %81 : vector<64x64xf32>
    %c23 = arith.constant 23 : index
    %c0_50 = arith.constant 0 : index
    %83 = vector.load %arg15[%c23, %c0_50] : memref<96x64xf32, #tpu.memory_space<vmem>>, vector<64x64xf32>
    %c6_i32_51 = arith.constant 6 : i32
    %84 = vector.broadcast %c6_i32_51 : i32 to vector<64x64xi32>
    %85 = arith.cmpi sle, %2, %84 : vector<64x64xi32>
    %c1_i32_52 = arith.constant 1 : i32
    %86 = vector.broadcast %c1_i32_52 : i32 to vector<64x64xi32>
    %87 = arith.cmpi sge, %4, %86 : vector<64x64xi32>
    %88 = arith.andi %85, %87 : vector<64x64xi1>
    %cst_53 = arith.constant 0.000000e+00 : f32
    %89 = vector.broadcast %cst_53 : f32 to vector<64x64xf32>
    %90 = arith.select %88, %83, %89 : vector<64x64xi1>, vector<64x64xf32>
    %91 = arith.truncf %90 : vector<64x64xf32> to vector<64x64xbf16>
    %c6 = arith.constant 6 : index
    %c0_54 = arith.constant 0 : index
    %c0_55 = arith.constant 0 : index
    %92 = vector.load %arg4[%c6, %c0_54, %c0_55] : memref<9x64x64xbf16, #tpu.memory_space<vmem>>, vector<1x64x64xbf16>
    %93 = vector.shape_cast %92 : vector<1x64x64xbf16> to vector<64x64xbf16>
    %cst_56 = arith.constant dense<0.000000e+00> : vector<64x64xf32>
    %94 = tpu.matmul %91, %93, %cst_56 {dimension_numbers = #tpu.dot_dimension_numbers<[1], [0], [0], [1], [0, 0, 1, 1], [], []>} : vector<64x64xbf16>, vector<64x64xbf16>, vector<64x64xf32> -> vector<64x64xf32>
    %95 = arith.addf %82, %94 : vector<64x64xf32>
    %c24 = arith.constant 24 : index
    %c0_57 = arith.constant 0 : index
    %96 = vector.load %arg15[%c24, %c0_57] : memref<96x64xf32, #tpu.memory_space<vmem>>, vector<64x64xf32>
    %c6_i32_58 = arith.constant 6 : i32
    %97 = vector.broadcast %c6_i32_58 : i32 to vector<64x64xi32>
    %98 = arith.cmpi sle, %2, %97 : vector<64x64xi32>
    %cst_59 = arith.constant 0.000000e+00 : f32
    %99 = vector.broadcast %cst_59 : f32 to vector<64x64xf32>
    %100 = arith.select %98, %96, %99 : vector<64x64xi1>, vector<64x64xf32>
    %101 = arith.truncf %100 : vector<64x64xf32> to vector<64x64xbf16>
    %c7_60 = arith.constant 7 : index
    %c0_61 = arith.constant 0 : index
    %c0_62 = arith.constant 0 : index
    %102 = vector.load %arg4[%c7_60, %c0_61, %c0_62] : memref<9x64x64xbf16, #tpu.memory_space<vmem>>, vector<1x64x64xbf16>
    %103 = vector.shape_cast %102 : vector<1x64x64xbf16> to vector<64x64xbf16>
    %cst_63 = arith.constant dense<0.000000e+00> : vector<64x64xf32>
    %104 = tpu.matmul %101, %103, %cst_63 {dimension_numbers = #tpu.dot_dimension_numbers<[1], [0], [0], [1], [0, 0, 1, 1], [], []>} : vector<64x64xbf16>, vector<64x64xbf16>, vector<64x64xf32> -> vector<64x64xf32>
    %105 = arith.addf %95, %104 : vector<64x64xf32>
    %c25 = arith.constant 25 : index
    %c0_64 = arith.constant 0 : index
    %106 = vector.load %arg15[%c25, %c0_64] : memref<96x64xf32, #tpu.memory_space<vmem>>, vector<64x64xf32>
    %c6_i32_65 = arith.constant 6 : i32
    %107 = vector.broadcast %c6_i32_65 : i32 to vector<64x64xi32>
    %108 = arith.cmpi sle, %2, %107 : vector<64x64xi32>
    %c6_i32_66 = arith.constant 6 : i32
    %109 = vector.broadcast %c6_i32_66 : i32 to vector<64x64xi32>
    %110 = arith.cmpi sle, %4, %109 : vector<64x64xi32>
    %111 = arith.andi %108, %110 : vector<64x64xi1>
    %cst_67 = arith.constant 0.000000e+00 : f32
    %112 = vector.broadcast %cst_67 : f32 to vector<64x64xf32>
    %113 = arith.select %111, %106, %112 : vector<64x64xi1>, vector<64x64xf32>
    %114 = arith.truncf %113 : vector<64x64xf32> to vector<64x64xbf16>
    %c8_68 = arith.constant 8 : index
    %c0_69 = arith.constant 0 : index
    %c0_70 = arith.constant 0 : index
    %115 = vector.load %arg4[%c8_68, %c0_69, %c0_70] : memref<9x64x64xbf16, #tpu.memory_space<vmem>>, vector<1x64x64xbf16>
    %116 = vector.shape_cast %115 : vector<1x64x64xbf16> to vector<64x64xbf16>
    %cst_71 = arith.constant dense<0.000000e+00> : vector<64x64xf32>
    %117 = tpu.matmul %114, %116, %cst_71 {dimension_numbers = #tpu.dot_dimension_numbers<[1], [0], [0], [1], [0, 0, 1, 1], [], []>} : vector<64x64xbf16>, vector<64x64xbf16>, vector<64x64xf32> -> vector<64x64xf32>
    %118 = arith.addf %105, %117 : vector<64x64xf32>
    %119 = vector.broadcast %18 : vector<1x64xf32> to vector<64x64xf32>
    %120 = arith.addf %118, %119 : vector<64x64xf32>
    %cst_72 = arith.constant 0.000000e+00 : f32
    %121 = vector.broadcast %cst_72 : f32 to vector<64x64xf32>
    %122 = arith.maximumf %120, %121 : vector<64x64xf32>
    %123 = arith.truncf %122 : vector<64x64xf32> to vector<64x64xbf16>
    %c0_73 = arith.constant 0 : index
    %c0_74 = arith.constant 0 : index
    %124 = vector.load %arg6[%c0_73, %c0_74] : memref<64x256xbf16, #tpu.memory_space<vmem>>, vector<64x256xbf16>
    %cst_75 = arith.constant dense<0.000000e+00> : vector<64x256xf32>
    %125 = tpu.matmul %123, %124, %cst_75 {dimension_numbers = #tpu.dot_dimension_numbers<[1], [0], [0], [1], [0, 0, 1, 1], [], []>} : vector<64x64xbf16>, vector<64x256xbf16>, vector<64x256xf32> -> vector<64x256xf32>
    %c0_76 = arith.constant 0 : index
    %c0_77 = arith.constant 0 : index
    %126 = vector.load %arg7[%c0_76, %c0_77] : memref<1x256xf32, #tpu.memory_space<vmem>>, vector<1x256xf32>
    %127 = vector.broadcast %126 : vector<1x256xf32> to vector<64x256xf32>
    %128 = arith.addf %125, %127 : vector<64x256xf32>
    %129 = arith.addf %128, %14 : vector<64x256xf32>
    %cst_78 = arith.constant 0.000000e+00 : f32
    %130 = vector.broadcast %cst_78 : f32 to vector<64x256xf32>
    %131 = arith.maximumf %129, %130 : vector<64x256xf32>
    %132 = arith.truncf %131 : vector<64x256xf32> to vector<64x256xbf16>
    %c0_79 = arith.constant 0 : index
    %c0_80 = arith.constant 0 : index
    %c0_81 = arith.constant 0 : index
    %133 = vector.load %arg8[%c0_79, %c0_80, %c0_81] : memref<2x256x64xbf16, #tpu.memory_space<vmem>>, vector<1x256x64xbf16>
    %134 = vector.shape_cast %133 : vector<1x256x64xbf16> to vector<256x64xbf16>
    %cst_82 = arith.constant dense<0.000000e+00> : vector<64x64xf32>
    %135 = tpu.matmul %132, %134, %cst_82 {dimension_numbers = #tpu.dot_dimension_numbers<[1], [0], [0], [1], [0, 0, 1, 1], [], []>} : vector<64x256xbf16>, vector<256x64xbf16>, vector<64x64xf32> -> vector<64x64xf32>
    %c0_83 = arith.constant 0 : index
    %c0_84 = arith.constant 0 : index
    %c0_85 = arith.constant 0 : index
    %136 = vector.load %arg9[%c0_83, %c0_84, %c0_85] : memref<2x1x64xf32, #tpu.memory_space<vmem>>, vector<1x1x64xf32>
    %137 = vector.shape_cast %136 : vector<1x1x64xf32> to vector<1x64xf32>
    %138 = vector.broadcast %137 : vector<1x64xf32> to vector<64x64xf32>
    %139 = arith.addf %135, %138 : vector<64x64xf32>
    %cst_86 = arith.constant 0.000000e+00 : f32
    %140 = vector.broadcast %cst_86 : f32 to vector<64x64xf32>
    %141 = arith.maximumf %139, %140 : vector<64x64xf32>
    %c0_87 = arith.constant 0 : index
    %c0_88 = arith.constant 0 : index
    %c0_89 = arith.constant 0 : index
    %142 = vector.load %arg11[%c0_87, %c0_88, %c0_89] : memref<2x1x64xf32, #tpu.memory_space<vmem>>, vector<1x1x64xf32>
    %143 = vector.shape_cast %142 : vector<1x1x64xf32> to vector<1x64xf32>
    %c16_90 = arith.constant 16 : index
    %c0_91 = arith.constant 0 : index
    %144 = vector.load %arg15[%c16_90, %c0_91] : memref<96x64xf32, #tpu.memory_space<vmem>>, vector<64x64xf32>
    tpu.vector_store %arg15[%c16_90, %c0_91], %141 {strides = array<i32>} : memref<96x64xf32, #tpu.memory_space<vmem>>, vector<64x64xf32>,
    %cst_92 = arith.constant 0.000000e+00 : f32
    %145 = vector.broadcast %cst_92 : f32 to vector<64x64xf32>
    %c7_93 = arith.constant 7 : index
    %c0_94 = arith.constant 0 : index
    %146 = vector.load %arg15[%c7_93, %c0_94] : memref<96x64xf32, #tpu.memory_space<vmem>>, vector<64x64xf32>
    %c1_i32_95 = arith.constant 1 : i32
    %147 = vector.broadcast %c1_i32_95 : i32 to vector<64x64xi32>
    %148 = arith.cmpi sge, %2, %147 : vector<64x64xi32>
    %c1_i32_96 = arith.constant 1 : i32
    %149 = vector.broadcast %c1_i32_96 : i32 to vector<64x64xi32>
    %150 = arith.cmpi sge, %4, %149 : vector<64x64xi32>
    %151 = arith.andi %148, %150 : vector<64x64xi1>
    %cst_97 = arith.constant 0.000000e+00 : f32
    %152 = vector.broadcast %cst_97 : f32 to vector<64x64xf32>
    %153 = arith.select %151, %146, %152 : vector<64x64xi1>, vector<64x64xf32>
    %154 = arith.truncf %153 : vector<64x64xf32> to vector<64x64xbf16>
    %c0_98 = arith.constant 0 : index
    %c0_99 = arith.constant 0 : index
    %c0_100 = arith.constant 0 : index
    %155 = vector.load %arg10[%c0_98, %c0_99, %c0_100] : memref<18x64x64xbf16, #tpu.memory_space<vmem>>, vector<1x64x64xbf16>
    %156 = vector.shape_cast %155 : vector<1x64x64xbf16> to vector<64x64xbf16>
    %cst_101 = arith.constant dense<0.000000e+00> : vector<64x64xf32>
    %157 = tpu.matmul %154, %156, %cst_101 {dimension_numbers = #tpu.dot_dimension_numbers<[1], [0], [0], [1], [0, 0, 1, 1], [], []>} : vector<64x64xbf16>, vector<64x64xbf16>, vector<64x64xf32> -> vector<64x64xf32>
    %158 = arith.addf %145, %157 : vector<64x64xf32>
    %c8_102 = arith.constant 8 : index
    %c0_103 = arith.constant 0 : index
    %159 = vector.load %arg15[%c8_102, %c0_103] : memref<96x64xf32, #tpu.memory_space<vmem>>, vector<64x64xf32>
    %c1_i32_104 = arith.constant 1 : i32
    %160 = vector.broadcast %c1_i32_104 : i32 to vector<64x64xi32>
    %161 = arith.cmpi sge, %2, %160 : vector<64x64xi32>
    %cst_105 = arith.constant 0.000000e+00 : f32
    %162 = vector.broadcast %cst_105 : f32 to vector<64x64xf32>
    %163 = arith.select %161, %159, %162 : vector<64x64xi1>, vector<64x64xf32>
    %164 = arith.truncf %163 : vector<64x64xf32> to vector<64x64xbf16>
    %c1_106 = arith.constant 1 : index
    %c0_107 = arith.constant 0 : index
    %c0_108 = arith.constant 0 : index
    %165 = vector.load %arg10[%c1_106, %c0_107, %c0_108] : memref<18x64x64xbf16, #tpu.memory_space<vmem>>, vector<1x64x64xbf16>
    %166 = vector.shape_cast %165 : vector<1x64x64xbf16> to vector<64x64xbf16>
    %cst_109 = arith.constant dense<0.000000e+00> : vector<64x64xf32>
    %167 = tpu.matmul %164, %166, %cst_109 {dimension_numbers = #tpu.dot_dimension_numbers<[1], [0], [0], [1], [0, 0, 1, 1], [], []>} : vector<64x64xbf16>, vector<64x64xbf16>, vector<64x64xf32> -> vector<64x64xf32>
    %168 = arith.addf %158, %167 : vector<64x64xf32>
    %c9_110 = arith.constant 9 : index
    %c0_111 = arith.constant 0 : index
    %169 = vector.load %arg15[%c9_110, %c0_111] : memref<96x64xf32, #tpu.memory_space<vmem>>, vector<64x64xf32>
    %c1_i32_112 = arith.constant 1 : i32
    %170 = vector.broadcast %c1_i32_112 : i32 to vector<64x64xi32>
    %171 = arith.cmpi sge, %2, %170 : vector<64x64xi32>
    %c6_i32_113 = arith.constant 6 : i32
    %172 = vector.broadcast %c6_i32_113 : i32 to vector<64x64xi32>
    %173 = arith.cmpi sle, %4, %172 : vector<64x64xi32>
    %174 = arith.andi %171, %173 : vector<64x64xi1>
    %cst_114 = arith.constant 0.000000e+00 : f32
    %175 = vector.broadcast %cst_114 : f32 to vector<64x64xf32>
    %176 = arith.select %174, %169, %175 : vector<64x64xi1>, vector<64x64xf32>
    %177 = arith.truncf %176 : vector<64x64xf32> to vector<64x64xbf16>
    %c2_115 = arith.constant 2 : index
    %c0_116 = arith.constant 0 : index
    %c0_117 = arith.constant 0 : index
    %178 = vector.load %arg10[%c2_115, %c0_116, %c0_117] : memref<18x64x64xbf16, #tpu.memory_space<vmem>>, vector<1x64x64xbf16>
    %179 = vector.shape_cast %178 : vector<1x64x64xbf16> to vector<64x64xbf16>
    %cst_118 = arith.constant dense<0.000000e+00> : vector<64x64xf32>
    %180 = tpu.matmul %177, %179, %cst_118 {dimension_numbers = #tpu.dot_dimension_numbers<[1], [0], [0], [1], [0, 0, 1, 1], [], []>} : vector<64x64xbf16>, vector<64x64xbf16>, vector<64x64xf32> -> vector<64x64xf32>
    %181 = arith.addf %168, %180 : vector<64x64xf32>
    %c15_119 = arith.constant 15 : index
    %c0_120 = arith.constant 0 : index
    %182 = vector.load %arg15[%c15_119, %c0_120] : memref<96x64xf32, #tpu.memory_space<vmem>>, vector<64x64xf32>
    %c1_i32_121 = arith.constant 1 : i32
    %183 = vector.broadcast %c1_i32_121 : i32 to vector<64x64xi32>
    %184 = arith.cmpi sge, %4, %183 : vector<64x64xi32>
    %cst_122 = arith.constant 0.000000e+00 : f32
    %185 = vector.broadcast %cst_122 : f32 to vector<64x64xf32>
    %186 = arith.select %184, %182, %185 : vector<64x64xi1>, vector<64x64xf32>
    %187 = arith.truncf %186 : vector<64x64xf32> to vector<64x64xbf16>
    %c3_123 = arith.constant 3 : index
    %c0_124 = arith.constant 0 : index
    %c0_125 = arith.constant 0 : index
    %188 = vector.load %arg10[%c3_123, %c0_124, %c0_125] : memref<18x64x64xbf16, #tpu.memory_space<vmem>>, vector<1x64x64xbf16>
    %189 = vector.shape_cast %188 : vector<1x64x64xbf16> to vector<64x64xbf16>
    %cst_126 = arith.constant dense<0.000000e+00> : vector<64x64xf32>
    %190 = tpu.matmul %187, %189, %cst_126 {dimension_numbers = #tpu.dot_dimension_numbers<[1], [0], [0], [1], [0, 0, 1, 1], [], []>} : vector<64x64xbf16>, vector<64x64xbf16>, vector<64x64xf32> -> vector<64x64xf32>
    %191 = arith.addf %181, %190 : vector<64x64xf32>
    %c16_127 = arith.constant 16 : index
    %c0_128 = arith.constant 0 : index
    %192 = vector.load %arg15[%c16_127, %c0_128] : memref<96x64xf32, #tpu.memory_space<vmem>>, vector<64x64xf32>
    %193 = arith.truncf %192 : vector<64x64xf32> to vector<64x64xbf16>
    %c4_129 = arith.constant 4 : index
    %c0_130 = arith.constant 0 : index
    %c0_131 = arith.constant 0 : index
    %194 = vector.load %arg10[%c4_129, %c0_130, %c0_131] : memref<18x64x64xbf16, #tpu.memory_space<vmem>>, vector<1x64x64xbf16>
    %195 = vector.shape_cast %194 : vector<1x64x64xbf16> to vector<64x64xbf16>
    %cst_132 = arith.constant dense<0.000000e+00> : vector<64x64xf32>
    %196 = tpu.matmul %193, %195, %cst_132 {dimension_numbers = #tpu.dot_dimension_numbers<[1], [0], [0], [1], [0, 0, 1, 1], [], []>} : vector<64x64xbf16>, vector<64x64xbf16>, vector<64x64xf32> -> vector<64x64xf32>
    %197 = arith.addf %191, %196 : vector<64x64xf32>
    %c17_133 = arith.constant 17 : index
    %c0_134 = arith.constant 0 : index
    %198 = vector.load %arg15[%c17_133, %c0_134] : memref<96x64xf32, #tpu.memory_space<vmem>>, vector<64x64xf32>
    %c6_i32_135 = arith.constant 6 : i32
    %199 = vector.broadcast %c6_i32_135 : i32 to vector<64x64xi32>
    %200 = arith.cmpi sle, %4, %199 : vector<64x64xi32>
    %cst_136 = arith.constant 0.000000e+00 : f32
    %201 = vector.broadcast %cst_136 : f32 to vector<64x64xf32>
    %202 = arith.select %200, %198, %201 : vector<64x64xi1>, vector<64x64xf32>
    %203 = arith.truncf %202 : vector<64x64xf32> to vector<64x64xbf16>
    %c5_137 = arith.constant 5 : index
    %c0_138 = arith.constant 0 : index
    %c0_139 = arith.constant 0 : index
    %204 = vector.load %arg10[%c5_137, %c0_138, %c0_139] : memref<18x64x64xbf16, #tpu.memory_space<vmem>>, vector<1x64x64xbf16>
    %205 = vector.shape_cast %204 : vector<1x64x64xbf16> to vector<64x64xbf16>
    %cst_140 = arith.constant dense<0.000000e+00> : vector<64x64xf32>
    %206 = tpu.matmul %203, %205, %cst_140 {dimension_numbers = #tpu.dot_dimension_numbers<[1], [0], [0], [1], [0, 0, 1, 1], [], []>} : vector<64x64xbf16>, vector<64x64xbf16>, vector<64x64xf32> -> vector<64x64xf32>
    %207 = arith.addf %197, %206 : vector<64x64xf32>
    %c23_141 = arith.constant 23 : index
    %c0_142 = arith.constant 0 : index
    %208 = vector.load %arg15[%c23_141, %c0_142] : memref<96x64xf32, #tpu.memory_space<vmem>>, vector<64x64xf32>
    %c6_i32_143 = arith.constant 6 : i32
    %209 = vector.broadcast %c6_i32_143 : i32 to vector<64x64xi32>
    %210 = arith.cmpi sle, %2, %209 : vector<64x64xi32>
    %c1_i32_144 = arith.constant 1 : i32
    %211 = vector.broadcast %c1_i32_144 : i32 to vector<64x64xi32>
    %212 = arith.cmpi sge, %4, %211 : vector<64x64xi32>
    %213 = arith.andi %210, %212 : vector<64x64xi1>
    %cst_145 = arith.constant 0.000000e+00 : f32
    %214 = vector.broadcast %cst_145 : f32 to vector<64x64xf32>
    %215 = arith.select %213, %208, %214 : vector<64x64xi1>, vector<64x64xf32>
    %216 = arith.truncf %215 : vector<64x64xf32> to vector<64x64xbf16>
    %c6_146 = arith.constant 6 : index
    %c0_147 = arith.constant 0 : index
    %c0_148 = arith.constant 0 : index
    %217 = vector.load %arg10[%c6_146, %c0_147, %c0_148] : memref<18x64x64xbf16, #tpu.memory_space<vmem>>, vector<1x64x64xbf16>
    %218 = vector.shape_cast %217 : vector<1x64x64xbf16> to vector<64x64xbf16>
    %cst_149 = arith.constant dense<0.000000e+00> : vector<64x64xf32>
    %219 = tpu.matmul %216, %218, %cst_149 {dimension_numbers = #tpu.dot_dimension_numbers<[1], [0], [0], [1], [0, 0, 1, 1], [], []>} : vector<64x64xbf16>, vector<64x64xbf16>, vector<64x64xf32> -> vector<64x64xf32>
    %220 = arith.addf %207, %219 : vector<64x64xf32>
    %c24_150 = arith.constant 24 : index
    %c0_151 = arith.constant 0 : index
    %221 = vector.load %arg15[%c24_150, %c0_151] : memref<96x64xf32, #tpu.memory_space<vmem>>, vector<64x64xf32>
    %c6_i32_152 = arith.constant 6 : i32
    %222 = vector.broadcast %c6_i32_152 : i32 to vector<64x64xi32>
    %223 = arith.cmpi sle, %2, %222 : vector<64x64xi32>
    %cst_153 = arith.constant 0.000000e+00 : f32
    %224 = vector.broadcast %cst_153 : f32 to vector<64x64xf32>
    %225 = arith.select %223, %221, %224 : vector<64x64xi1>, vector<64x64xf32>
    %226 = arith.truncf %225 : vector<64x64xf32> to vector<64x64xbf16>
    %c7_154 = arith.constant 7 : index
    %c0_155 = arith.constant 0 : index
    %c0_156 = arith.constant 0 : index
    %227 = vector.load %arg10[%c7_154, %c0_155, %c0_156] : memref<18x64x64xbf16, #tpu.memory_space<vmem>>, vector<1x64x64xbf16>
    %228 = vector.shape_cast %227 : vector<1x64x64xbf16> to vector<64x64xbf16>
    %cst_157 = arith.constant dense<0.000000e+00> : vector<64x64xf32>
    %229 = tpu.matmul %226, %228, %cst_157 {dimension_numbers = #tpu.dot_dimension_numbers<[1], [0], [0], [1], [0, 0, 1, 1], [], []>} : vector<64x64xbf16>, vector<64x64xbf16>, vector<64x64xf32> -> vector<64x64xf32>
    %230 = arith.addf %220, %229 : vector<64x64xf32>
    %c25_158 = arith.constant 25 : index
    %c0_159 = arith.constant 0 : index
    %231 = vector.load %arg15[%c25_158, %c0_159] : memref<96x64xf32, #tpu.memory_space<vmem>>, vector<64x64xf32>
    %c6_i32_160 = arith.constant 6 : i32
    %232 = vector.broadcast %c6_i32_160 : i32 to vector<64x64xi32>
    %233 = arith.cmpi sle, %2, %232 : vector<64x64xi32>
    %c6_i32_161 = arith.constant 6 : i32
    %234 = vector.broadcast %c6_i32_161 : i32 to vector<64x64xi32>
    %235 = arith.cmpi sle, %4, %234 : vector<64x64xi32>
    %236 = arith.andi %233, %235 : vector<64x64xi1>
    %cst_162 = arith.constant 0.000000e+00 : f32
    %237 = vector.broadcast %cst_162 : f32 to vector<64x64xf32>
    %238 = arith.select %236, %231, %237 : vector<64x64xi1>, vector<64x64xf32>
    %239 = arith.truncf %238 : vector<64x64xf32> to vector<64x64xbf16>
    %c8_163 = arith.constant 8 : index
    %c0_164 = arith.constant 0 : index
    %c0_165 = arith.constant 0 : index
    %240 = vector.load %arg10[%c8_163, %c0_164, %c0_165] : memref<18x64x64xbf16, #tpu.memory_space<vmem>>, vector<1x64x64xbf16>
    %241 = vector.shape_cast %240 : vector<1x64x64xbf16> to vector<64x64xbf16>
    %cst_166 = arith.constant dense<0.000000e+00> : vector<64x64xf32>
    %242 = tpu.matmul %239, %241, %cst_166 {dimension_numbers = #tpu.dot_dimension_numbers<[1], [0], [0], [1], [0, 0, 1, 1], [], []>} : vector<64x64xbf16>, vector<64x64xbf16>, vector<64x64xf32> -> vector<64x64xf32>
    %243 = arith.addf %230, %242 : vector<64x64xf32>
    %244 = vector.broadcast %143 : vector<1x64xf32> to vector<64x64xf32>
    %245 = arith.addf %243, %244 : vector<64x64xf32>
    %cst_167 = arith.constant 0.000000e+00 : f32
    %246 = vector.broadcast %cst_167 : f32 to vector<64x64xf32>
    %247 = arith.maximumf %245, %246 : vector<64x64xf32>
    %248 = arith.truncf %247 : vector<64x64xf32> to vector<64x64xbf16>
    %c0_168 = arith.constant 0 : index
    %c0_169 = arith.constant 0 : index
    %c0_170 = arith.constant 0 : index
    %249 = vector.load %arg12[%c0_168, %c0_169, %c0_170] : memref<2x64x256xbf16, #tpu.memory_space<vmem>>, vector<1x64x256xbf16>
    %250 = vector.shape_cast %249 : vector<1x64x256xbf16> to vector<64x256xbf16>
    %cst_171 = arith.constant dense<0.000000e+00> : vector<64x256xf32>
    %251 = tpu.matmul %248, %250, %cst_171 {dimension_numbers = #tpu.dot_dimension_numbers<[1], [0], [0], [1], [0, 0, 1, 1], [], []>} : vector<64x64xbf16>, vector<64x256xbf16>, vector<64x256xf32> -> vector<64x256xf32>
    %c0_172 = arith.constant 0 : index
    %c0_173 = arith.constant 0 : index
    %c0_174 = arith.constant 0 : index
    %252 = vector.load %arg13[%c0_172, %c0_173, %c0_174] : memref<2x1x256xf32, #tpu.memory_space<vmem>>, vector<1x1x256xf32>
    %253 = vector.shape_cast %252 : vector<1x1x256xf32> to vector<1x256xf32>
    %254 = vector.broadcast %253 : vector<1x256xf32> to vector<64x256xf32>
    %255 = arith.addf %251, %254 : vector<64x256xf32>
    %256 = arith.addf %255, %131 : vector<64x256xf32>
    %cst_175 = arith.constant 0.000000e+00 : f32
    %257 = vector.broadcast %cst_175 : f32 to vector<64x256xf32>
    %258 = arith.maximumf %256, %257 : vector<64x256xf32>
    %259 = arith.truncf %258 : vector<64x256xf32> to vector<64x256xbf16>
    %c1_176 = arith.constant 1 : index
    %c0_177 = arith.constant 0 : index
    %c0_178 = arith.constant 0 : index
    %260 = vector.load %arg8[%c1_176, %c0_177, %c0_178] : memref<2x256x64xbf16, #tpu.memory_space<vmem>>, vector<1x256x64xbf16>
    %261 = vector.shape_cast %260 : vector<1x256x64xbf16> to vector<256x64xbf16>
    %cst_179 = arith.constant dense<0.000000e+00> : vector<64x64xf32>
    %262 = tpu.matmul %259, %261, %cst_179 {dimension_numbers = #tpu.dot_dimension_numbers<[1], [0], [0], [1], [0, 0, 1, 1], [], []>} : vector<64x256xbf16>, vector<256x64xbf16>, vector<64x64xf32> -> vector<64x64xf32>
    %c1_180 = arith.constant 1 : index
    %c0_181 = arith.constant 0 : index
    %c0_182 = arith.constant 0 : index
    %263 = vector.load %arg9[%c1_180, %c0_181, %c0_182] : memref<2x1x64xf32, #tpu.memory_space<vmem>>, vector<1x1x64xf32>
    %264 = vector.shape_cast %263 : vector<1x1x64xf32> to vector<1x64xf32>
    %265 = vector.broadcast %264 : vector<1x64xf32> to vector<64x64xf32>
    %266 = arith.addf %262, %265 : vector<64x64xf32>
    %cst_183 = arith.constant 0.000000e+00 : f32
    %267 = vector.broadcast %cst_183 : f32 to vector<64x64xf32>
    %268 = arith.maximumf %266, %267 : vector<64x64xf32>
    %c1_184 = arith.constant 1 : index
    %c0_185 = arith.constant 0 : index
    %c0_186 = arith.constant 0 : index
    %269 = vector.load %arg11[%c1_184, %c0_185, %c0_186] : memref<2x1x64xf32, #tpu.memory_space<vmem>>, vector<1x1x64xf32>
    %270 = vector.shape_cast %269 : vector<1x1x64xf32> to vector<1x64xf32>
    %c16_187 = arith.constant 16 : index
    %c0_188 = arith.constant 0 : index
    %271 = vector.load %arg15[%c16_187, %c0_188] : memref<96x64xf32, #tpu.memory_space<vmem>>, vector<64x64xf32>
    tpu.vector_store %arg15[%c16_187, %c0_188], %268 {strides = array<i32>} : memref<96x64xf32, #tpu.memory_space<vmem>>, vector<64x64xf32>,
    %cst_189 = arith.constant 0.000000e+00 : f32
    %272 = vector.broadcast %cst_189 : f32 to vector<64x64xf32>
    %c7_190 = arith.constant 7 : index
    %c0_191 = arith.constant 0 : index
    %273 = vector.load %arg15[%c7_190, %c0_191] : memref<96x64xf32, #tpu.memory_space<vmem>>, vector<64x64xf32>
    %c1_i32_192 = arith.constant 1 : i32
    %274 = vector.broadcast %c1_i32_192 : i32 to vector<64x64xi32>
    %275 = arith.cmpi sge, %2, %274 : vector<64x64xi32>
    %c1_i32_193 = arith.constant 1 : i32
    %276 = vector.broadcast %c1_i32_193 : i32 to vector<64x64xi32>
    %277 = arith.cmpi sge, %4, %276 : vector<64x64xi32>
    %278 = arith.andi %275, %277 : vector<64x64xi1>
    %cst_194 = arith.constant 0.000000e+00 : f32
    %279 = vector.broadcast %cst_194 : f32 to vector<64x64xf32>
    %280 = arith.select %278, %273, %279 : vector<64x64xi1>, vector<64x64xf32>
    %281 = arith.truncf %280 : vector<64x64xf32> to vector<64x64xbf16>
    %c9_195 = arith.constant 9 : index
    %c0_196 = arith.constant 0 : index
    %c0_197 = arith.constant 0 : index
    %282 = vector.load %arg10[%c9_195, %c0_196, %c0_197] : memref<18x64x64xbf16, #tpu.memory_space<vmem>>, vector<1x64x64xbf16>
    %283 = vector.shape_cast %282 : vector<1x64x64xbf16> to vector<64x64xbf16>
    %cst_198 = arith.constant dense<0.000000e+00> : vector<64x64xf32>
    %284 = tpu.matmul %281, %283, %cst_198 {dimension_numbers = #tpu.dot_dimension_numbers<[1], [0], [0], [1], [0, 0, 1, 1], [], []>} : vector<64x64xbf16>, vector<64x64xbf16>, vector<64x64xf32> -> vector<64x64xf32>
    %285 = arith.addf %272, %284 : vector<64x64xf32>
    %c8_199 = arith.constant 8 : index
    %c0_200 = arith.constant 0 : index
    %286 = vector.load %arg15[%c8_199, %c0_200] : memref<96x64xf32, #tpu.memory_space<vmem>>, vector<64x64xf32>
    %c1_i32_201 = arith.constant 1 : i32
    %287 = vector.broadcast %c1_i32_201 : i32 to vector<64x64xi32>
    %288 = arith.cmpi sge, %2, %287 : vector<64x64xi32>
    %cst_202 = arith.constant 0.000000e+00 : f32
    %289 = vector.broadcast %cst_202 : f32 to vector<64x64xf32>
    %290 = arith.select %288, %286, %289 : vector<64x64xi1>, vector<64x64xf32>
    %291 = arith.truncf %290 : vector<64x64xf32> to vector<64x64xbf16>
    %c10 = arith.constant 10 : index
    %c0_203 = arith.constant 0 : index
    %c0_204 = arith.constant 0 : index
    %292 = vector.load %arg10[%c10, %c0_203, %c0_204] : memref<18x64x64xbf16, #tpu.memory_space<vmem>>, vector<1x64x64xbf16>
    %293 = vector.shape_cast %292 : vector<1x64x64xbf16> to vector<64x64xbf16>
    %cst_205 = arith.constant dense<0.000000e+00> : vector<64x64xf32>
    %294 = tpu.matmul %291, %293, %cst_205 {dimension_numbers = #tpu.dot_dimension_numbers<[1], [0], [0], [1], [0, 0, 1, 1], [], []>} : vector<64x64xbf16>, vector<64x64xbf16>, vector<64x64xf32> -> vector<64x64xf32>
    %295 = arith.addf %285, %294 : vector<64x64xf32>
    %c9_206 = arith.constant 9 : index
    %c0_207 = arith.constant 0 : index
    %296 = vector.load %arg15[%c9_206, %c0_207] : memref<96x64xf32, #tpu.memory_space<vmem>>, vector<64x64xf32>
    %c1_i32_208 = arith.constant 1 : i32
    %297 = vector.broadcast %c1_i32_208 : i32 to vector<64x64xi32>
    %298 = arith.cmpi sge, %2, %297 : vector<64x64xi32>
    %c6_i32_209 = arith.constant 6 : i32
    %299 = vector.broadcast %c6_i32_209 : i32 to vector<64x64xi32>
    %300 = arith.cmpi sle, %4, %299 : vector<64x64xi32>
    %301 = arith.andi %298, %300 : vector<64x64xi1>
    %cst_210 = arith.constant 0.000000e+00 : f32
    %302 = vector.broadcast %cst_210 : f32 to vector<64x64xf32>
    %303 = arith.select %301, %296, %302 : vector<64x64xi1>, vector<64x64xf32>
    %304 = arith.truncf %303 : vector<64x64xf32> to vector<64x64xbf16>
    %c11 = arith.constant 11 : index
    %c0_211 = arith.constant 0 : index
    %c0_212 = arith.constant 0 : index
    %305 = vector.load %arg10[%c11, %c0_211, %c0_212] : memref<18x64x64xbf16, #tpu.memory_space<vmem>>, vector<1x64x64xbf16>
    %306 = vector.shape_cast %305 : vector<1x64x64xbf16> to vector<64x64xbf16>
    %cst_213 = arith.constant dense<0.000000e+00> : vector<64x64xf32>
    %307 = tpu.matmul %304, %306, %cst_213 {dimension_numbers = #tpu.dot_dimension_numbers<[1], [0], [0], [1], [0, 0, 1, 1], [], []>} : vector<64x64xbf16>, vector<64x64xbf16>, vector<64x64xf32> -> vector<64x64xf32>
    %308 = arith.addf %295, %307 : vector<64x64xf32>
    %c15_214 = arith.constant 15 : index
    %c0_215 = arith.constant 0 : index
    %309 = vector.load %arg15[%c15_214, %c0_215] : memref<96x64xf32, #tpu.memory_space<vmem>>, vector<64x64xf32>
    %c1_i32_216 = arith.constant 1 : i32
    %310 = vector.broadcast %c1_i32_216 : i32 to vector<64x64xi32>
    %311 = arith.cmpi sge, %4, %310 : vector<64x64xi32>
    %cst_217 = arith.constant 0.000000e+00 : f32
    %312 = vector.broadcast %cst_217 : f32 to vector<64x64xf32>
    %313 = arith.select %311, %309, %312 : vector<64x64xi1>, vector<64x64xf32>
    %314 = arith.truncf %313 : vector<64x64xf32> to vector<64x64xbf16>
    %c12 = arith.constant 12 : index
    %c0_218 = arith.constant 0 : index
    %c0_219 = arith.constant 0 : index
    %315 = vector.load %arg10[%c12, %c0_218, %c0_219] : memref<18x64x64xbf16, #tpu.memory_space<vmem>>, vector<1x64x64xbf16>
    %316 = vector.shape_cast %315 : vector<1x64x64xbf16> to vector<64x64xbf16>
    %cst_220 = arith.constant dense<0.000000e+00> : vector<64x64xf32>
    %317 = tpu.matmul %314, %316, %cst_220 {dimension_numbers = #tpu.dot_dimension_numbers<[1], [0], [0], [1], [0, 0, 1, 1], [], []>} : vector<64x64xbf16>, vector<64x64xbf16>, vector<64x64xf32> -> vector<64x64xf32>
    %318 = arith.addf %308, %317 : vector<64x64xf32>
    %c16_221 = arith.constant 16 : index
    %c0_222 = arith.constant 0 : index
    %319 = vector.load %arg15[%c16_221, %c0_222] : memref<96x64xf32, #tpu.memory_space<vmem>>, vector<64x64xf32>
    %320 = arith.truncf %319 : vector<64x64xf32> to vector<64x64xbf16>
    %c13 = arith.constant 13 : index
    %c0_223 = arith.constant 0 : index
    %c0_224 = arith.constant 0 : index
    %321 = vector.load %arg10[%c13, %c0_223, %c0_224] : memref<18x64x64xbf16, #tpu.memory_space<vmem>>, vector<1x64x64xbf16>
    %322 = vector.shape_cast %321 : vector<1x64x64xbf16> to vector<64x64xbf16>
    %cst_225 = arith.constant dense<0.000000e+00> : vector<64x64xf32>
    %323 = tpu.matmul %320, %322, %cst_225 {dimension_numbers = #tpu.dot_dimension_numbers<[1], [0], [0], [1], [0, 0, 1, 1], [], []>} : vector<64x64xbf16>, vector<64x64xbf16>, vector<64x64xf32> -> vector<64x64xf32>
    %324 = arith.addf %318, %323 : vector<64x64xf32>
    %c17_226 = arith.constant 17 : index
    %c0_227 = arith.constant 0 : index
    %325 = vector.load %arg15[%c17_226, %c0_227] : memref<96x64xf32, #tpu.memory_space<vmem>>, vector<64x64xf32>
    %c6_i32_228 = arith.constant 6 : i32
    %326 = vector.broadcast %c6_i32_228 : i32 to vector<64x64xi32>
    %327 = arith.cmpi sle, %4, %326 : vector<64x64xi32>
    %cst_229 = arith.constant 0.000000e+00 : f32
    %328 = vector.broadcast %cst_229 : f32 to vector<64x64xf32>
    %329 = arith.select %327, %325, %328 : vector<64x64xi1>, vector<64x64xf32>
    %330 = arith.truncf %329 : vector<64x64xf32> to vector<64x64xbf16>
    %c14 = arith.constant 14 : index
    %c0_230 = arith.constant 0 : index
    %c0_231 = arith.constant 0 : index
    %331 = vector.load %arg10[%c14, %c0_230, %c0_231] : memref<18x64x64xbf16, #tpu.memory_space<vmem>>, vector<1x64x64xbf16>
    %332 = vector.shape_cast %331 : vector<1x64x64xbf16> to vector<64x64xbf16>
    %cst_232 = arith.constant dense<0.000000e+00> : vector<64x64xf32>
    %333 = tpu.matmul %330, %332, %cst_232 {dimension_numbers = #tpu.dot_dimension_numbers<[1], [0], [0], [1], [0, 0, 1, 1], [], []>} : vector<64x64xbf16>, vector<64x64xbf16>, vector<64x64xf32> -> vector<64x64xf32>
    %334 = arith.addf %324, %333 : vector<64x64xf32>
    %c23_233 = arith.constant 23 : index
    %c0_234 = arith.constant 0 : index
    %335 = vector.load %arg15[%c23_233, %c0_234] : memref<96x64xf32, #tpu.memory_space<vmem>>, vector<64x64xf32>
    %c6_i32_235 = arith.constant 6 : i32
    %336 = vector.broadcast %c6_i32_235 : i32 to vector<64x64xi32>
    %337 = arith.cmpi sle, %2, %336 : vector<64x64xi32>
    %c1_i32_236 = arith.constant 1 : i32
    %338 = vector.broadcast %c1_i32_236 : i32 to vector<64x64xi32>
    %339 = arith.cmpi sge, %4, %338 : vector<64x64xi32>
    %340 = arith.andi %337, %339 : vector<64x64xi1>
    %cst_237 = arith.constant 0.000000e+00 : f32
    %341 = vector.broadcast %cst_237 : f32 to vector<64x64xf32>
    %342 = arith.select %340, %335, %341 : vector<64x64xi1>, vector<64x64xf32>
    %343 = arith.truncf %342 : vector<64x64xf32> to vector<64x64xbf16>
    %c15_238 = arith.constant 15 : index
    %c0_239 = arith.constant 0 : index
    %c0_240 = arith.constant 0 : index
    %344 = vector.load %arg10[%c15_238, %c0_239, %c0_240] : memref<18x64x64xbf16, #tpu.memory_space<vmem>>, vector<1x64x64xbf16>
    %345 = vector.shape_cast %344 : vector<1x64x64xbf16> to vector<64x64xbf16>
    %cst_241 = arith.constant dense<0.000000e+00> : vector<64x64xf32>
    %346 = tpu.matmul %343, %345, %cst_241 {dimension_numbers = #tpu.dot_dimension_numbers<[1], [0], [0], [1], [0, 0, 1, 1], [], []>} : vector<64x64xbf16>, vector<64x64xbf16>, vector<64x64xf32> -> vector<64x64xf32>
    %347 = arith.addf %334, %346 : vector<64x64xf32>
    %c24_242 = arith.constant 24 : index
    %c0_243 = arith.constant 0 : index
    %348 = vector.load %arg15[%c24_242, %c0_243] : memref<96x64xf32, #tpu.memory_space<vmem>>, vector<64x64xf32>
    %c6_i32_244 = arith.constant 6 : i32
    %349 = vector.broadcast %c6_i32_244 : i32 to vector<64x64xi32>
    %350 = arith.cmpi sle, %2, %349 : vector<64x64xi32>
    %cst_245 = arith.constant 0.000000e+00 : f32
    %351 = vector.broadcast %cst_245 : f32 to vector<64x64xf32>
    %352 = arith.select %350, %348, %351 : vector<64x64xi1>, vector<64x64xf32>
    %353 = arith.truncf %352 : vector<64x64xf32> to vector<64x64xbf16>
    %c16_246 = arith.constant 16 : index
    %c0_247 = arith.constant 0 : index
    %c0_248 = arith.constant 0 : index
    %354 = vector.load %arg10[%c16_246, %c0_247, %c0_248] : memref<18x64x64xbf16, #tpu.memory_space<vmem>>, vector<1x64x64xbf16>
    %355 = vector.shape_cast %354 : vector<1x64x64xbf16> to vector<64x64xbf16>
    %cst_249 = arith.constant dense<0.000000e+00> : vector<64x64xf32>
    %356 = tpu.matmul %353, %355, %cst_249 {dimension_numbers = #tpu.dot_dimension_numbers<[1], [0], [0], [1], [0, 0, 1, 1], [], []>} : vector<64x64xbf16>, vector<64x64xbf16>, vector<64x64xf32> -> vector<64x64xf32>
    %357 = arith.addf %347, %356 : vector<64x64xf32>
    %c25_250 = arith.constant 25 : index
    %c0_251 = arith.constant 0 : index
    %358 = vector.load %arg15[%c25_250, %c0_251] : memref<96x64xf32, #tpu.memory_space<vmem>>, vector<64x64xf32>
    %c6_i32_252 = arith.constant 6 : i32
    %359 = vector.broadcast %c6_i32_252 : i32 to vector<64x64xi32>
    %360 = arith.cmpi sle, %2, %359 : vector<64x64xi32>
    %c6_i32_253 = arith.constant 6 : i32
    %361 = vector.broadcast %c6_i32_253 : i32 to vector<64x64xi32>
    %362 = arith.cmpi sle, %4, %361 : vector<64x64xi32>
    %363 = arith.andi %360, %362 : vector<64x64xi1>
    %cst_254 = arith.constant 0.000000e+00 : f32
    %364 = vector.broadcast %cst_254 : f32 to vector<64x64xf32>
    %365 = arith.select %363, %358, %364 : vector<64x64xi1>, vector<64x64xf32>
    %366 = arith.truncf %365 : vector<64x64xf32> to vector<64x64xbf16>
    %c17_255 = arith.constant 17 : index
    %c0_256 = arith.constant 0 : index
    %c0_257 = arith.constant 0 : index
    %367 = vector.load %arg10[%c17_255, %c0_256, %c0_257] : memref<18x64x64xbf16, #tpu.memory_space<vmem>>, vector<1x64x64xbf16>
    %368 = vector.shape_cast %367 : vector<1x64x64xbf16> to vector<64x64xbf16>
    %cst_258 = arith.constant dense<0.000000e+00> : vector<64x64xf32>
    %369 = tpu.matmul %366, %368, %cst_258 {dimension_numbers = #tpu.dot_dimension_numbers<[1], [0], [0], [1], [0, 0, 1, 1], [], []>} : vector<64x64xbf16>, vector<64x64xbf16>, vector<64x64xf32> -> vector<64x64xf32>
    %370 = arith.addf %357, %369 : vector<64x64xf32>
    %371 = vector.broadcast %270 : vector<1x64xf32> to vector<64x64xf32>
    %372 = arith.addf %370, %371 : vector<64x64xf32>
    %cst_259 = arith.constant 0.000000e+00 : f32
    %373 = vector.broadcast %cst_259 : f32 to vector<64x64xf32>
    %374 = arith.maximumf %372, %373 : vector<64x64xf32>
    %375 = arith.truncf %374 : vector<64x64xf32> to vector<64x64xbf16>
    %c1_260 = arith.constant 1 : index
    %c0_261 = arith.constant 0 : index
    %c0_262 = arith.constant 0 : index
    %376 = vector.load %arg12[%c1_260, %c0_261, %c0_262] : memref<2x64x256xbf16, #tpu.memory_space<vmem>>, vector<1x64x256xbf16>
    %377 = vector.shape_cast %376 : vector<1x64x256xbf16> to vector<64x256xbf16>
    %cst_263 = arith.constant dense<0.000000e+00> : vector<64x256xf32>
    %378 = tpu.matmul %375, %377, %cst_263 {dimension_numbers = #tpu.dot_dimension_numbers<[1], [0], [0], [1], [0, 0, 1, 1], [], []>} : vector<64x64xbf16>, vector<64x256xbf16>, vector<64x256xf32> -> vector<64x256xf32>
    %c1_264 = arith.constant 1 : index
    %c0_265 = arith.constant 0 : index
    %c0_266 = arith.constant 0 : index
    %379 = vector.load %arg13[%c1_264, %c0_265, %c0_266] : memref<2x1x256xf32, #tpu.memory_space<vmem>>, vector<1x1x256xf32>
    %380 = vector.shape_cast %379 : vector<1x1x256xf32> to vector<1x256xf32>
    %381 = vector.broadcast %380 : vector<1x256xf32> to vector<64x256xf32>
    %382 = arith.addf %378, %381 : vector<64x256xf32>
    %383 = arith.addf %382, %258 : vector<64x256xf32>
    %cst_267 = arith.constant 0.000000e+00 : f32
    %384 = vector.broadcast %cst_267 : f32 to vector<64x256xf32>
    %385 = arith.maximumf %383, %384 : vector<64x256xf32>
    %cst_268 = arith.constant dense<0.000000e+00> : vector<256xf32>
    %386 = vector.multi_reduction <add>, %385, %cst_268 [0] : vector<64x256xf32> to vector<256xf32>
    %387 = vector.shape_cast %386 : vector<256xf32> to vector<1x256xf32>
    %cst_269 = arith.constant 1.562500e-02 : f32
    %388 = vector.broadcast %cst_269 : f32 to vector<1x256xf32>
    %389 = arith.mulf %387, %388 : vector<1x256xf32>
    %390 = vector.shape_cast %389 : vector<1x256xf32> to vector<1x1x256xf32>
    %c0_270 = arith.constant 0 : index
    %c0_271 = arith.constant 0 : index
    %c0_272 = arith.constant 0 : index
    %391 = vector.load %arg14[%c0_270, %c0_271, %c0_272] : memref<1x1x256xf32, #tpu.memory_space<vmem>>, vector<1x1x256xf32>
    tpu.vector_store %arg14[%c0_270, %c0_271, %c0_272], %390 {strides = array<i32>} : memref<1x1x256xf32, #tpu.memory_space<vmem>>, vector<1x1x256xf32>,
    return
  }
  func.func @transform_0(%arg0: i32) -> (i32, i32, i32) {
    %c0_i32 = arith.constant 0 : i32
    %c0_i32_0 = arith.constant 0 : i32
    %c0_i32_1 = arith.constant 0 : i32
    return %arg0, %c0_i32, %c0_i32_0 : i32, i32, i32
  }
  func.func @transform_1(%arg0: i32) -> (i32, i32) {
    %c0_i32 = arith.constant 0 : i32
    %c0_i32_0 = arith.constant 0 : i32
    %c0_i32_1 = arith.constant 0 : i32
    return %c0_i32, %c0_i32_0 : i32, i32
  }
  func.func @transform_2(%arg0: i32) -> (i32, i32) {
    %c0_i32 = arith.constant 0 : i32
    %c0_i32_0 = arith.constant 0 : i32
    %c0_i32_1 = arith.constant 0 : i32
    return %c0_i32, %c0_i32_0 : i32, i32
  }
  func.func @transform_3(%arg0: i32) -> (i32, i32, i32) {
    %c0_i32 = arith.constant 0 : i32
    %c0_i32_0 = arith.constant 0 : i32
    %c0_i32_1 = arith.constant 0 : i32
    %c0_i32_2 = arith.constant 0 : i32
    return %c0_i32, %c0_i32_0, %c0_i32_1 : i32, i32, i32
  }
  func.func @transform_4(%arg0: i32) -> (i32, i32) {
    %c0_i32 = arith.constant 0 : i32
    %c0_i32_0 = arith.constant 0 : i32
    %c0_i32_1 = arith.constant 0 : i32
    return %c0_i32, %c0_i32_0 : i32, i32
  }
  func.func @transform_5(%arg0: i32) -> (i32, i32) {
    %c0_i32 = arith.constant 0 : i32
    %c0_i32_0 = arith.constant 0 : i32
    %c0_i32_1 = arith.constant 0 : i32
    return %c0_i32, %c0_i32_0 : i32, i32
  }
  func.func @transform_6(%arg0: i32) -> (i32, i32) {
    %c0_i32 = arith.constant 0 : i32
    %c0_i32_0 = arith.constant 0 : i32
    %c0_i32_1 = arith.constant 0 : i32
    return %c0_i32, %c0_i32_0 : i32, i32
  }
  func.func @transform_7(%arg0: i32) -> (i32, i32, i32) {
    %c0_i32 = arith.constant 0 : i32
    %c0_i32_0 = arith.constant 0 : i32
    %c0_i32_1 = arith.constant 0 : i32
    %c0_i32_2 = arith.constant 0 : i32
    return %c0_i32, %c0_i32_0, %c0_i32_1 : i32, i32, i32
  }
  func.func @transform_8(%arg0: i32) -> (i32, i32, i32) {
    %c0_i32 = arith.constant 0 : i32
    %c0_i32_0 = arith.constant 0 : i32
    %c0_i32_1 = arith.constant 0 : i32
    %c0_i32_2 = arith.constant 0 : i32
    return %c0_i32, %c0_i32_0, %c0_i32_1 : i32, i32, i32
  }
  func.func @transform_9(%arg0: i32) -> (i32, i32, i32) {
    %c0_i32 = arith.constant 0 : i32
    %c0_i32_0 = arith.constant 0 : i32
    %c0_i32_1 = arith.constant 0 : i32
    %c0_i32_2 = arith.constant 0 : i32
    return %c0_i32, %c0_i32_0, %c0_i32_1 : i32, i32, i32
  }
  func.func @transform_10(%arg0: i32) -> (i32, i32, i32) {
    %c0_i32 = arith.constant 0 : i32
    %c0_i32_0 = arith.constant 0 : i32
    %c0_i32_1 = arith.constant 0 : i32
    %c0_i32_2 = arith.constant 0 : i32
    return %c0_i32, %c0_i32_0, %c0_i32_1 : i32, i32, i32
  }
  func.func @transform_11(%arg0: i32) -> (i32, i32, i32) {
    %c0_i32 = arith.constant 0 : i32
    %c0_i32_0 = arith.constant 0 : i32
    %c0_i32_1 = arith.constant 0 : i32
    %c0_i32_2 = arith.constant 0 : i32
    return %c0_i32, %c0_i32_0, %c0_i32_1 : i32, i32, i32
  }
  func.func @transform_12(%arg0: i32) -> (i32, i32, i32) {
    %c0_i32 = arith.constant 0 : i32
    %c0_i32_0 = arith.constant 0 : i32
    %c0_i32_1 = arith.constant 0 : i32
    %c0_i32_2 = arith.constant 0 : i32
    return %c0_i32, %c0_i32_0, %c0_i32_1 : i32, i32, i32
  }
  func.func @transform_13(%arg0: i32) -> (i32, i32, i32) {
    %c0_i32 = arith.constant 0 : i32
    %c0_i32_0 = arith.constant 0 : i32
    %c0_i32_1 = arith.constant 0 : i32
    return %arg0, %c0_i32, %c0_i32_0 : i32, i32, i32
  }
}

</mosaic_0001>

<bundles_post_ra>
// kernel: resnet_feature_extractor_forward.2
= control target key start
LH: loop header
LB: loop body
LE: loop exit
PB: predicated region body
PF: predicated region fallthrough
CT: control target
= control target key end

     0   :  { %s1269_s12 = smov 0   ;;  %s1475_s0 = inlined_call_operand.vmem [shape: bf16[512,256], index: 0, kind: input, shape index: {}]   ;;  %s1476_s1 = inlined_call_operand.vmem [shape: bf16[256,64], index: 1, kind: input, shape index: {}]   ;;  %s1477_s2 = inlined_call_operand.vmem [shape: f32[1,64], index: 2, kind: input, shape index: {}]   ;;  %s1478_s3 = inlined_call_operand.vmem [shape: bf16[512,64], index: 3, kind: output, shape index: {}]  }
   0x1 LB: > { %s915_s13 = sadd.s32 4294967295, %s1247_s12   ;;  %p919_p0 = scmp.ge.s32.totalorder %s1247_s12, 1  ;;  %s1247_s12 = sphi %s1269_s12, %s13_s12  }
   0x2   : > { %p139_p1 = scmp.lt.s32.totalorder %s1247_s12, 3 }
   0x4   : > { %p140_p2 = pnand %p919_p0, %p139_p1 }
   0x5   : > { %s920_s16 = sshll.u32 (!%p140_p2), %s915_s13, 5 }
   0x6   : > { %143 = sbr.rel (%p140_p2) target bundleno = 308 (0x134), region = 32  ;;  %p165_p3 = scmp.lt.s32.totalorder (!%p140_p2), %s920_s16, 63 }
   0xb   : > { %v1177_v0 = vld [vmem:[%s1476_s1 + $0x78] sm:$0xff]   ;;  %v1179_v2 = vld [vmem:[%s1476_s1 + $0x70] sm:$0xff]   ;;  %v1181_v4 = vld [vmem:[%s1476_s1 + $0x68] sm:$0xff]   ;;  %s1480_s16 = smov (!%p165_p3, %s920_s16), 63  ;;  %vm826_vm0 = vcmask 519168  }
   0xc   : > { %v1178_v1 = vld [vmem:[%s1476_s1 + $0x38] sm:$0xff]   ;;  %1041 = vmatprep.subr.bf16.mxu0 %v1177_v0  ;;  %1153 = vmatprep.subr.bf16.mxu1 %v1177_v0  ;;  %v1180_v3 = vld [vmem:[%s1476_s1 + $0x30] sm:$0xff]   ;;  %v1182_v5 = vld [vmem:[%s1476_s1 + $0x28] sm:$0xff]   ;;  %s1008_s4 = sshll.u32 %s1480_s16, 3  ;;  %s924_s28 = sshll.u32 %s1480_s16, 2 }
   0xd   : > { %1042 = vmatpush3.bf16.msra.mxu0 %v1178_v1  ;;  %1161 = vmatpush3.bf16.msra.mxu1 %v1178_v1  ;;  %v1183_v6 = vld [vmem:[%s1476_s1 + $0x60] sm:$0xff]   ;;  %v1185_v8 = vld [vmem:[%s1476_s1 + $0x58] sm:$0xff]   ;;  %s1310_s9 = scalar_lea.vmem %s1475_s0, %s1008_s4  ;;  %v1187_v10 = vld [vmem:[%s1476_s1 + $0x50] sm:$0xff]   ;;  %s1376_s4 = scalar_lea.vmem %s1478_s3, %s924_s28 }
   0xe   : > { %1043 = vmatprep.subr.bf16.mxu0 %v1179_v2  ;;  %1154 = vmatprep.subr.bf16.mxu1 %v1179_v2  ;;  %v1184_v7 = vld [vmem:[%s1476_s1 + $0x20] sm:$0xff]   ;;  %v1186_v9 = vld [vmem:[%s1476_s1 + $0x18] sm:$0xff]   ;;  %v1188_v13 = vld [vmem:[%s1476_s1 + $0x10] sm:$0xff]  }
   0xf   : > { %v1195_v11 = vld [vmem:[%s1310_s9 + $0x4] ss:$8 sps:$4 sm:$0xff]   ;;  %v1193_v18 = vld [vmem:[%s1310_s9] ss:$8 sps:$4 sm:$0xff]   ;;  %v1199_v20 = vld [vmem:[%s1310_s9 + $0x14] ss:$8 sps:$4 sm:$0xff]  }
  0x10   : > { %v1198_v12 = vld [vmem:[%s1310_s9 + $0x84] ss:$8 sps:$4 sm:$0xff]   ;;  %537 = vmatprep.mubr.bf16.mxu0 %v1195_v11  ;;  %v1196_v19 = vld [vmem:[%s1310_s9 + $0x80] ss:$8 sps:$4 sm:$0xff]   ;;  %v1201_v21 = vld [vmem:[%s1310_s9 + $0x94] ss:$8 sps:$4 sm:$0xff]  }
  0x11   : > { %1044 = vmatpush3.bf16.msra.mxu0 %v1180_v3  ;;  %1162 = vmatpush3.bf16.msra.mxu1 %v1180_v3  ;;  %v1189_v14 = vld [vmem:[%s1476_s1 + $0x48] sm:$0xff]   ;;  %v1191_v16 = vld [vmem:[%s1476_s1 + $0x40] sm:$0xff]   ;;  %v1203_v22 = vld [vmem:[%s1310_s9 + $0x10] ss:$8 sps:$4 sm:$0xff]  }
  0x12   : > { %1045 = vmatprep.subr.bf16.mxu0 %v1181_v4  ;;  %1155 = vmatprep.subr.bf16.mxu1 %v1181_v4  ;;  %v1190_v15 = vld [vmem:[%s1476_s1 + $0x8] sm:$0xff]   ;;  %v1192_v17 = vld [vmem:[%s1476_s1] sm:$0xff]   ;;  %v1204_v23 = vld [vmem:[%s1310_s9 + $0x90] ss:$8 sps:$4 sm:$0xff]  }
  0x13   : > { %601 = vmatprep.mubr.bf16.mxu1 %v1198_v12  ;;  %v1205_v24 = vld [vmem:[%s1310_s9 + $0x24] ss:$8 sps:$4 sm:$0xff]   ;;  %v1209_v26 = vld [vmem:[%s1310_s9 + $0x20] ss:$8 sps:$4 sm:$0xff]   ;;  %v1211_v28 = vld [vmem:[%s1310_s9 + $0x34] ss:$8 sps:$4 sm:$0xff]  }
  0x14   : > { %v1207_v25 = vld [vmem:[%s1310_s9 + $0xa4] ss:$8 sps:$4 sm:$0xff]   ;;  %v1210_v27 = vld [vmem:[%s1310_s9 + $0xa0] ss:$8 sps:$4 sm:$0xff]   ;;  %v1213_v29 = vld [vmem:[%s1310_s9 + $0xb4] ss:$8 sps:$4 sm:$0xff]  }
  0x15   : > { %1046 = vmatpush3.bf16.msra.mxu0 %v1182_v5  ;;  %1163 = vmatpush3.bf16.msra.mxu1 %v1182_v5  ;;  %v1215_v30 = vld [vmem:[%s1310_s9 + $0x30] ss:$8 sps:$4 sm:$0xff]   ;;  %v1217_v32 = vld [vmem:[%s1310_s9 + $0x44] ss:$8 sps:$4 sm:$0xff]   ;;  %v1221_v34 = vld [vmem:[%s1310_s9 + $0x40] ss:$8 sps:$4 sm:$0xff]  }
  0x16   : > { %1047 = vmatprep.subr.bf16.mxu0 %v1183_v6  ;;  %1156 = vmatprep.subr.bf16.mxu1 %v1183_v6  ;;  %v1216_v31 = vld [vmem:[%s1310_s9 + $0xb0] ss:$8 sps:$4 sm:$0xff]   ;;  %v1219_v33 = vld [vmem:[%s1310_s9 + $0xc4] ss:$8 sps:$4 sm:$0xff]   ;;  %v1222_v35 = vld [vmem:[%s1310_s9 + $0xc0] ss:$8 sps:$4 sm:$0xff]  }
  0x17   : > { %v1223_v36 = vld [vmem:[%s1310_s9 + $0x54] ss:$8 sps:$4 sm:$0xff]   ;;  %v1227_v38 = vld [vmem:[%s1310_s9 + $0x50] ss:$8 sps:$4 sm:$0xff]   ;;  %v1229_v40 = vld [vmem:[%s1310_s9 + $0x64] ss:$8 sps:$4 sm:$0xff]  }
  0x18   : > { %v1225_v37 = vld [vmem:[%s1310_s9 + $0xd4] ss:$8 sps:$4 sm:$0xff]   ;;  %v1228_v39 = vld [vmem:[%s1310_s9 + $0xd0] ss:$8 sps:$4 sm:$0xff]   ;;  %v1231_v41 = vld [vmem:[%s1310_s9 + $0xe4] ss:$8 sps:$4 sm:$0xff]  }
  0x19   : > { %1048 = vmatpush3.bf16.msra.mxu0 %v1184_v7  ;;  %1164 = vmatpush3.bf16.msra.mxu1 %v1184_v7  ;;  %v1233_v42 = vld [vmem:[%s1310_s9 + $0x60] ss:$8 sps:$4 sm:$0xff]   ;;  %v1235_v44 = vld [vmem:[%s1310_s9 + $0x74] ss:$8 sps:$4 sm:$0xff]   ;;  %v1239_v46 = vld [vmem:[%s1310_s9 + $0x70] ss:$8 sps:$4 sm:$0xff]  }
  0x1a   : > { %1049 = vmatprep.subr.bf16.mxu0 %v1185_v8  ;;  %1157 = vmatprep.subr.bf16.mxu1 %v1185_v8  ;;  %v1234_v43 = vld [vmem:[%s1310_s9 + $0xe0] ss:$8 sps:$4 sm:$0xff]   ;;  %v1237_v45 = vld [vmem:[%s1310_s9 + $0xf4] ss:$8 sps:$4 sm:$0xff]   ;;  %v1240_v47 = vld [vmem:[%s1310_s9 + $0xf0] ss:$8 sps:$4 sm:$0xff]  }
  0x1b   : > { %v1368_v50 = vld [vmem:[%s1477_s2] ss:$0 sm:$0xff] }
  0x1d   : > { %1050 = vmatpush3.bf16.msra.mxu0 %v1186_v9  ;;  %1165 = vmatpush3.bf16.msra.mxu1 %v1186_v9 }
  0x1e   : > { %1051 = vmatprep.subr.bf16.mxu0 %v1187_v10  ;;  %1158 = vmatprep.subr.bf16.mxu1 %v1187_v10 }
  0x21   : > { %1052 = vmatpush3.bf16.msra.mxu0 %v1188_v13  ;;  %1166 = vmatpush3.bf16.msra.mxu1 %v1188_v13 }
  0x22   : > { %1053 = vmatprep.subr.bf16.mxu0 %v1189_v14  ;;  %1159 = vmatprep.subr.bf16.mxu1 %v1189_v14 }
  0x25   : > { %1054 = vmatpush3.bf16.msra.mxu0 %v1190_v15  ;;  %1167 = vmatpush3.bf16.msra.mxu1 %v1190_v15 }
  0x26   : > { %1055 = vmatprep.subr.bf16.mxu0 %v1191_v16  ;;  %1160 = vmatprep.subr.bf16.mxu1 %v1191_v16 }
  0x29   : > { %1056 = vmatpush3.bf16.msra.mxu0 %v1192_v17  ;;  %1168 = vmatpush3.bf16.msra.mxu1 %v1192_v17 }
  0x2c   : > { %538 = vmatmul.mubr.bf16.vlgmr.msra.gmra.mxu0 %v1193_v18  ;;  %602 = vmatmul.mubr.bf16.vlgmr.msra.gmra.mxu1 %v1196_v19 }
  0x2d   : > { %545 = vmatprep.mubr.bf16.mxu0 %v1199_v20  ;;  %609 = vmatprep.mubr.bf16.mxu1 %v1201_v21 }
  0x34   : > { %546 = vmatmul.mubr.bf16.gmra.mxu0 %v1203_v22  ;;  %610 = vmatmul.mubr.bf16.gmra.mxu1 %v1204_v23 }
  0x35   : > { %553 = vmatprep.mubr.bf16.mxu0 %v1205_v24  ;;  %617 = vmatprep.mubr.bf16.mxu1 %v1207_v25 }
  0x3c   : > { %554 = vmatmul.mubr.bf16.gmra.mxu0 %v1209_v26  ;;  %618 = vmatmul.mubr.bf16.gmra.mxu1 %v1210_v27 }
  0x3d   : > { %561 = vmatprep.mubr.bf16.mxu0 %v1211_v28  ;;  %625 = vmatprep.mubr.bf16.mxu1 %v1213_v29 }
  0x44   : > { %562 = vmatmul.mubr.bf16.gmra.mxu0 %v1215_v30  ;;  %626 = vmatmul.mubr.bf16.gmra.mxu1 %v1216_v31 }
  0x45   : > { %569 = vmatprep.mubr.bf16.mxu0 %v1217_v32  ;;  %633 = vmatprep.mubr.bf16.mxu1 %v1219_v33 }
  0x4c   : > { %570 = vmatmul.mubr.bf16.gmra.mxu0 %v1221_v34  ;;  %634 = vmatmul.mubr.bf16.gmra.mxu1 %v1222_v35 }
  0x4d   : > { %577 = vmatprep.mubr.bf16.mxu0 %v1223_v36  ;;  %641 = vmatprep.mubr.bf16.mxu1 %v1225_v37 }
  0x54   : > { %578 = vmatmul.mubr.bf16.gmra.mxu0 %v1227_v38  ;;  %642 = vmatmul.mubr.bf16.gmra.mxu1 %v1228_v39 }
  0x55   : > { %585 = vmatprep.mubr.bf16.mxu0 %v1229_v40  ;;  %649 = vmatprep.mubr.bf16.mxu1 %v1231_v41 }
  0x5c   : > { %586 = vmatmul.mubr.bf16.gmra.mxu0 %v1233_v42  ;;  %650 = vmatmul.mubr.bf16.gmra.mxu1 %v1234_v43 }
  0x5d   : > { %593 = vmatprep.mubr.bf16.mxu0 %v1235_v44  ;;  %657 = vmatprep.mubr.bf16.mxu1 %v1237_v45 }
  0x64   : > { %594 = vmatmul.mubr.bf16.gmra.mxu0 %v1239_v46  ;;  %658 = vmatmul.mubr.bf16.gmra.mxu1 %v1240_v47 }
  0xec   : > { %v1057_v48 = vpop.f32.mrf.mxu0  ;;  %v1105_v49 = vpop.f32.mrf.mxu1 }
  0xee   : > { %v1058_v51 = vpop.f32.mrf.mxu0  ;;  %v1106_v52 = vpop.f32.mrf.mxu1 }
  0xef   : > { %v1059_v53 = vadd.f32 %v1058_v51, %v1057_v48  ;;  %v1107_v54 = vadd.f32 %v1106_v52, %v1105_v49 }
  0xf0   : > { %v1060_v55 = vpop.f32.mrf.mxu0  ;;  %v1108_v56 = vpop.f32.mrf.mxu1 }
  0xf1   : > { %v540_v57 = vadd.f32 %v1059_v53, %v1368_v50  ;;  %v604_v58 = vadd.f32 %v1107_v54, %v1368_v50 }
  0xf2   : > { %v1061_v59 = vpop.f32.mrf.mxu0  ;;  %v1109_v60 = vpop.f32.mrf.mxu1 }
  0xf3   : > { %v666_v61 = vmax.f32 %v540_v57, 0.0  ;;  %v682_v62 = vmax.f32 %v604_v58, 0.0  ;;  %v1062_v63 = vadd.f32 %v1061_v59, %v1060_v55  ;;  %v1110_v0 = vadd.f32 %v1109_v60, %v1108_v56 }
  0xf4   : > { %v1063_v1 = vpop.f32.mrf.mxu0  ;;  %v1111_v2 = vpop.f32.mrf.mxu1 }
  0xf5   : > { %v1009_v3 = vpack.c.bf16 %v666_v61, %v666_v61  ;;  %v1025_v4 = vpack.c.bf16 %v682_v62, %v682_v62  ;;  %v543_v5 = vadd.f32 %v1062_v63, %v1368_v50  ;;  %v607_v6 = vadd.f32 %v1110_v0, %v1368_v50 }
  0xf6   : > { %v1064_v7 = vpop.f32.mrf.mxu0  ;;  %v1112_v8 = vpop.f32.mrf.mxu1 }
  0xf7   : > { %827 = vst.msk [vmem:[%s1376_s4] sm:$0xf] %vm826_vm0, %v1009_v3  ;;  %843 = vst.msk [vmem:[%s1376_s4 + $0x40] sm:$0xf] %vm826_vm0, %v1025_v4  ;;  %v667_v9 = vmax.f32 %v543_v5, 0.0  ;;  %v683_v10 = vmax.f32 %v607_v6, 0.0  ;;  %v1065_v11 = vadd.f32 %v1064_v7, %v1063_v1  ;;  %v1113_v12 = vadd.f32 %v1112_v8, %v1111_v2 }
  0xf8   : > { %v1066_v13 = vpop.f32.mrf.mxu0  ;;  %v1114_v14 = vpop.f32.mrf.mxu1 }
  0xf9   : > { %v1010_v15 = vpack.c.bf16 %v667_v9, %v667_v9  ;;  %v1026_v16 = vpack.c.bf16 %v683_v10, %v683_v10  ;;  %v548_v17 = vadd.f32 %v1065_v11, %v1368_v50  ;;  %v612_v18 = vadd.f32 %v1113_v12, %v1368_v50 }
  0xfa   : > { %v1067_v19 = vpop.f32.mrf.mxu0  ;;  %v1115_v20 = vpop.f32.mrf.mxu1 }
  0xfb   : > { %828 = vst.msk [vmem:[%s1376_s4 + $0x4] sm:$0xf] %vm826_vm0, %v1010_v15  ;;  %844 = vst.msk [vmem:[%s1376_s4 + $0x44] sm:$0xf] %vm826_vm0, %v1026_v16  ;;  %v668_v21 = vmax.f32 %v548_v17, 0.0  ;;  %v684_v22 = vmax.f32 %v612_v18, 0.0  ;;  %v1068_v23 = vadd.f32 %v1067_v19, %v1066_v13  ;;  %v1116_v24 = vadd.f32 %v1115_v20, %v1114_v14 }
  0xfc   : > { %v1069_v25 = vpop.f32.mrf.mxu0  ;;  %v1117_v26 = vpop.f32.mrf.mxu1 }
  0xfd   : > { %v1011_v27 = vpack.c.bf16 %v668_v21, %v668_v21  ;;  %v1027_v28 = vpack.c.bf16 %v684_v22, %v684_v22  ;;  %v551_v29 = vadd.f32 %v1068_v23, %v1368_v50  ;;  %v615_v30 = vadd.f32 %v1116_v24, %v1368_v50 }
  0xfe   : > { %v1070_v31 = vpop.f32.mrf.mxu0  ;;  %v1118_v32 = vpop.f32.mrf.mxu1 }
  0xff   : > { %829 = vst.msk [vmem:[%s1376_s4 + $0x8] sm:$0xf] %vm826_vm0, %v1011_v27  ;;  %845 = vst.msk [vmem:[%s1376_s4 + $0x48] sm:$0xf] %vm826_vm0, %v1027_v28  ;;  %v669_v33 = vmax.f32 %v551_v29, 0.0  ;;  %v685_v34 = vmax.f32 %v615_v30, 0.0  ;;  %v1071_v35 = vadd.f32 %v1070_v31, %v1069_v25  ;;  %v1119_v36 = vadd.f32 %v1118_v32, %v1117_v26 }
 0x100   : > { %v1072_v37 = vpop.f32.mrf.mxu0  ;;  %v1120_v38 = vpop.f32.mrf.mxu1 }
 0x101   : > { %v1012_v39 = vpack.c.bf16 %v669_v33, %v669_v33  ;;  %v1028_v40 = vpack.c.bf16 %v685_v34, %v685_v34  ;;  %v556_v41 = vadd.f32 %v1071_v35, %v1368_v50  ;;  %v620_v42 = vadd.f32 %v1119_v36, %v1368_v50 }
 0x102   : > { %v1073_v43 = vpop.f32.mrf.mxu0  ;;  %v1121_v44 = vpop.f32.mrf.mxu1 }
 0x103   : > { %830 = vst.msk [vmem:[%s1376_s4 + $0xc] sm:$0xf] %vm826_vm0, %v1012_v39  ;;  %846 = vst.msk [vmem:[%s1376_s4 + $0x4c] sm:$0xf] %vm826_vm0, %v1028_v40  ;;  %v670_v45 = vmax.f32 %v556_v41, 0.0  ;;  %v686_v46 = vmax.f32 %v620_v42, 0.0  ;;  %v1074_v47 = vadd.f32 %v1073_v43, %v1072_v37  ;;  %v1122_v48 = vadd.f32 %v1121_v44, %v1120_v38 }
 0x104   : > { %v1075_v49 = vpop.f32.mrf.mxu0  ;;  %v1123_v51 = vpop.f32.mrf.mxu1 }
 0x105   : > { %v1013_v52 = vpack.c.bf16 %v670_v45, %v670_v45  ;;  %v1029_v53 = vpack.c.bf16 %v686_v46, %v686_v46  ;;  %v559_v54 = vadd.f32 %v1074_v47, %v1368_v50  ;;  %v623_v55 = vadd.f32 %v1122_v48, %v1368_v50 }
 0x106   : > { %v1076_v56 = vpop.f32.mrf.mxu0  ;;  %v1124_v57 = vpop.f32.mrf.mxu1 }
 0x107   : > { %831 = vst.msk [vmem:[%s1376_s4 + $0x10] sm:$0xf] %vm826_vm0, %v1013_v52  ;;  %847 = vst.msk [vmem:[%s1376_s4 + $0x50] sm:$0xf] %vm826_vm0, %v1029_v53  ;;  %v671_v58 = vmax.f32 %v559_v54, 0.0  ;;  %v687_v59 = vmax.f32 %v623_v55, 0.0  ;;  %v1077_v60 = vadd.f32 %v1076_v56, %v1075_v49  ;;  %v1125_v61 = vadd.f32 %v1124_v57, %v1123_v51 }
 0x108   : > { %v1078_v62 = vpop.f32.mrf.mxu0  ;;  %v1126_v63 = vpop.f32.mrf.mxu1 }
 0x109   : > { %v1014_v0 = vpack.c.bf16 %v671_v58, %v671_v58  ;;  %v1030_v1 = vpack.c.bf16 %v687_v59, %v687_v59  ;;  %v564_v2 = vadd.f32 %v1077_v60, %v1368_v50  ;;  %v628_v3 = vadd.f32 %v1125_v61, %v1368_v50 }
 0x10a   : > { %v1079_v4 = vpop.f32.mrf.mxu0  ;;  %v1127_v5 = vpop.f32.mrf.mxu1 }
 0x10b   : > { %832 = vst.msk [vmem:[%s1376_s4 + $0x14] sm:$0xf] %vm826_vm0, %v1014_v0  ;;  %848 = vst.msk [vmem:[%s1376_s4 + $0x54] sm:$0xf] %vm826_vm0, %v1030_v1  ;;  %v672_v6 = vmax.f32 %v564_v2, 0.0  ;;  %v688_v7 = vmax.f32 %v628_v3, 0.0  ;;  %v1080_v8 = vadd.f32 %v1079_v4, %v1078_v62  ;;  %v1128_v9 = vadd.f32 %v1127_v5, %v1126_v63 }
 0x10c   : > { %v1081_v10 = vpop.f32.mrf.mxu0  ;;  %v1129_v11 = vpop.f32.mrf.mxu1 }
 0x10d   : > { %v1015_v12 = vpack.c.bf16 %v672_v6, %v672_v6  ;;  %v1031_v13 = vpack.c.bf16 %v688_v7, %v688_v7  ;;  %v567_v14 = vadd.f32 %v1080_v8, %v1368_v50  ;;  %v631_v15 = vadd.f32 %v1128_v9, %v1368_v50 }
 0x10e   : > { %v1082_v16 = vpop.f32.mrf.mxu0  ;;  %v1130_v17 = vpop.f32.mrf.mxu1 }
 0x10f   : > { %833 = vst.msk [vmem:[%s1376_s4 + $0x18] sm:$0xf] %vm826_vm0, %v1015_v12  ;;  %849 = vst.msk [vmem:[%s1376_s4 + $0x58] sm:$0xf] %vm826_vm0, %v1031_v13  ;;  %v673_v18 = vmax.f32 %v567_v14, 0.0  ;;  %v689_v19 = vmax.f32 %v631_v15, 0.0  ;;  %v1083_v20 = vadd.f32 %v1082_v16, %v1081_v10  ;;  %v1131_v21 = vadd.f32 %v1130_v17, %v1129_v11 }
 0x110   : > { %v1084_v22 = vpop.f32.mrf.mxu0  ;;  %v1132_v23 = vpop.f32.mrf.mxu1 }
 0x111   : > { %v1016_v24 = vpack.c.bf16 %v673_v18, %v673_v18  ;;  %v1032_v25 = vpack.c.bf16 %v689_v19, %v689_v19  ;;  %v572_v26 = vadd.f32 %v1083_v20, %v1368_v50  ;;  %v636_v27 = vadd.f32 %v1131_v21, %v1368_v50 }
 0x112   : > { %v1085_v28 = vpop.f32.mrf.mxu0  ;;  %v1133_v29 = vpop.f32.mrf.mxu1 }
 0x113   : > { %834 = vst.msk [vmem:[%s1376_s4 + $0x1c] sm:$0xf] %vm826_vm0, %v1016_v24  ;;  %850 = vst.msk [vmem:[%s1376_s4 + $0x5c] sm:$0xf] %vm826_vm0, %v1032_v25  ;;  %v674_v30 = vmax.f32 %v572_v26, 0.0  ;;  %v690_v31 = vmax.f32 %v636_v27, 0.0  ;;  %v1086_v32 = vadd.f32 %v1085_v28, %v1084_v22  ;;  %v1134_v33 = vadd.f32 %v1133_v29, %v1132_v23 }
 0x114   : > { %v1087_v34 = vpop.f32.mrf.mxu0  ;;  %v1135_v35 = vpop.f32.mrf.mxu1 }
 0x115   : > { %v1017_v36 = vpack.c.bf16 %v674_v30, %v674_v30  ;;  %v1033_v37 = vpack.c.bf16 %v690_v31, %v690_v31  ;;  %v575_v38 = vadd.f32 %v1086_v32, %v1368_v50  ;;  %v639_v39 = vadd.f32 %v1134_v33, %v1368_v50 }
 0x116   : > { %v1088_v40 = vpop.f32.mrf.mxu0  ;;  %v1136_v41 = vpop.f32.mrf.mxu1 }
 0x117   : > { %835 = vst.msk [vmem:[%s1376_s4 + $0x20] sm:$0xf] %vm826_vm0, %v1017_v36  ;;  %851 = vst.msk [vmem:[%s1376_s4 + $0x60] sm:$0xf] %vm826_vm0, %v1033_v37  ;;  %v675_v42 = vmax.f32 %v575_v38, 0.0  ;;  %v691_v43 = vmax.f32 %v639_v39, 0.0  ;;  %v1089_v44 = vadd.f32 %v1088_v40, %v1087_v34  ;;  %v1137_v45 = vadd.f32 %v1136_v41, %v1135_v35 }
 0x118   : > { %v1090_v46 = vpop.f32.mrf.mxu0  ;;  %v1138_v47 = vpop.f32.mrf.mxu1 }
 0x119   : > { %v1018_v48 = vpack.c.bf16 %v675_v42, %v675_v42  ;;  %v1034_v49 = vpack.c.bf16 %v691_v43, %v691_v43  ;;  %v580_v51 = vadd.f32 %v1089_v44, %v1368_v50  ;;  %v644_v52 = vadd.f32 %v1137_v45, %v1368_v50 }
 0x11a   : > { %v1091_v53 = vpop.f32.mrf.mxu0  ;;  %v1139_v54 = vpop.f32.mrf.mxu1 }
 0x11b   : > { %836 = vst.msk [vmem:[%s1376_s4 + $0x24] sm:$0xf] %vm826_vm0, %v1018_v48  ;;  %852 = vst.msk [vmem:[%s1376_s4 + $0x64] sm:$0xf] %vm826_vm0, %v1034_v49  ;;  %v676_v55 = vmax.f32 %v580_v51, 0.0  ;;  %v692_v56 = vmax.f32 %v644_v52, 0.0  ;;  %v1092_v57 = vadd.f32 %v1091_v53, %v1090_v46  ;;  %v1140_v58 = vadd.f32 %v1139_v54, %v1138_v47 }
 0x11c   : > { %v1093_v59 = vpop.f32.mrf.mxu0  ;;  %v1141_v60 = vpop.f32.mrf.mxu1 }
 0x11d   : > { %v1019_v61 = vpack.c.bf16 %v676_v55, %v676_v55  ;;  %v1035_v62 = vpack.c.bf16 %v692_v56, %v692_v56  ;;  %v583_v63 = vadd.f32 %v1092_v57, %v1368_v50  ;;  %v647_v0 = vadd.f32 %v1140_v58, %v1368_v50 }
 0x11e   : > { %v1094_v1 = vpop.f32.mrf.mxu0  ;;  %v1142_v2 = vpop.f32.mrf.mxu1 }
 0x11f   : > { %837 = vst.msk [vmem:[%s1376_s4 + $0x28] sm:$0xf] %vm826_vm0, %v1019_v61  ;;  %853 = vst.msk [vmem:[%s1376_s4 + $0x68] sm:$0xf] %vm826_vm0, %v1035_v62  ;;  %v677_v3 = vmax.f32 %v583_v63, 0.0  ;;  %v693_v4 = vmax.f32 %v647_v0, 0.0  ;;  %v1095_v5 = vadd.f32 %v1094_v1, %v1093_v59  ;;  %v1143_v6 = vadd.f32 %v1142_v2, %v1141_v60 }
 0x120   : > { %v1096_v7 = vpop.f32.mrf.mxu0  ;;  %v1144_v8 = vpop.f32.mrf.mxu1 }
 0x121   : > { %v1020_v9 = vpack.c.bf16 %v677_v3, %v677_v3  ;;  %v1036_v10 = vpack.c.bf16 %v693_v4, %v693_v4  ;;  %v588_v11 = vadd.f32 %v1095_v5, %v1368_v50  ;;  %v652_v12 = vadd.f32 %v1143_v6, %v1368_v50 }
 0x122   : > { %v1097_v13 = vpop.f32.mrf.mxu0  ;;  %v1145_v14 = vpop.f32.mrf.mxu1 }
 0x123   : > { %838 = vst.msk [vmem:[%s1376_s4 + $0x2c] sm:$0xf] %vm826_vm0, %v1020_v9  ;;  %854 = vst.msk [vmem:[%s1376_s4 + $0x6c] sm:$0xf] %vm826_vm0, %v1036_v10  ;;  %v678_v15 = vmax.f32 %v588_v11, 0.0  ;;  %v694_v16 = vmax.f32 %v652_v12, 0.0  ;;  %v1098_v17 = vadd.f32 %v1097_v13, %v1096_v7  ;;  %v1146_v18 = vadd.f32 %v1145_v14, %v1144_v8 }
 0x124   : > { %v1099_v19 = vpop.f32.mrf.mxu0  ;;  %v1147_v20 = vpop.f32.mrf.mxu1 }
 0x125   : > { %v1021_v21 = vpack.c.bf16 %v678_v15, %v678_v15  ;;  %v1037_v22 = vpack.c.bf16 %v694_v16, %v694_v16  ;;  %v591_v23 = vadd.f32 %v1098_v17, %v1368_v50  ;;  %v655_v24 = vadd.f32 %v1146_v18, %v1368_v50 }
 0x126   : > { %v1100_v25 = vpop.f32.mrf.mxu0  ;;  %v1148_v26 = vpop.f32.mrf.mxu1 }
 0x127   : > { %839 = vst.msk [vmem:[%s1376_s4 + $0x30] sm:$0xf] %vm826_vm0, %v1021_v21  ;;  %855 = vst.msk [vmem:[%s1376_s4 + $0x70] sm:$0xf] %vm826_vm0, %v1037_v22  ;;  %v679_v27 = vmax.f32 %v591_v23, 0.0  ;;  %v695_v28 = vmax.f32 %v655_v24, 0.0  ;;  %v1101_v29 = vadd.f32 %v1100_v25, %v1099_v19  ;;  %v1149_v30 = vadd.f32 %v1148_v26, %v1147_v20 }
 0x128   : > { %v1102_v31 = vpop.f32.mrf.mxu0  ;;  %v1150_v32 = vpop.f32.mrf.mxu1 }
 0x129   : > { %v1022_v33 = vpack.c.bf16 %v679_v27, %v679_v27  ;;  %v1038_v34 = vpack.c.bf16 %v695_v28, %v695_v28  ;;  %v596_v35 = vadd.f32 %v1101_v29, %v1368_v50  ;;  %v660_v36 = vadd.f32 %v1149_v30, %v1368_v50 }
 0x12a   : > { %v1103_v37 = vpop.f32.mrf.mxu0  ;;  %v1151_v38 = vpop.f32.mrf.mxu1 }
 0x12b   : > { %840 = vst.msk [vmem:[%s1376_s4 + $0x34] sm:$0xf] %vm826_vm0, %v1022_v33  ;;  %856 = vst.msk [vmem:[%s1376_s4 + $0x74] sm:$0xf] %vm826_vm0, %v1038_v34  ;;  %v680_v39 = vmax.f32 %v596_v35, 0.0  ;;  %v696_v40 = vmax.f32 %v660_v36, 0.0  ;;  %v1104_v41 = vadd.f32 %v1103_v37, %v1102_v31  ;;  %v1152_v42 = vadd.f32 %v1151_v38, %v1150_v32 }
 0x12d   : > { %v1023_v43 = vpack.c.bf16 %v680_v39, %v680_v39  ;;  %v1039_v44 = vpack.c.bf16 %v696_v40, %v696_v40  ;;  %v599_v45 = vadd.f32 %v1104_v41, %v1368_v50  ;;  %v663_v46 = vadd.f32 %v1152_v42, %v1368_v50 }
 0x12f   : > { %841 = vst.msk [vmem:[%s1376_s4 + $0x38] sm:$0xf] %vm826_vm0, %v1023_v43  ;;  %857 = vst.msk [vmem:[%s1376_s4 + $0x78] sm:$0xf] %vm826_vm0, %v1039_v44  ;;  %v681_v47 = vmax.f32 %v599_v45, 0.0  ;;  %v697_v48 = vmax.f32 %v663_v46, 0.0 }
 0x131   : > { %v1024_v49 = vpack.c.bf16 %v681_v47, %v681_v47  ;;  %v1040_v51 = vpack.c.bf16 %v697_v48, %v697_v48 }
 0x133   : > { %842 = vst.msk [vmem:[%s1376_s4 + $0x3c] sm:$0xf] %vm826_vm0, %v1024_v49  ;;  %858 = vst.msk [vmem:[%s1376_s4 + $0x7c] sm:$0xf] %vm826_vm0, %v1040_v51 }
 0x134 PF: > { %s13_s12 = sadd.s32 1, %s1247_s12  }
 0x135   : > { %p10_p4 = scmp.ge.s32.totalorder %s13_s12, 4  }
 0x137   :  { %12 = sbr.rel (!%p10_p4) target bundleno = 1 (0x1), region = 62 }

// kernel: resnet_feature_extractor_forward.3
= control target key start
LH: loop header
LB: loop body
LE: loop exit
PB: predicated region body
PF: predicated region fallthrough
CT: control target
= control target key end

     0   :  { %s9909_s0 = inlined_call_operand.vmem [shape: bf16[2,64,64], index: 0, kind: input, shape index: {}]   ;;  %s9910_s1 = inlined_call_operand.vmem [shape: bf16[64,320], index: 1, kind: input, shape index: {}]   ;;  %s9911_s2 = inlined_call_operand.vmem [shape: f32[1,320], index: 2, kind: input, shape index: {}]   ;;  %s9912_s3 = inlined_call_operand.vmem [shape: bf16[9,64,64], index: 3, kind: input, shape index: {}]   ;;  %s9913_s4 = inlined_call_operand.vmem [shape: f32[1,64], index: 4, kind: input, shape index: {}]   ;;  %s9914_s5 = inlined_call_operand.vmem [shape: bf16[64,256], index: 5, kind: input, shape index: {}]   ;;  %s9915_s6 = inlined_call_operand.vmem [shape: f32[1,256], index: 6, kind: input, shape index: {}]   ;;  %s9916_s7 = inlined_call_operand.vmem [shape: bf16[2,256,64], index: 7, kind: input, shape index: {}]   ;;  %s9917_s8 = inlined_call_operand.vmem [shape: f32[2,1,64], index: 8, kind: input, shape index: {}]   ;;  %s9918_s9 = inlined_call_operand.vmem [shape: bf16[18,64,64], index: 9, kind: input, shape index: {}]   ;;  %s9919_s10 = inlined_call_operand.vmem [shape: f32[2,1,64], index: 10, kind: input, shape index: {}]   ;;  %s9920_s11 = inlined_call_operand.vmem [shape: bf16[2,64,256], index: 11, kind: input, shape index: {}]   ;;  %s9921_s12 = inlined_call_operand.vmem [shape: f32[2,1,256], index: 12, kind: input, shape index: {}]   ;;  %s9922_s13 = inlined_call_operand.hbm [shape: f32[2,1,256], index: 13, kind: output, shape index: {}]  }
   0x1   :  { %10279 = sst [smem:[#allocation97_spill]] %s9909_s0 }
   0x2   :  { %18 = vsyncpa [#allocation4], 0 }
   0x3   :  { %20 = vsyncpa [#allocation4 + $0x1], 0  ;;  %s7380_s25 = smov 0   ;;  %s7382_s26 = smov 0  }
   0x4   :  { %s7384_s27 = smov 0   ;;  %s7386_s28 = smov 0  }
   0x5 LB: > { %10280 = sst [smem:[#allocation6_spill]] %s7300_s27  ;;  %s7401_s29 = sadd.s32 4294967295, %s7304_s28   ;;  %s7304_s28 = sphi %s7386_s28, %s11020_s28   ;;  %s7300_s27 = sphi %s7384_s27, %s11022_s27   ;;  %s7296_s26 = sphi %s7382_s26, %s11024_s26   ;;  %s7292_s25 = sphi %s7380_s25, %s11023_s25  }
   0x6   : > { %s5675_s30 = sadd.s32 4294967294, %s7304_s28   ;;  %s7405_s14 = sadd.s32 1, %s7304_s28  }
   0x7   : > { %10281 = sst [smem:[#allocation7_spill]] %s7405_s14  ;;  %s311_s15 = sadd.s32 1, %s7300_s27 }
   0x8   : > { %s308_s16 = ssub.s32 %s7304_s28, %s7405_s14  ;;  %p321_p0 = scmp.ne.s32.totalorder %s7300_s27, %s7296_s26 }
   0x9   : > { %p309_p1 = scmp.eq.s32.totalorder %s308_s16, 0  ;;  %p322_p2 = scmp.eq.s32.totalorder %s7401_s29, 1 }
   0xa   : > { %p327_p3 = scmp.ne.s32.totalorder %s7296_s26, %s7292_s25  ;;  %p328_p4 = scmp.eq.s32.totalorder %s5675_s30, 1 }
   0xb   : > { %s7416_s17 = scalar_select %p309_p1, %s7300_s27, %s311_s15  }
   0xc   : > { %p7418_p5 = por %p322_p2, %p321_p0  ;;  %p7422_p6 = por %p328_p4, %p327_p3 }
   0xd   : > { %10282 = sst [smem:[#allocation8_spill]] %s7416_s17  ;;  %p5678_p7 = scmp.ge.s32.totalorder %s7304_s28, 1 }
   0xe   : > { %p390_p8 = scmp.lt.s32.totalorder %s7304_s28, 3 }
  0x10   : > { %p391_p9 = pnand %p5678_p7, %p390_p8 }
  0x12   : > { %394 = sbr.rel (%p391_p9) target bundleno = 2233 (0x8b9), region = 72 }
  0x17   : > { %v7047_v0 = vld [vmem:[%s9910_s1 + $0x4c] ss:$12 sps:$4 sm:$0xff]   ;;  %p434_p10 = scmp.lt.s32.totalorder %s7401_s29, 1  ;;  %v7049_v1 = vld [vmem:[%s9910_s1 + $0x48] ss:$12 sps:$4 sm:$0xff]   ;;  %v9938_v2 = vmov 0   ;;  %v9937_v30 = vlaneseq }
  0x18   : > { %667 = vmatprep.mubr.bf16.mxu1 %v9938_v2  ;;  %647 = vmatprep.mubr.bf16.mxu0 %v9938_v2  ;;  %v7050_v3 = vld [vmem:[%s9910_s1 + $0x34] ss:$12 sps:$4 sm:$0xff]   ;;  %v7052_v4 = vld [vmem:[%s9910_s1 + $0x30] ss:$12 sps:$4 sm:$0xff]   ;;  %s10285_s0 = sld [smem:[#allocation97_spill]]  ;;  %vm9926_vm0 = vcmask 523264  }
  0x19   : > { %6997 = vmatprep.subr.bf16.mxu1 %v7047_v0  ;;  %s435_s15 = scalar_select %p434_p10, %s7401_s29, 1  ;;  %623 = vmatprep.subr.bf16.mxu0 %v7047_v0  ;;  %v7053_v5 = vld [vmem:[%s9910_s1 + $0x1c] ss:$12 sps:$4 sm:$0xff]   ;;  %v7055_v6 = vld [vmem:[%s9910_s1 + $0x18] ss:$12 sps:$4 sm:$0xff]   ;;  %v7307_v17 = vmov 0.0  }
  0x1a   : > { %7001 = vmatpush1.bf16.msra.mxu1 %v7049_v1  ;;  %624 = vmatpush1.bf16.msra.mxu0 %v7049_v1  ;;  %v7056_v7 = vld [vmem:[%s9910_s1 + $0x4] ss:$12 sps:$4 sm:$0xff]   ;;  %v7058_v8 = vld [vmem:[%s9910_s1] ss:$12 sps:$4 sm:$0xff]   ;;  %v7064_v15 = vld [vmem:[%s9910_s1 + $0x8] ss:$12 sps:$4 sm:$0xff]  }
  0x1b   : > { %6998 = vmatprep.subr.bf16.mxu1 %v7050_v3  ;;  %s6243_s23 = sshll.u32 %s435_s15, 5  ;;  %625 = vmatprep.subr.bf16.mxu0 %v7050_v3  ;;  %v7060_v9 = vld [vmem:[%s9910_s1 + $0x50] ss:$12 sps:$4 sm:$0xff]   ;;  %v7061_v11 = vld [vmem:[%s9910_s1 + $0x38] ss:$12 sps:$4 sm:$0xff]   ;;  %470 = vst.msk [vmem:[#allocation2 + $0x20] sm:$0xff] %vm9926_vm0, %v7307_v17 }
  0x1c   : > { %v7063_v13 = vld [vmem:[%s9910_s1 + $0x20] ss:$12 sps:$4 sm:$0xff]   ;;  %466 = vst.msk [vmem:[#allocation2] sm:$0xff] %vm9926_vm0, %v7307_v17  ;;  %467 = vst.msk [vmem:[#allocation2 + $0x8] sm:$0xff] %vm9926_vm0, %v7307_v17  ;;  %v7067_v18 = vld [vmem:[%s9912_s3 + $0x38] sm:$0xff]   ;;  %v7538_v33 = vshrl.u32 %v9937_v30, 7 }
  0x1d   : > { %468 = vst.msk [vmem:[#allocation2 + $0x10] sm:$0xff] %vm9926_vm0, %v7307_v17  ;;  %469 = vst.msk [vmem:[#allocation2 + $0x18] sm:$0xff] %vm9926_vm0, %v7307_v17  ;;  %v7068_v19 = vld [vmem:[%s9912_s3 + $0x18] sm:$0xff]   ;;  %v7069_v20 = vld [vmem:[%s9912_s3 + $0x30] sm:$0xff]   ;;  %v10295_v57 = vmov 0  ;;  %v10298_v58 = vmov 0 }
  0x1e   : > { %s438_s24 = scalar_lea.vmem %s10285_s0, %s6243_s23  ;;  %7002 = vmatpush1.bf16.msra.mxu1 %v7052_v4  ;;  %626 = vmatpush1.bf16.msra.mxu0 %v7052_v4  ;;  %471 = vst.msk [vmem:[#allocation2 + $0x28] sm:$0xff] %vm9926_vm0, %v7307_v17  ;;  %472 = vst.msk [vmem:[#allocation2 + $0x30] sm:$0xff] %vm9926_vm0, %v7307_v17  ;;  %v7070_v21 = vld [vmem:[%s9912_s3 + $0x10] sm:$0xff]   ;;  %v7071_v22 = vld [vmem:[%s9912_s3 + $0x28] sm:$0xff]   ;;  %v514_v35 = vsub.s32 2, %v7538_v33  ;;  %v7555_v42 = vadd.s32 8, %v7538_v33 }
  0x1f   : > { %6999 = vmatprep.subr.bf16.mxu1 %v7053_v5  ;;  %627 = vmatprep.subr.bf16.mxu0 %v7053_v5  ;;  %v7059_v10 = vld [vmem:[%s438_s24 + $0x10] sm:$0xff]   ;;  %v7065_v12 = vld [vmem:[%s438_s24] sm:$0xff]   ;;  %v7062_v14 = vld [vmem:[%s438_s24 + $0x18] sm:$0xff]   ;;  %473 = vst.msk [vmem:[#allocation2 + $0x38] sm:$0xff] %vm9926_vm0, %v7307_v17  ;;  %v9946_v45 = vshra.s32 %v7538_v33, 3  ;;  %v457_v46 = vand.u32 7, %v7538_v33 }
  0x20   : > { %v7066_v16 = vld [vmem:[%s438_s24 + $0x8] sm:$0xff]   ;;  %474 = vst.msk [vmem:[#allocation2 + $0x40] sm:$0xff] %vm9926_vm0, %v7307_v17  ;;  %475 = vst.msk [vmem:[#allocation2 + $0x48] sm:$0xff] %vm9926_vm0, %v7307_v17  ;;  %v7073_v24 = vld [vmem:[%s9912_s3 + $0x20] sm:$0xff]   ;;  %v7562_v49 = vadd.s32 24, %v7538_v33  ;;  %v9945_v51 = vshra.s32 %v7555_v42, 3 }
  0x21   : > { %476 = vst.msk [vmem:[#allocation2 + $0x50] sm:$0xff] %vm9926_vm0, %v7307_v17  ;;  %477 = vst.msk [vmem:[#allocation2 + $0x58] sm:$0xff] %vm9926_vm0, %v7307_v17  ;;  %v7072_v23 = vld [vmem:[%s9912_s3 + $0x8] sm:$0xff]   ;;  %v7074_v25 = vld [vmem:[%s9912_s3] sm:$0xff]   ;;  %v458_v52 = vand.u32 7, %v7555_v42  ;;  %v7569_v55 = vadd.s32 16, %v7538_v33 }
  0x22   : > { %7003 = vmatpush1.bf16.msra.mxu1 %v7055_v6  ;;  %628 = vmatpush1.bf16.msra.mxu0 %v7055_v6  ;;  %v7520_v26 = vld [vmem:[%s9912_s3 + $0x58] sm:$0xff]   ;;  %10290 = vst [vmem:[#allocation13_spill] sm:$0xff] %v7538_v33  ;;  %v502_v37 = vld [vmem:[%s9911_s2] sm:$0x7]  ;;  %vm7573_vm1 = vcmp.ge.s32.totalorder %v9946_v45, 1  ;;  %vm7579_vm2 = vcmp.ge.s32.totalorder %v457_v46, 1 }
  0x23   : > { %7000 = vmatprep.subr.bf16.mxu1 %v7056_v7  ;;  %629 = vmatprep.subr.bf16.mxu0 %v7056_v7  ;;  %v7525_v27 = vld [vmem:[%s9912_s3 + $0x78] sm:$0xff]   ;;  %v7550_v39 = vrot.slane %v502_v37, %v514_v35  ;;  %v10296_v57 = vsel %vm7573_vm1, 4294967295, %v10295_v57  ;;  %v10299_v58 = vsel %vm7579_vm2, 4294967295, %v10298_v58  ;;  %v7584_v59 = vadd.s32 32, %v7538_v33  ;;  %v822_v3 = vld [vmem:[#allocation2 + $0x8] sm:$0xff]  ;;  %vm7610_vm5 = vmand %vm7573_vm1, %vm7579_vm2  ;;  %s431_s23 = sand.u32 1, %s7296_s26  }
  0x24   : > { %10297 = vst [vmem:[#allocation18_spill] sm:$0xff] %v10296_v57  ;;  %10300 = vst [vmem:[#allocation19_spill] sm:$0xff] %v10299_v58  ;;  %v7587_v60 = vadd.s32 40, %v7538_v33  ;;  %v9944_v63 = vshra.s32 %v7562_v49, 3  ;;  %vm7594_vm3 = vcmp.ge.s32.totalorder %v9945_v51, 1  ;;  %v10301_v1 = vmov 0 }
  0x25   : > { %v10302_v1 = vsel %vm7594_vm3, 4294967295, %v10301_v1  ;;  %vm7600_vm4 = vcmp.ge.s32.totalorder %v458_v52, 1  ;;  %v10304_v4 = vmov 0  ;;  %v770_v7 = vld [vmem:[#allocation2 + $0x7] sm:$0xff]  ;;  %v10356_v51 = vmov 0  ;;  %s5679_s30 = sshll.u32 %s431_s23, 1 }
  0x26   : > { %7004 = vmatpush1.bf16.msra.mxu1 %v7058_v8  ;;  %630 = vmatpush1.bf16.msra.mxu0 %v7058_v8  ;;  %10303 = vst [vmem:[#allocation20_spill] sm:$0xff] %v10302_v1  ;;  %v10305_v4 = vsel %vm7600_vm4, 4294967295, %v10304_v4  ;;  %v10307_v8 = vmov 0  ;;  %vm7626_vm6 = vcmp.ge.s32.totalorder %v9944_v63, 1  ;;  %vm7634_vm7 = vmand %vm7594_vm3, %vm7600_vm4  ;;  %v7078_v63 = vld [vmem:[%s9912_s3 + $0x70] sm:$0xff]   ;;  %v10359_v45 = vmov 0 }
  0x27   : > { %6549 = vmatprep.subr.bf16.mxu1 %v7060_v9  ;;  %6581 = vmatprep.subr.bf16.mxu0 %v7068_v19  ;;  %10306 = vst [vmem:[#allocation21_spill] sm:$0xff] %v10305_v4  ;;  %v10308_v8 = vsel %vm7610_vm5, 4294967295, %v10307_v8  ;;  %s6244_s16 = sshll.u32 %s7401_s29, 5  ;;  %s433_s20 = scalar_lea.vmem [#allocation3], %s5679_s30 }
  0x28   : > { %10309 = vst [vmem:[#allocation22_spill] sm:$0xff] %v10308_v8  ;;  %s5616_s24 = sshll.u32 %s433_s20, 4  ;;  %s5614_s27 = scalar_lea.hbm %s9922_s13, %s6244_s16  ;;  %s5617_s24 = int_to_ptr.vmem [resolvable:$true] %s5616_s24 }
  0x29   : > { %5700 = vmatmul.mubr.msk.bf16.vlgmr.msra.gmra.mxu1 %vm9926_vm0, %v7059_v10  ;;  %5698 = vmatmul.mubr.msk.bf16.vlgmr.msra.gmra.mxu0 %vm9926_vm0, %v7065_v12  ;;  %s5602_s17 = scalar_lea.sflag [#allocation4], %s431_s23  ;;  %s7244_s14 = scalar_lea.vmem %s5617_s24, 32 }
  0x2a   : > { %6550 = vmatpush3.bf16.msra.mxu1 %v7060_v9  ;;  %677 = vmatprep.mubr.bf16.mxu1 %v9938_v2  ;;  %v9965_v9 = vand.u32 7, %v7569_v55  ;;  %p7245_p11 = scmp.ne.s32.totalorder %s5617_s24, %s7244_s14  ;;  %s7309_s22 = smov [#allocation3]  }
  0x2b   : > { %6551 = vmatprep.subr.bf16.mxu1 %v7061_v11  ;;  %657 = vmatprep.mubr.bf16.mxu0 %v9938_v2  ;;  %v7077_v2 = vld [vmem:[%s9912_s3 + $0x50] sm:$0xff]   ;;  %s7248_s29 = sshll.u32 %s7309_s22, 4  ;;  %s7249_s29 = int_to_ptr.vmem [resolvable:$false] %s7248_s29 }
  0x2c   : > { %6582 = vmatpush3.bf16.msra.mxu0 %v7068_v19  ;;  %v10310_v19 = vmov 0  ;;  %vm7654_vm9 = vcmp.ge.s32.totalorder %v9965_v9, 1  ;;  %v7079_v9 = vld [vmem:[%s9912_s3 + $0x48] sm:$0xff]   ;;  %p7246_p12 = pnand %p7245_p11, %p7418_p5  ;;  %s7250_s30 = scalar_lea.vmem %s7249_s29, 64 }
  0x2d   : > { %6583 = vmatprep.subr.bf16.mxu0 %v7070_v21  ;;  %v10311_v19 = vsel %vm7626_vm6, 4294967295, %v10310_v19  ;;  %p7251_p0 = scmp.lt.s32.totalorder %s5617_s24, %s7249_s29  ;;  %p7252_p1 = scmp.lt.s32.totalorder %s7250_s30, %s7244_s14 }
  0x2e   : > { %6552 = vmatpush3.bf16.msra.mxu1 %v7061_v11  ;;  %10312 = vst [vmem:[#allocation23_spill] sm:$0xff] %v10311_v19  ;;  %p7247_p13 = pneg %p7246_p12 }
  0x2f   : > { %6553 = vmatprep.subr.bf16.mxu1 %v7063_v13  ;;  %p7253_p2 = por %p7252_p1, %p7251_p0 }
  0x30   : > { %6584 = vmatpush3.bf16.msra.mxu0 %v7070_v21  ;;  %v10313_v21 = vmov 0 }
  0x31   : > { %5701 = vmatmul.mubr.msk.bf16.gmra.mxu1 %vm9926_vm0, %v7062_v14  ;;  %5699 = vmatmul.mubr.msk.bf16.gmra.mxu0 %vm9926_vm0, %v7066_v16  ;;  %v10314_v21 = vsel %vm7634_vm7, 4294967295, %v10313_v21  ;;  %p7254_p3 = pnand %p7253_p2, %p7247_p13 }
  0x32   : > { %6554 = vmatpush3.bf16.msra.mxu1 %v7063_v13  ;;  %6557 = vmatprep.mubr.msk.bf16.mxu1 %vm9926_vm0, %v7065_v12  ;;  %v9942_v12 = vshra.s32 %v7569_v55, 3  ;;  %v9943_v13 = vshra.s32 %v7584_v59, 3  ;;  %10315 = vst [vmem:[#allocation24_spill] sm:$0xff] %v10314_v21  ;;  %v10387_v21 = vand.u32 7, %v7569_v55 }
  0x33   : > { %6555 = vmatprep.subr.bf16.mxu1 %v7064_v15  ;;  %6585 = vmatprep.subr.bf16.mxu0 %v7072_v23 }
  0x34   : > { %6586 = vmatpush3.bf16.msra.mxu0 %v7072_v23  ;;  %vm7642_vm8 = vcmp.ge.s32.totalorder %v9942_v12, 1  ;;  %v10316_v23 = vmov 0  ;;  %vm7670_vm11 = vcmp.ge.s32.totalorder %v9943_v13, 1 }
  0x35   : > { %6587 = vmatprep.subr.bf16.mxu0 %v7074_v25  ;;  %v10317_v23 = vsel %vm7642_vm8, 4294967295, %v10316_v23  ;;  %vm7701_vm14 = vmand %vm7642_vm8, %vm7654_vm9 }
  0x36   : > { %6556 = vmatpush3.bf16.msra.mxu1 %v7064_v15  ;;  %v9963_v15 = vand.u32 7, %v7584_v59  ;;  %10318 = vst [vmem:[#allocation25_spill] sm:$0xff] %v10317_v23 }
  0x37   : > { %6565 = vmatprep.subr.bf16.mxu1 %v7067_v18 }
  0x38   : > { %6588 = vmatpush3.bf16.msra.mxu0 %v7074_v25  ;;  %v7648_v25 = vadd.s32 48, %v7538_v33  ;;  %vm7682_vm13 = vcmp.ge.s32.totalorder %v9963_v15, 1 }
  0x39   : > { %6558 = vmatmul.mubr.msk.bf16.vlgmr.msra.gmra.mxu1 %vm9926_vm0, %v7066_v16  ;;  %6613 = vmatprep.subr.bf16.mxu0 %v7525_v27 }
  0x3a   : > { %6561 = vmatprep.mubr.msk.bf16.mxu1 %vm9926_vm0, %v7059_v10  ;;  %6566 = vmatpush3.bf16.msra.mxu1 %v7067_v18  ;;  %v9964_v10 = vand.u32 7, %v7562_v49  ;;  %v830_v18 = vsel %vm7573_vm1, %v822_v3, 0.0 }
  0x3b   : > { %6567 = vmatprep.subr.bf16.mxu1 %v7069_v20 }
  0x3c   : > { %vm7660_vm10 = vcmp.ge.s32.totalorder %v9964_v10, 1 }
  0x3d   : > { %vm7711_vm15 = vmand %vm7626_vm6, %vm7660_vm10 }
  0x3e   : > { %6568 = vmatpush3.bf16.msra.mxu1 %v7069_v20 }
  0x3f   : > { %6569 = vmatprep.subr.bf16.mxu1 %v7071_v22 }
  0x41   : > { %6562 = vmatmul.mubr.msk.bf16.gmra.mxu1 %vm9926_vm0, %v7062_v14  ;;  %v9941_v14 = vshra.s32 %v7587_v60, 3 }
  0x42   : > { %6570 = vmatpush3.bf16.msra.mxu1 %v7071_v22  ;;  %v802_v22 = vsel %vm7610_vm5, %v770_v7, 0.0  ;;  %vm7727_vm5 = vmand %vm7670_vm11, %vm7682_vm13 }
  0x43   : > { %6571 = vmatprep.subr.bf16.mxu1 %v7073_v24  ;;  %vm7676_vm12 = vcmp.ge.s32.totalorder %v9941_v14, 1 }
  0x46   : > { %6572 = vmatpush3.bf16.msra.mxu1 %v7073_v24  ;;  %v9962_v24 = vand.u32 7, %v7587_v60 }
  0x47   : > { %6597 = vmatprep.subr.bf16.mxu1 %v7520_v26 }
  0xe9   : > { %v7529_v28 = vpop.f32.mrf.mxu1 }
  0xea   : > { %10286 = vst [vmem:[#allocation9_spill] sm:$0xff] %v7529_v28 }
  0xeb   : > { %v7531_v29 = vpop.f32.mrf.mxu1 }
  0xec   : > { %10287 = vst [vmem:[#allocation10_spill] sm:$0xff] %v7531_v29 }
  0xed   : > { %v7533_v31 = vpop.f32.mrf.mxu1 }
  0xee   : > { %10288 = vst [vmem:[#allocation11_spill] sm:$0xff] %v7533_v31 }
  0xef   : > { %v7535_v32 = vpop.f32.mrf.mxu1 }
  0xf0   : > { %10289 = vst [vmem:[#allocation12_spill] sm:$0xff] %v7535_v32 }
  0xf1   : > { %v7540_v34 = vpop.f32.mrf.mxu1 }
  0xf2   : > { %10291 = vst [vmem:[#allocation14_spill] sm:$0xff] %v7540_v34 }
  0xf3   : > { %v7543_v36 = vpop.f32.mrf.mxu1 }
  0xf4   : > { %10292 = vst [vmem:[#allocation15_spill] sm:$0xff] %v7543_v36 }
  0xf5   : > { %v7548_v38 = vpop.f32.mrf.mxu1 }
  0xf6   : > { %10293 = vst [vmem:[#allocation16_spill] sm:$0xff] %v7548_v38 }
  0xf7   : > { %v7552_v40 = vpop.f32.mrf.mxu1 }
  0xf8   : > { %10294 = vst [vmem:[#allocation17_spill] sm:$0xff] %v7552_v40 }
  0xf9   : > { %v6559_v41 = vpop.f32.mrf.mxu1 }
  0xfa   : > { %v731_v43 = vadd.f32 %v6559_v41, %v7550_v39  ;;  %v10319_v41 = vmov 0 }
  0xfb   : > { %v722_v44 = vpop.f32.mrf.mxu1  ;;  %v10320_v41 = vsel %vm7654_vm9, 4294967295, %v10319_v41 }
  0xfc   : > { %v755_v47 = vmax.f32 %v731_v43, 0.0  ;;  %v723_v48 = vadd.f32 %v722_v44, %v7550_v39  ;;  %10321 = vst [vmem:[#allocation26_spill] sm:$0xff] %v10320_v41  ;;  %v10322_v43 = vmov 0 }
  0xfd   : > { %v6560_v50 = vpop.f32.mrf.mxu1  ;;  %v10323_v43 = vsel %vm7660_vm10, 4294967295, %v10322_v43 }
  0xfe   : > { %764 = vst.msk [vmem:[#allocation2 + $0x20] sm:$0xff] %vm9926_vm0, %v755_v47  ;;  %v753_v53 = vmax.f32 %v723_v48, 0.0  ;;  %v734_v54 = vadd.f32 %v6560_v50, %v7550_v39  ;;  %10324 = vst [vmem:[#allocation27_spill] sm:$0xff] %v10323_v43  ;;  %v10325_v50 = vmov 0 }
  0xff   : > { %v725_v56 = vpop.f32.mrf.mxu1  ;;  %v10326_v50 = vsel %vm7670_vm11, 4294967295, %v10325_v50 }
 0x100   : > { %762 = vst.msk [vmem:[#allocation2 + $0x10] sm:$0xff] %vm9926_vm0, %v753_v53  ;;  %v756_v61 = vmax.f32 %v734_v54, 0.0  ;;  %v726_v62 = vadd.f32 %v725_v56, %v7550_v39  ;;  %10327 = vst [vmem:[#allocation28_spill] sm:$0xff] %v10326_v50  ;;  %v10328_v53 = vmov 0  ;;  %v10331_v54 = vmov 0 }
 0x101   : > { %v6563_v0 = vpop.f32.mrf.mxu1  ;;  %v10329_v53 = vsel %vm7676_vm12, 4294967295, %v10328_v53  ;;  %v10332_v54 = vsel %vm7682_vm13, 4294967295, %v10331_v54  ;;  %v7687_v56 = vadd.s32 56, %v7538_v33 }
 0x102   : > { %765 = vst.msk [vmem:[#allocation2 + $0x28] sm:$0xff] %vm9926_vm0, %v756_v61  ;;  %v754_v5 = vmax.f32 %v726_v62, 0.0  ;;  %v747_v6 = vadd.f32 %v6563_v0, %v7550_v39  ;;  %10330 = vst [vmem:[#allocation29_spill] sm:$0xff] %v10329_v53 }
 0x103   : > { %v738_v11 = vpop.f32.mrf.mxu1  ;;  %10333 = vst [vmem:[#allocation30_spill] sm:$0xff] %v10332_v54 }
 0x104   : > { %763 = vst.msk [vmem:[#allocation2 + $0x18] sm:$0xff] %vm9926_vm0, %v754_v5  ;;  %v759_v16 = vmax.f32 %v747_v6, 0.0  ;;  %v739_v17 = vadd.f32 %v738_v11, %v7550_v39  ;;  %v10334_v5 = vmov 0 }
 0x105   : > { %v6564_v20 = vpop.f32.mrf.mxu1  ;;  %v10335_v5 = vsel %vm7701_vm14, 4294967295, %v10334_v5  ;;  %v7705_v11 = vld [vmem:[#allocation2 + $0x20] sm:$0xff] }
 0x106   : > { %768 = vst.msk [vmem:[#allocation2 + $0x40] sm:$0xff] %vm9926_vm0, %v759_v16  ;;  %v757_v35 = vmax.f32 %v739_v17, 0.0  ;;  %v750_v37 = vadd.f32 %v6564_v20, %v7550_v39  ;;  %10336 = vst [vmem:[#allocation31_spill] sm:$0xff] %v10335_v5  ;;  %v10340_v16 = vmov 0  ;;  %v9940_v17 = vshra.s32 %v7648_v25, 3 }
 0x107   : > { %v741_v44 = vpop.f32.mrf.mxu1  ;;  %v7664_v47 = vld [vmem:[#allocation2 + $0x10] sm:$0xff]  ;;  %v10344_v20 = vmov 0 }
 0x108   : > { %v7666_v48 = vld [vmem:[#allocation2 + $0xf] sm:$0xff]  ;;  %766 = vst.msk [vmem:[#allocation2 + $0x30] sm:$0xff] %vm9926_vm0, %v757_v35  ;;  %v760_v61 = vmax.f32 %v750_v37, 0.0  ;;  %v742_v62 = vadd.f32 %v741_v44, %v7550_v39  ;;  %v831_v0 = vsel %vm7594_vm3, %v7664_v47, 0.0  ;;  %v10337_v39 = vmov 0 }
 0x109   : > { %v803_v3 = vsel %vm7634_vm7, %v7666_v48, 0.0  ;;  %v838_v6 = vpack.c.bf16 %v831_v0, %v830_v18  ;;  %v10338_v39 = vsel %vm7711_vm15, 4294967295, %v10337_v39  ;;  %vm7717_vm0 = vcmp.ge.s32.totalorder %v9962_v24, 1  ;;  %v7772_v12 = vld [vmem:[#allocation2 + $0x28] sm:$0xff] }
 0x10a   : > { %v810_v7 = vpack.c.bf16 %v803_v3, %v802_v22  ;;  %10339 = vst [vmem:[#allocation32_spill] sm:$0xff] %v10338_v39  ;;  %v10341_v16 = vsel %vm7717_vm0, 4294967295, %v10340_v16  ;;  %vm10343_vm7 = vcmask 523264   ;;  %v758_v18 = vmax.f32 %v742_v62, 0.0  ;;  %v7774_v13 = vld [vmem:[#allocation2 + $0x27] sm:$0xff] }
 0x10b   : > { %10342 = vst [vmem:[#allocation33_spill] sm:$0xff] %v10341_v16  ;;  %769 = vst.msk [vmem:[#allocation2 + $0x48] sm:$0xff] %vm10343_vm7, %v760_v61  ;;  %v10345_v20 = vsel %vm7727_vm5, 4294967295, %v10344_v20  ;;  %v9959_v22 = vand.u32 7, %v7648_v25  ;;  %v7734_v35 = vld [vmem:[#allocation2 + $0x18] sm:$0xff]  ;;  %v9957_v61 = vshra.s32 %v7687_v56, 3 }
 0x10c   : > { %10346 = vst [vmem:[#allocation34_spill] sm:$0xff] %v10345_v20  ;;  %vm10347_vm10 = vmmov %vm10343_vm7  ;;  %v7736_v37 = vld [vmem:[#allocation2 + $0x17] sm:$0xff]  ;;  %v7738_v44 = vld [vmem:[#allocation2 + $0x1f] sm:$0xff]  ;;  %v10349_v62 = vmov 0  ;;  %v9958_v0 = vand.u32 7, %v7687_v56  ;;  %v832_v3 = vsel %vm7642_vm8, %v7734_v35, 0.0 }
 0x10d   : > { %6573 = vmatprep.mubr.msk.bf16.mxu1 %vm10347_vm10, %v838_v6  ;;  %vm10348_vm9 = vmmov %vm10343_vm7  ;;  %vm7743_vm7 = vcmp.ge.s32.totalorder %v9940_v17, 1  ;;  %v833_v6 = vsel %vm7626_vm6, %v7705_v11, 0.0  ;;  %v805_v30 = vsel %vm7711_vm15, %v7738_v44, 0.0  ;;  %vm7781_vm10 = vcmp.le.s32.totalorder %v458_v52, 6  ;;  %v7855_v10 = vld [vmem:[#allocation2 + $0x40] sm:$0xff]  ;;  %v7080_v20 = vld [vmem:[%s9912_s3 + $0x68] sm:$0xff]  }
 0x10e   : > { %6589 = vmatprep.mubr.msk.bf16.mxu0 %vm10348_vm9, %v810_v7  ;;  %v10350_v62 = vsel %vm7743_vm7, 4294967295, %v10349_v62  ;;  %vm10352_vm13 = vmmov %vm10348_vm9  ;;  %v804_v7 = vsel %vm7701_vm14, %v7736_v37, 0.0  ;;  %v839_v17 = vpack.c.bf16 %v833_v6, %v832_v3  ;;  %v10357_v51 = vsel %vm7781_vm10, 4294967295, %v10356_v51  ;;  %v1053_v5 = vld [vmem:[#allocation2 + $0x9] sm:$0xff] }
 0x10f   : > { %10351 = vst [vmem:[#allocation35_spill] sm:$0xff] %v10350_v62  ;;  %767 = vst.msk [vmem:[#allocation2 + $0x38] sm:$0xff] %vm10352_vm13, %v758_v18  ;;  %v10353_v18 = vmov 0  ;;  %v811_v14 = vpack.c.bf16 %v805_v30, %v804_v7  ;;  %vm7787_vm13 = vcmp.ge.s32.totalorder %v9959_v22, 1  ;;  %v10362_v30 = vmov 0  ;;  %v7801_v52 = vld [vmem:[#allocation2 + $0x30] sm:$0xff] }
 0x110   : > { %vm7765_vm9 = vmand %vm7676_vm12, %vm7717_vm0  ;;  %10358 = vst [vmem:[#allocation37_spill] sm:$0xff] %v10357_v51  ;;  %v10360_v45 = vsel %vm7787_vm13, 4294967295, %v10359_v45  ;;  %vm10365_vm15 = vcmask 523264   ;;  %v7803_v3 = vld [vmem:[#allocation2 + $0x2f] sm:$0xff]  ;;  %vm7807_vm6 = vcmp.ge.s32.totalorder %v9957_v61, 1  ;;  %v10367_v6 = vmov 0 }
 0x111   : > { %v10354_v18 = vsel %vm7765_vm9, 4294967295, %v10353_v18  ;;  %10361 = vst [vmem:[#allocation38_spill] sm:$0xff] %v10360_v45  ;;  %vm7795_vm14 = vmand %vm7594_vm3, %vm7781_vm10  ;;  %6574 = vmatmul.mubr.msk.bf16.vlgmr.msra.gmra.mxu1 %vm10365_vm15, %v839_v17  ;;  %v10368_v6 = vsel %vm7807_vm6, 4294967295, %v10367_v6  ;;  %vm7813_vm3 = vcmp.ge.s32.totalorder %v9958_v0, 1  ;;  %v10370_v7 = vmov 0 }
 0x112   : > { %10355 = vst [vmem:[#allocation36_spill] sm:$0xff] %v10354_v18  ;;  %v10363_v30 = vsel %vm7795_vm14, 4294967295, %v10362_v30  ;;  %vm10366_vm0 = vmmov %vm10365_vm15  ;;  %v10371_v7 = vsel %vm7813_vm3, 4294967295, %v10370_v7  ;;  %vm7827_vm15 = vcmp.le.s32.totalorder %v457_v46, 6  ;;  %v10376_v17 = vmov 0  ;;  %6598 = vmatpush3.bf16.msra.mxu1 %v7520_v26 }
 0x113   : > { %10364 = vst [vmem:[#allocation39_spill] sm:$0xff] %v10363_v30  ;;  %6590 = vmatmul.mubr.msk.bf16.vlgmr.msra.gmra.mxu0 %vm10366_vm0, %v811_v14  ;;  %10369 = vst [vmem:[#allocation40_spill] sm:$0xff] %v10368_v6  ;;  %v10373_v14 = vmov 0  ;;  %v10377_v17 = vsel %vm7827_vm15, 4294967295, %v10376_v17  ;;  %v834_v61 = vsel %vm7670_vm11, %v7772_v12, 0.0  ;;  %v835_v0 = vsel %vm7676_vm12, %v7801_v52, 0.0  ;;  %6599 = vmatprep.subr.bf16.mxu1 %v7077_v2 }
 0x114   : > { %10372 = vst [vmem:[#allocation41_spill] sm:$0xff] %v10371_v7  ;;  %vm7821_vm0 = vmand %vm7743_vm7, %vm7787_vm13  ;;  %6614 = vmatpush3.bf16.msra.mxu0 %v7525_v27  ;;  %v806_v22 = vsel %vm7727_vm5, %v7774_v13, 0.0  ;;  %v807_v46 = vsel %vm7765_vm9, %v7803_v3, 0.0  ;;  %v10379_v26 = vmov 0  ;;  %v7853_v27 = vld [vmem:[#allocation2 + $0x11] sm:$0xff]  ;;  %v840_v24 = vpack.c.bf16 %v835_v0, %v834_v61 }
 0x115   : > { %v10374_v14 = vsel %vm7821_vm0, 4294967295, %v10373_v14  ;;  %10378 = vst [vmem:[#allocation43_spill] sm:$0xff] %v10377_v17  ;;  %vm7849_vm10 = vmand %vm7807_vm6, %vm7813_vm3  ;;  %v812_v15 = vpack.c.bf16 %v807_v46, %v806_v22  ;;  %6615 = vmatprep.subr.bf16.mxu0 %v7078_v63  ;;  %v10382_v61 = vmov 0  ;;  %vm10385_vm9 = vcmask 523264  }
 0x116   : > { %10375 = vst [vmem:[#allocation42_spill] sm:$0xff] %v10374_v14  ;;  %v10380_v26 = vsel %vm7849_vm10, 4294967295, %v10379_v26  ;;  %vm7867_vm5 = vmand %vm7573_vm1, %vm7827_vm15  ;;  %6577 = vmatprep.mubr.msk.bf16.mxu1 %vm10385_vm9, %v840_v24  ;;  %v7873_v22 = vld [vmem:[#allocation2 + $0x38] sm:$0xff]  ;;  %v1078_v18 = vsel %vm7795_vm14, %v7853_v27, 0.0  ;;  %v1216_v39 = vsel %vm7600_vm4, %v7736_v37, 0.0  ;;  %vm7887_vm1 = vcmp.le.s32.totalorder %v10387_v21, 6  ;;  %6600 = vmatpush3.bf16.msra.mxu1 %v7077_v2 }
 0x117   : > { %10381 = vst [vmem:[#allocation44_spill] sm:$0xff] %v10380_v26  ;;  %v10383_v61 = vsel %vm7867_vm5, 4294967295, %v10382_v61  ;;  %vm10386_vm3 = vmmov %vm10385_vm9  ;;  %v7875_v0 = vld [vmem:[#allocation2 + $0x37] sm:$0xff]  ;;  %v7877_v46 = vld [vmem:[#allocation2 + $0x3f] sm:$0xff]  ;;  %v10388_v24 = vmov 0  ;;  %v837_v8 = vsel %vm7807_vm6, %v7855_v10, 0.0  ;;  %6601 = vmatprep.subr.bf16.mxu1 %v7079_v9  ;;  %vm10411_vm4 = vnez %v10311_v19 }
 0x118   : > { %10384 = vst [vmem:[#allocation45_spill] sm:$0xff] %v10383_v61  ;;  %6593 = vmatprep.mubr.msk.bf16.mxu0 %vm10386_vm3, %v812_v15  ;;  %v10389_v24 = vsel %vm7887_vm1, 4294967295, %v10388_v24  ;;  %6616 = vmatpush3.bf16.msra.mxu0 %v7078_v63  ;;  %v836_v15 = vsel %vm7743_vm7, %v7873_v22, 0.0  ;;  %v808_v30 = vsel %vm7821_vm0, %v7875_v0, 0.0  ;;  %v809_v21 = vsel %vm7849_vm10, %v7877_v46, 0.0  ;;  %v7081_v14 = vld [vmem:[%s9912_s3 + $0x40] sm:$0xff]   ;;  %vm10395_vm0 = vmmov %vm10385_vm9 }
 0x119   : > { %10390 = vst [vmem:[#allocation46_spill] sm:$0xff] %v10389_v24  ;;  %v841_v1 = vpack.c.bf16 %v837_v8, %v836_v15  ;;  %v813_v57 = vpack.c.bf16 %v809_v21, %v808_v30  ;;  %6617 = vmatprep.subr.bf16.mxu0 %v7080_v20  ;;  %v1077_v2 = vsel %vm7867_vm5, %v1053_v5, 0.0  ;;  %v1215_v40 = vsel %vm7579_vm2, %v7666_v48, 0.0  ;;  %v7082_v26 = vld [vmem:[%s9912_s3 + $0x60] sm:$0xff]   ;;  %vm7928_vm10 = vmand %vm7642_vm8, %vm7887_vm1 }
 0x11a   : > { %v1085_v63 = vpack.c.bf16 %v1078_v18, %v1077_v2  ;;  %v10391_v8 = vand.u32 7, %v7562_v49  ;;  %v10392_v30 = vmov 0  ;;  %v1223_v5 = vpack.c.bf16 %v1216_v39, %v1215_v40  ;;  %v7922_v48 = vld [vmem:[#allocation2 + $0x19] sm:$0xff]  ;;  %6602 = vmatpush3.bf16.msra.mxu1 %v7079_v9  ;;  %vm10410_vm5 = vmmov %vm10385_vm9  ;;  %v7956_v2 = vld [vmem:[#allocation2 + $0x21] sm:$0xff] }
 0x11b   : > { %6578 = vmatmul.mubr.msk.bf16.gmra.mxu1 %vm10385_vm9, %v841_v1  ;;  %6594 = vmatmul.mubr.msk.bf16.gmra.mxu0 %vm10395_vm0, %v813_v57  ;;  %v10396_v18 = vmov 0  ;;  %v10399_v15 = vand.u32 7, %v7584_v59  ;;  %v10400_v21 = vmov 0  ;;  %v10403_v1 = vand.u32 7, %v7587_v60  ;;  %v7945_v57 = vld [vmem:[#allocation2 + $0x31] sm:$0xff] }
 0x11c   : > { %vm7916_vm3 = vcmp.le.s32.totalorder %v10391_v8, 6  ;;  %v10397_v18 = vsel %vm7928_vm10, 4294967295, %v10396_v18  ;;  %v10404_v40 = vmov 0  ;;  %6605 = vmatprep.mubr.msk.bf16.mxu1 %vm10385_vm9, %v1085_v63  ;;  %v10407_v39 = vmov 0  ;;  %6618 = vmatpush3.bf16.msra.mxu0 %v7080_v20  ;;  %v7083_v63 = vld [vmem:[%s9912_s3 + $0x98] sm:$0xff]  }
 0x11d   : > { %v10393_v30 = vsel %vm7916_vm3, 4294967295, %v10392_v30  ;;  %10398 = vst [vmem:[#allocation48_spill] sm:$0xff] %v10397_v18  ;;  %vm7934_vm14 = vcmp.le.s32.totalorder %v10399_v15, 6  ;;  %vm7940_vm0 = vcmp.le.s32.totalorder %v10403_v1, 6  ;;  %6621 = vmatprep.mubr.msk.bf16.mxu0 %vm10410_vm5, %v1223_v5  ;;  %vm7962_vm9 = vmand %vm10411_vm4, %vm7916_vm3  ;;  %v10412_v9 = vmov 0  ;;  %6603 = vmatprep.subr.bf16.mxu1 %v7081_v14  ;;  %v7084_v8 = vld [vmem:[%s9912_s3 + $0xb8] sm:$0xff]  }
 0x11e   : > { %10394 = vst [vmem:[#allocation47_spill] sm:$0xff] %v10393_v30  ;;  %v10401_v21 = vsel %vm7934_vm14, 4294967295, %v10400_v21  ;;  %v10405_v40 = vsel %vm7940_vm0, 4294967295, %v10404_v40  ;;  %vm7951_vm8 = vmand %vm7676_vm12, %vm7940_vm0  ;;  %v10413_v9 = vsel %vm7962_vm9, 4294967295, %v10412_v9  ;;  %6619 = vmatprep.subr.bf16.mxu0 %v7082_v26  ;;  %v1079_v20 = vsel %vm7928_vm10, %v7922_v48, 0.0  ;;  %v7975_v5 = vld [vmem:[#allocation2 + $0x29] sm:$0xff]  ;;  %6604 = vmatpush3.bf16.msra.mxu1 %v7081_v14 }
 0x11f   : > { %10402 = vst [vmem:[#allocation49_spill] sm:$0xff] %v10401_v21  ;;  %10406 = vst [vmem:[#allocation50_spill] sm:$0xff] %v10405_v40  ;;  %v10408_v39 = vsel %vm7951_vm8, 4294967295, %v10407_v39  ;;  %v10415_v15 = vmov 0  ;;  %vm10418_vm12 = vnez %v10320_v41  ;;  %v1082_v53 = vsel %vm7951_vm8, %v7945_v57, 0.0  ;;  %6629 = vmatprep.subr.bf16.mxu1 %v7083_v63 }
 0x120   : > { %10409 = vst [vmem:[#allocation51_spill] sm:$0xff] %v10408_v39  ;;  %10414 = vst [vmem:[#allocation52_spill] sm:$0xff] %v10413_v9  ;;  %v1217_v1 = vsel %vm10418_vm12, %v7738_v44, 0.0  ;;  %v1080_v18 = vsel %vm7962_vm9, %v7956_v2, 0.0  ;;  %vm10419_vm10 = vnez %v10341_v16  ;;  %6620 = vmatpush3.bf16.msra.mxu0 %v7082_v26  ;;  %v10421_v14 = vand.u32 7, %v7648_v25 }
 0x121   : > { %vm7981_vm5 = vmand %vm7670_vm11, %vm7934_vm14  ;;  %v1220_v50 = vsel %vm10419_vm10, %v7875_v0, 0.0  ;;  %v1086_v19 = vpack.c.bf16 %v1080_v18, %v1079_v20  ;;  %vm10420_vm11 = vnez %v10323_v43  ;;  %v10422_v9 = vmov 0  ;;  %6645 = vmatprep.subr.bf16.mxu0 %v7084_v8  ;;  %v7085_v18 = vld [vmem:[%s9912_s3 + $0x90] sm:$0xff]  }
 0x122   : > { %v10416_v15 = vsel %vm7981_vm5, 4294967295, %v10415_v15  ;;  %v1218_v23 = vsel %vm10420_vm11, %v7774_v13, 0.0  ;;  %v1081_v39 = vsel %vm7981_vm5, %v7975_v5, 0.0  ;;  %vm8005_vm8 = vcmp.le.s32.totalorder %v10421_v14, 6 }
 0x123   : > { %10417 = vst [vmem:[#allocation53_spill] sm:$0xff] %v10416_v15  ;;  %v10423_v9 = vsel %vm8005_vm8, 4294967295, %v10422_v9  ;;  %v1224_v61 = vpack.c.bf16 %v1218_v23, %v1217_v1  ;;  %v1087_v34 = vpack.c.bf16 %v1082_v53, %v1081_v39  ;;  %vm10425_vm9 = vnez %v10332_v54  ;;  %v7086_v23 = vld [vmem:[%s9912_s3 + $0xb0] sm:$0xff]   ;;  %v8025_v53 = vld [vmem:[#allocation2 + $0x39] sm:$0xff]  ;;  %vm8031_vm12 = vmand %vm7743_vm7, %vm8005_vm8 }
 0x124   : > { %10424 = vst [vmem:[#allocation54_spill] sm:$0xff] %v10423_v9  ;;  %v1219_v26 = vsel %vm10425_vm9, %v7803_v3, 0.0  ;;  %v10426_v20 = vand.u32 7, %v7687_v56  ;;  %v10427_v15 = vmov 0  ;;  %vm10430_vm4 = vcmask 523264  }
 0x125   : > { %6606 = vmatmul.mubr.msk.bf16.vlgmr.msra.gmra.mxu1 %vm10430_vm4, %v1086_v19  ;;  %v1225_v14 = vpack.c.bf16 %v1220_v50, %v1219_v26  ;;  %v10431_v39 = vmov 0  ;;  %vm10434_vm10 = vmmov %vm10430_vm4  ;;  %v8038_v19 = vld [vmem:[#allocation2 + $0x41] sm:$0xff]  ;;  %v10436_v50 = vmov 0  ;;  %v1221_v1 = vsel %vm7787_vm13, %v7877_v46, 0.0 }
 0x126   : > { %vm8017_vm5 = vcmp.le.s32.totalorder %v10426_v20, 6  ;;  %v10432_v39 = vsel %vm8031_vm12, 4294967295, %v10431_v39  ;;  %6622 = vmatmul.mubr.msk.bf16.vlgmr.msra.gmra.mxu0 %vm10434_vm10, %v1224_v61  ;;  %vm10435_vm9 = vmmov %vm10430_vm4  ;;  %6630 = vmatpush3.bf16.msra.mxu1 %v7083_v63  ;;  %v1083_v61 = vsel %vm8031_vm12, %v8025_v53, 0.0  ;;  %v7087_v63 = vld [vmem:[%s9912_s3 + $0x88] sm:$0xff]   ;;  %v1483_v20 = vsel %vm7827_vm15, %v7853_v27, 0.0  ;;  %v7089_v27 = vld [vmem:[%s9912_s3 + $0x80] sm:$0xff]  }
 0x127   : > { %v10428_v15 = vsel %vm8017_vm5, 4294967295, %v10427_v15  ;;  %10433 = vst [vmem:[#allocation56_spill] sm:$0xff] %v10432_v39  ;;  %6609 = vmatprep.mubr.msk.bf16.mxu1 %vm10435_vm9, %v1087_v34  ;;  %6625 = vmatprep.mubr.msk.bf16.mxu0 %vm10430_vm4, %v1225_v14  ;;  %vm8044_vm11 = vmand %vm7807_vm6, %vm8017_vm5  ;;  %v8051_v34 = vld [vmem:[#allocation2 + $0x47] sm:$0xff]  ;;  %vm10439_vm10 = vnez %v10357_v51  ;;  %vm10440_vm9 = vnez %v10371_v7 }
 0x128   : > { %10429 = vst [vmem:[#allocation55_spill] sm:$0xff] %v10428_v15  ;;  %v10437_v50 = vsel %vm8044_vm11, 4294967295, %v10436_v50  ;;  %6646 = vmatpush3.bf16.msra.mxu0 %v7084_v8  ;;  %6631 = vmatprep.subr.bf16.mxu1 %v7085_v18  ;;  %v7088_v8 = vld [vmem:[%s9912_s3 + $0xa8] sm:$0xff]   ;;  %v1084_v26 = vsel %vm8044_vm11, %v8038_v19, 0.0  ;;  %v1484_v14 = vsel %vm10439_vm10, %v7922_v48, 0.0  ;;  %v1222_v6 = vsel %vm10440_vm9, %v8051_v34, 0.0  ;;  %vm10441_vm11 = vmmov %vm10430_vm4 }
 0x129   : > { %10438 = vst [vmem:[#allocation57_spill] sm:$0xff] %v10437_v50  ;;  %6647 = vmatprep.subr.bf16.mxu0 %v7086_v23  ;;  %v1088_v39 = vpack.c.bf16 %v1084_v26, %v1083_v61  ;;  %v1226_v62 = vpack.c.bf16 %v1222_v6, %v1221_v1  ;;  %v1353_v50 = vpack.c.bf16 %v7734_v35, %v7664_v47  ;;  %vm10442_vm12 = vmmov %vm10430_vm4  ;;  %v7091_v47 = vld [vmem:[%s9912_s3 + $0xd8] sm:$0xff]   ;;  %v7093_v26 = vld [vmem:[%s9912_s3 + $0xd0] sm:$0xff]  }
 0x12a   : > { %6632 = vmatpush3.bf16.msra.mxu1 %v7085_v18  ;;  %v1491_v38 = vpack.c.bf16 %v1484_v14, %v1483_v20  ;;  %v7090_v18 = vld [vmem:[%s9912_s3 + $0xa0] sm:$0xff]   ;;  %vm10443_vm6 = vmmov %vm10430_vm4  ;;  %v7092_v6 = vld [vmem:[%s9912_s3 + $0xf8] sm:$0xff]   ;;  %v1354_v61 = vpack.c.bf16 %v7772_v12, %v7705_v11 }
 0x12b   : > { %6633 = vmatprep.subr.bf16.mxu1 %v7087_v63  ;;  %v7094_v14 = vld [vmem:[%s9912_s3 + $0xf0] sm:$0xff]  }
 0x12c   : > { %6648 = vmatpush3.bf16.msra.mxu0 %v7086_v23  ;;  %v1488_v23 = vsel %vm7940_vm0, %v8025_v53, 0.0  ;;  %vm10457_vm0 = vnez %v10305_v4 }
 0x12d   : > { %6610 = vmatmul.mubr.msk.bf16.gmra.mxu1 %vm10430_vm4, %v1088_v39  ;;  %6649 = vmatprep.subr.bf16.mxu0 %v7088_v8  ;;  %v10444_v39 = vshra.s32 %v7538_v33, 3 }
 0x12e   : > { %6626 = vmatmul.mubr.msk.bf16.gmra.mxu0 %vm10441_vm11, %v1226_v62  ;;  %6637 = vmatprep.mubr.msk.bf16.mxu1 %vm10442_vm12, %v1353_v50  ;;  %v1486_v62 = vsel %vm7916_vm3, %v7975_v5, 0.0  ;;  %v10445_v50 = vmov 0  ;;  %vm10448_vm11 = vmmov %vm10430_vm4 }
 0x12f   : > { %6634 = vmatpush3.bf16.msra.mxu1 %v7087_v63  ;;  %6653 = vmatprep.mubr.msk.bf16.mxu0 %vm10443_vm6, %v1491_v38  ;;  %v1487_v38 = vsel %vm7934_vm14, %v7945_v57, 0.0  ;;  %vm8103_vm6 = vcmp.le.s32.totalorder %v10444_v39, 6  ;;  %v1485_v63 = vsel %vm7887_vm1, %v7956_v2, 0.0  ;;  %vm10456_vm7 = vmmov %vm10448_vm11  ;;  %v7095_v39 = vld [vmem:[%s9912_s3 + $0xc8] sm:$0xff]  }
 0x130   : > { %6650 = vmatpush3.bf16.msra.mxu0 %v7088_v8  ;;  %6635 = vmatprep.subr.bf16.mxu1 %v7089_v27  ;;  %v10446_v50 = vsel %vm8103_vm6, 4294967295, %v10445_v50  ;;  %v1492_v1 = vpack.c.bf16 %v1486_v62, %v1485_v63  ;;  %v1355_v8 = vpack.c.bf16 %v7873_v22, %v7801_v52  ;;  %v1493_v20 = vpack.c.bf16 %v1488_v23, %v1487_v38  ;;  %vm8131_vm4 = vmand %vm8103_vm6, %vm7579_vm2  ;;  %v8137_v38 = vld [vmem:[#allocation2 + $0x49] sm:$0xff] }
 0x131   : > { %6651 = vmatprep.subr.bf16.mxu0 %v7090_v18  ;;  %10447 = vst [vmem:[#allocation58_spill] sm:$0xff] %v10446_v50  ;;  %v10453_v62 = vmov 0  ;;  %vm10461_vm14 = vmmov %vm10456_vm7  ;;  %v8148_v23 = vld [vmem:[#allocation2 + $0x48] sm:$0xff]  ;;  %v1490_v63 = vsel %vm8017_vm5, %v8137_v38, 0.0 }
 0x132   : > { %v10454_v62 = vsel %vm8131_vm4, 4294967295, %v10453_v62  ;;  %v1356_v58 = vpack.c.bf16 %v8148_v23, %v7855_v10 }
 0x133   : > { %6636 = vmatpush3.bf16.msra.mxu1 %v7089_v27  ;;  %v10449_v27 = vshra.s32 %v7555_v42, 3  ;;  %10455 = vst [vmem:[#allocation60_spill] sm:$0xff] %v10454_v62  ;;  %v10458_v42 = vmov 0  ;;  %v10467_v62 = vmov 0 }
 0x134   : > { %6652 = vmatpush3.bf16.msra.mxu0 %v7090_v18  ;;  %6661 = vmatprep.subr.bf16.mxu1 %v7091_v47  ;;  %v10450_v18 = vmov 0 }
 0x135   : > { %6677 = vmatprep.subr.bf16.mxu0 %v7092_v6  ;;  %vm8123_vm12 = vcmp.le.s32.totalorder %v10449_v27, 6  ;;  %v10463_v27 = vmov 0 }
 0x136   : > { %6638 = vmatmul.mubr.msk.bf16.vlgmr.msra.gmra.mxu1 %vm10448_vm11, %v1354_v61  ;;  %v10451_v18 = vsel %vm8123_vm12, 4294967295, %v10450_v18  ;;  %vm8143_vm1 = vmand %vm8123_vm12, %vm10457_vm0  ;;  %v1489_v61 = vsel %vm8005_vm8, %v8038_v19, 0.0  ;;  %vm10483_vm8 = vnez %v10332_v54 }
 0x137   : > { %10452 = vst [vmem:[#allocation59_spill] sm:$0xff] %v10451_v18  ;;  %6654 = vmatmul.mubr.msk.bf16.vlgmr.msra.gmra.mxu0 %vm10448_vm11, %v1492_v1  ;;  %6641 = vmatprep.mubr.msk.bf16.mxu1 %vm10456_vm7, %v1355_v8  ;;  %v10459_v42 = vsel %vm8143_vm1, 4294967295, %v10458_v42  ;;  %v1638_v1 = vsel %vm8143_vm1, %v7738_v44, 0.0  ;;  %v1775_v8 = vsel %vm8103_vm6, %v7734_v35, 0.0  ;;  %v1494_v44 = vpack.c.bf16 %v1490_v63, %v1489_v61  ;;  %vm10478_vm0 = vmmov %vm10448_vm11 }
 0x138   : > { %10460 = vst [vmem:[#allocation61_spill] sm:$0xff] %v10459_v42  ;;  %6657 = vmatprep.mubr.msk.bf16.mxu0 %vm10461_vm14, %v1493_v20  ;;  %6662 = vmatpush3.bf16.msra.mxu1 %v7091_v47  ;;  %v7096_v47 = vld [vmem:[%s9912_s3 + $0xe8] sm:$0xff]   ;;  %v10462_v20 = vshra.s32 %v7562_v49, 3  ;;  %v1776_v49 = vsel %vm8123_vm12, %v7705_v11, 0.0  ;;  %v10471_v61 = vmov 0  ;;  %vm10474_vm1 = vnez %v10323_v43 }
 0x139   : > { %6678 = vmatpush3.bf16.msra.mxu0 %v7092_v6  ;;  %6663 = vmatprep.subr.bf16.mxu1 %v7093_v26  ;;  %v1637_v6 = vsel %vm8131_vm4, %v7736_v37, 0.0  ;;  %v10466_v37 = vshra.s32 %v7584_v59, 3  ;;  %v1783_v59 = vpack.c.bf16 %v1776_v49, %v1775_v8  ;;  %v10475_v11 = vmov 0 }
 0x13a   : > { %6679 = vmatprep.subr.bf16.mxu0 %v7094_v14  ;;  %vm8173_vm14 = vcmp.le.s32.totalorder %v10462_v20, 6  ;;  %v1645_v35 = vpack.c.bf16 %v1638_v1, %v1637_v6  ;;  %v7098_v20 = vld [vmem:[%s9912_s3 + $0xe0] sm:$0xff]   ;;  %v10484_v63 = vmov 0  ;;  %vm10492_vm12 = vnez %v10320_v41 }
 0x13b   : > { %v10464_v27 = vsel %vm8173_vm14, 4294967295, %v10463_v27  ;;  %vm8181_vm7 = vcmp.le.s32.totalorder %v10466_v37, 6  ;;  %vm8205_vm2 = vmand %vm8173_vm14, %vm10474_vm1  ;;  %v10493_v6 = vmov 0  ;;  %v10501_v49 = vmov 0 }
 0x13c   : > { %10465 = vst [vmem:[#allocation62_spill] sm:$0xff] %v10464_v27  ;;  %6664 = vmatpush3.bf16.msra.mxu1 %v7093_v26  ;;  %v10468_v62 = vsel %vm8181_vm7, 4294967295, %v10467_v62  ;;  %v7097_v26 = vld [vmem:[%s9912_s3 + $0xc0] sm:$0xff]   ;;  %v10476_v11 = vsel %vm8205_vm2, 4294967295, %v10475_v11  ;;  %vm8221_vm3 = vmand %vm8181_vm7, %vm10483_vm8  ;;  %v1640_v1 = vsel %vm8205_vm2, %v7803_v3, 0.0 }
 0x13d   : > { %10469 = vst [vmem:[#allocation63_spill] sm:$0xff] %v10468_v62  ;;  %6680 = vmatpush3.bf16.msra.mxu0 %v7094_v14  ;;  %6665 = vmatprep.subr.bf16.mxu1 %v7095_v39  ;;  %v10470_v14 = vshra.s32 %v7569_v55, 3  ;;  %10477 = vst [vmem:[#allocation65_spill] sm:$0xff] %v10476_v11  ;;  %v10480_v55 = vmov 0  ;;  %v10485_v63 = vsel %vm8221_vm3, 4294967295, %v10484_v63  ;;  %v1641_v8 = vsel %vm8221_vm3, %v7875_v0, 0.0 }
 0x13e   : > { %6642 = vmatmul.mubr.msk.bf16.gmra.mxu1 %vm10448_vm11, %v1356_v58  ;;  %6681 = vmatprep.subr.bf16.mxu0 %v7096_v47  ;;  %v10479_v58 = vshra.s32 %v7587_v60, 3  ;;  %10486 = vst [vmem:[#allocation67_spill] sm:$0xff] %v10485_v63  ;;  %vm10487_vm1 = vmmov %vm10478_vm0  ;;  %v10489_v60 = vmov 0  ;;  %v10500_v0 = vshra.s32 %v7687_v56, 3  ;;  %v7100_v56 = vld [vmem:[%s9912_s3 + $0x110] sm:$0xff]  }
 0x13f   : > { %vm8197_vm4 = vcmp.le.s32.totalorder %v10470_v14, 6  ;;  %6658 = vmatmul.mubr.msk.bf16.gmra.mxu0 %vm10448_vm11, %v1494_v44  ;;  %6669 = vmatprep.mubr.msk.bf16.mxu1 %vm10478_vm0, %v1645_v35  ;;  %vm10488_vm11 = vnez %v10341_v16  ;;  %v10496_v44 = vshra.s32 %v7648_v25, 3  ;;  %v10497_v35 = vmov 0  ;;  %v1774_v14 = vld [vmem:[#allocation2 + $0x50] sm:$0xff] }
 0x140   : > { %v10472_v61 = vsel %vm8197_vm4, 4294967295, %v10471_v61  ;;  %vm8213_vm5 = vcmp.le.s32.totalorder %v10479_v58, 6  ;;  %6666 = vmatpush3.bf16.msra.mxu1 %v7095_v39  ;;  %6685 = vmatprep.mubr.msk.bf16.mxu0 %vm10487_vm1, %v1783_v59  ;;  %vm8238_vm8 = vmand %vm8197_vm4, %vm10492_vm12  ;;  %v7099_v39 = vld [vmem:[%s9912_s3 + $0x118] sm:$0xff]   ;;  %vm8271_vm3 = vcmp.le.s32.totalorder %v10500_v0, 6  ;;  %v10513_v58 = vmov 0 }
 0x141   : > { %10473 = vst [vmem:[#allocation64_spill] sm:$0xff] %v10472_v61  ;;  %v10481_v55 = vsel %vm8213_vm5, 4294967295, %v10480_v55  ;;  %vm8230_vm0 = vmand %vm8213_vm5, %vm10488_vm11  ;;  %6682 = vmatpush3.bf16.msra.mxu0 %v7096_v47  ;;  %6667 = vmatprep.subr.bf16.mxu1 %v7097_v26  ;;  %v10494_v6 = vsel %vm8238_vm8, 4294967295, %v10493_v6  ;;  %v1778_v47 = vsel %vm8173_vm14, %v7801_v52, 0.0  ;;  %vm8259_vm1 = vcmp.le.s32.totalorder %v10496_v44, 6 }
 0x142   : > { %10482 = vst [vmem:[#allocation66_spill] sm:$0xff] %v10481_v55  ;;  %v10490_v60 = vsel %vm8230_vm0, 4294967295, %v10489_v60  ;;  %10495 = vst [vmem:[#allocation69_spill] sm:$0xff] %v10494_v6  ;;  %6683 = vmatprep.subr.bf16.mxu0 %v7098_v20  ;;  %v1642_v37 = vsel %vm8230_vm0, %v7877_v46, 0.0  ;;  %v10498_v35 = vsel %vm8259_vm1, 4294967295, %v10497_v35  ;;  %v1639_v3 = vsel %vm8238_vm8, %v7774_v13, 0.0 }
 0x143   : > { %10491 = vst [vmem:[#allocation68_spill] sm:$0xff] %v10490_v60  ;;  %10499 = vst [vmem:[#allocation70_spill] sm:$0xff] %v10498_v35  ;;  %v1779_v52 = vsel %vm8181_vm7, %v7873_v22, 0.0  ;;  %v10502_v49 = vsel %vm8271_vm3, 4294967295, %v10501_v49  ;;  %v1646_v25 = vpack.c.bf16 %v1640_v1, %v1639_v3  ;;  %v1777_v46 = vsel %vm8197_vm4, %v7772_v12, 0.0 }
 0x144   : > { %6668 = vmatpush3.bf16.msra.mxu1 %v7097_v26  ;;  %10503 = vst [vmem:[#allocation71_spill] sm:$0xff] %v10502_v49  ;;  %v1784_v26 = vpack.c.bf16 %v1778_v47, %v1777_v46  ;;  %v1647_v59 = vpack.c.bf16 %v1642_v37, %v1641_v8  ;;  %v1780_v13 = vsel %vm8213_vm5, %v7855_v10, 0.0  ;;  %vm8288_vm8 = vmand %vm8259_vm1, %vm7787_vm13  ;;  %v10504_v22 = vmov 0  ;;  %v7101_v8 = vld [vmem:[%s9912_s3 + $0x108] sm:$0xff]  }
 0x145   : > { %6684 = vmatpush3.bf16.msra.mxu0 %v7098_v20  ;;  %6693 = vmatprep.subr.bf16.mxu1 %v7099_v39  ;;  %v10505_v22 = vsel %vm8288_vm8, 4294967295, %v10504_v22  ;;  %vm10507_vm0 = vcmask 523264   ;;  %v1785_v12 = vpack.c.bf16 %v1780_v13, %v1779_v52  ;;  %v1620_v20 = vld [vmem:[#allocation2 + $0x4f] sm:$0xff]  ;;  %vm8297_vm2 = vmand %vm8271_vm3, %vm10440_vm9  ;;  %v10508_v10 = vmov 0 }
 0x146   : > { %10506 = vst [vmem:[#allocation72_spill] sm:$0xff] %v10505_v22  ;;  %v10509_v10 = vsel %vm8297_vm2, 4294967295, %v10508_v10  ;;  %vm10511_vm12 = vmmov %vm10507_vm0  ;;  %v1643_v1 = vsel %vm8288_vm8, %v8051_v34, 0.0  ;;  %v1644_v47 = vsel %vm8297_vm2, %v1620_v20, 0.0  ;;  %v10518_v37 = vmov 0 }
 0x147   : > { %6670 = vmatmul.mubr.msk.bf16.vlgmr.msra.gmra.mxu1 %vm10507_vm0, %v1646_v25  ;;  %10510 = vst [vmem:[#allocation73_spill] sm:$0xff] %v10509_v10  ;;  %vm10512_vm11 = vmmov %vm10507_vm0  ;;  %v1782_v34 = vsel %vm8271_vm3, %v1774_v14, 0.0  ;;  %v1648_v3 = vpack.c.bf16 %v1644_v47, %v1643_v1  ;;  %v10531_v46 = vmov 0   ;;  %v10537_v13 = vmov 0 }
 0x148   : > { %6686 = vmatmul.mubr.msk.bf16.vlgmr.msra.gmra.mxu0 %vm10511_vm12, %v1784_v26  ;;  %6673 = vmatprep.mubr.msk.bf16.mxu1 %vm10512_vm11, %v1647_v59  ;;  %vm8307_vm0 = vmand %vm8103_vm6, %vm7827_vm15  ;;  %vm10517_vm12 = vnez %v10451_v18  ;;  %v10533_v26 = vmov 0  ;;  %v10541_v1 = vmov 0 }
 0x149   : > { %v10514_v58 = vsel %vm8307_vm0, 4294967295, %v10513_v58  ;;  %vm10516_vm13 = vmmov %vm10512_vm11  ;;  %6694 = vmatpush3.bf16.msra.mxu1 %v7099_v39  ;;  %v1781_v39 = vsel %vm8259_vm1, %v8148_v23, 0.0  ;;  %v1921_v44 = vsel %vm8307_vm0, %v7922_v48, 0.0  ;;  %v7102_v23 = vld [vmem:[%s9912_s3 + $0x100] sm:$0xff]   ;;  %vm10523_vm0 = vnez %v10393_v30 }
 0x14a   : > { %10515 = vst [vmem:[#allocation74_spill] sm:$0xff] %v10514_v58  ;;  %6689 = vmatprep.mubr.msk.bf16.mxu0 %vm10516_vm13, %v1785_v12  ;;  %6695 = vmatprep.subr.bf16.mxu1 %v7100_v56  ;;  %vm8324_vm11 = vmand %vm10517_vm12, %vm10439_vm10  ;;  %v1786_v0 = vpack.c.bf16 %v1782_v34, %v1781_v39  ;;  %v10524_v48 = vmov 0  ;;  %v7103_v39 = vld [vmem:[%s9914_s5 + $0x30] ss:$8 sps:$4 sm:$0xff]   ;;  %v7105_v34 = vld [vmem:[%s9914_s5 + $0x34] ss:$8 sps:$4 sm:$0xff]  }
 0x14b   : > { %v10519_v37 = vsel %vm8324_vm11, 4294967295, %v10518_v37  ;;  %v1922_v52 = vsel %vm8324_vm11, %v7956_v2, 0.0  ;;  %vm10521_vm6 = vmmov %vm10516_vm13  ;;  %vm10527_vm11 = vnez %v10401_v21  ;;  %v10528_v2 = vmov 0  ;;  %2157 = vmatprep.subr.bf16.mxu0 %v7105_v34 }
 0x14c   : > { %10520 = vst [vmem:[#allocation75_spill] sm:$0xff] %v10519_v37  ;;  %v1929_v25 = vpack.c.bf16 %v1922_v52, %v1921_v44  ;;  %vm10522_vm12 = vmmov %vm10521_vm6  ;;  %2158 = vmatpush1.bf16.msra.mxu0 %v7103_v39  ;;  %v7108_v44 = vld [vmem:[%s9914_s5 + $0x24] ss:$8 sps:$4 sm:$0xff]   ;;  %v7111_v52 = vld [vmem:[%s9914_s5 + $0x14] ss:$8 sps:$4 sm:$0xff]  }
 0x14d   : > { %6696 = vmatpush3.bf16.msra.mxu1 %v7100_v56  ;;  %vm8349_vm2 = vmand %vm8173_vm14, %vm10523_vm0  ;;  %vm10544_vm14 = vcmask 523264   ;;  %2159 = vmatprep.subr.bf16.mxu0 %v7108_v44  ;;  %v7121_v39 = vld [vmem:[%s9916_s7 + $0x60] sm:$0xff]  }
 0x14e   : > { %6697 = vmatprep.subr.bf16.mxu1 %v7101_v8  ;;  %v10525_v48 = vsel %vm8349_vm2, 4294967295, %v10524_v48  ;;  %vm8357_vm8 = vmand %vm8181_vm7, %vm10527_vm11  ;;  %v1924_v59 = vsel %vm8349_vm2, %v7945_v57, 0.0 }
 0x14f   : > { %6674 = vmatmul.mubr.msk.bf16.gmra.mxu1 %vm10516_vm13, %v1648_v3  ;;  %10526 = vst [vmem:[#allocation76_spill] sm:$0xff] %v10525_v48  ;;  %v10529_v2 = vsel %vm8357_vm8, 4294967295, %v10528_v2  ;;  %vm10536_vm13 = vnez %v10405_v40  ;;  %v1925_v56 = vsel %vm8357_vm8, %v8025_v53, 0.0  ;;  %v1912_v53 = vld [vmem:[#allocation2 + $0x51] sm:$0xff]  ;;  %vm10545_vm8 = vnez %v10428_v15 }
 0x150   : > { %6690 = vmatmul.mubr.msk.bf16.gmra.mxu0 %vm10521_vm6, %v1786_v0  ;;  %6701 = vmatprep.mubr.msk.bf16.mxu1 %vm10522_vm12, %v1929_v25  ;;  %10530 = vst [vmem:[#allocation77_spill] sm:$0xff] %v10529_v2  ;;  %vm10532_vm6 = vnez %v10389_v24  ;;  %vm8377_vm7 = vmand %vm8213_vm5, %vm10536_vm13  ;;  %v7109_v3 = vld [vmem:[%s9914_s5 + $0x10] ss:$8 sps:$4 sm:$0xff]   ;;  %v7114_v0 = vld [vmem:[%s9914_s5 + $0x4] ss:$8 sps:$4 sm:$0xff]  }
 0x151   : > { %6698 = vmatpush3.bf16.msra.mxu1 %v7101_v8  ;;  %2181 = vmatprep.mubr.bf16.mxu0 %v10531_v46  ;;  %vm8366_vm12 = vmand %vm8197_vm4, %vm10532_vm6  ;;  %v10538_v13 = vsel %vm8377_vm7, 4294967295, %v10537_v13  ;;  %v1926_v57 = vsel %vm8377_vm7, %v8038_v19, 0.0  ;;  %vm10540_vm4 = vnez %v10423_v9  ;;  %v7112_v25 = vld [vmem:[%s9914_s5] ss:$8 sps:$4 sm:$0xff]  }
 0x152   : > { %6699 = vmatprep.subr.bf16.mxu1 %v7102_v23  ;;  %v10534_v26 = vsel %vm8366_vm12, 4294967295, %v10533_v26  ;;  %10539 = vst [vmem:[#allocation79_spill] sm:$0xff] %v10538_v13  ;;  %v1923_v12 = vsel %vm8366_vm12, %v7975_v5, 0.0  ;;  %v1931_v14 = vpack.c.bf16 %v1926_v57, %v1925_v56  ;;  %vm8394_vm5 = vmand %vm8259_vm1, %vm10540_vm4  ;;  %v10546_v5 = vmov 0  ;;  %v7117_v57 = vld [vmem:[%s9916_s7 + $0x70] sm:$0xff]  }
 0x153   : > { %10535 = vst [vmem:[#allocation78_spill] sm:$0xff] %v10534_v26  ;;  %v1930_v20 = vpack.c.bf16 %v1924_v59, %v1923_v12  ;;  %v10542_v1 = vsel %vm8394_vm5, 4294967295, %v10541_v1  ;;  %vm8403_vm12 = vmand %vm8271_vm3, %vm10545_vm8  ;;  %v1927_v19 = vsel %vm8394_vm5, %v8137_v38, 0.0  ;;  %v7106_v38 = vld [vmem:[%s9914_s5 + $0x20] ss:$8 sps:$4 sm:$0xff]   ;;  %v7115_v12 = vld [vmem:[%s9916_s7 + $0x78] sm:$0xff]  }
 0x154   : > { %10543 = vst [vmem:[#allocation80_spill] sm:$0xff] %v10542_v1  ;;  %v10547_v5 = vsel %vm8403_vm12, 4294967295, %v10546_v5  ;;  %vm10549_vm7 = vmmov %vm10544_vm14  ;;  %v1928_v47 = vsel %vm8403_vm12, %v1912_v53, 0.0  ;;  %2160 = vmatpush1.bf16.msra.mxu0 %v7106_v38  ;;  %v7118_v53 = vld [vmem:[%s9916_s7 + $0x30] sm:$0xff]   ;;  %v7122_v38 = vld [vmem:[%s9916_s7 + $0x20] sm:$0xff]  }
 0x155   : > { %6700 = vmatpush3.bf16.msra.mxu1 %v7102_v23  ;;  %10548 = vst [vmem:[#allocation81_spill] sm:$0xff] %v10547_v5  ;;  %v1932_v8 = vpack.c.bf16 %v1928_v47, %v1927_v19  ;;  %2161 = vmatprep.subr.bf16.mxu0 %v7111_v52  ;;  %v8438_v23 = vpop.f32.mrf.mxu0  ;;  %v7119_v19 = vld [vmem:[%s9916_s7 + $0x68] sm:$0xff]   ;;  %vm10571_vm3 = vmmov %vm10549_vm7 }
 0x156   : > { %10551 = vst [vmem:[#allocation82_spill] sm:$0xff] %v8438_v23  ;;  %6325 = vmatprep.subr.bf16.mxu1 %v7115_v12 }
 0x157   : > { %v8440_v59 = vpop.f32.mrf.mxu0 }
 0x158   : > { %6702 = vmatmul.mubr.msk.bf16.vlgmr.msra.gmra.mxu1 %vm10544_vm14, %v1930_v20  ;;  %vm10550_vm14 = vmmov %vm10549_vm7  ;;  %2162 = vmatpush1.bf16.msra.mxu0 %v7109_v3  ;;  %10552 = vst [vmem:[#allocation83_spill] sm:$0xff] %v8440_v59  ;;  %v7116_v20 = vld [vmem:[%s9916_s7 + $0x38] sm:$0xff]  }
 0x159   : > { %6705 = vmatprep.mubr.msk.bf16.mxu1 %vm10549_vm7, %v1931_v14  ;;  %2163 = vmatprep.subr.bf16.mxu0 %v7114_v0  ;;  %v8442_v56 = vpop.f32.mrf.mxu0 }
 0x15a   : > { %10553 = vst [vmem:[#allocation84_spill] sm:$0xff] %v8442_v56  ;;  %6326 = vmatpush3.bf16.msra.mxu1 %v7116_v20 }
 0x15b   : > { %v8453_v14 = vpop.f32.mrf.mxu0  ;;  %6327 = vmatprep.subr.bf16.mxu1 %v7117_v57 }
 0x15c   : > { %2164 = vmatpush1.bf16.msra.mxu0 %v7112_v25  ;;  %10554 = vst [vmem:[#allocation85_spill] sm:$0xff] %v8453_v14 }
 0x15d   : > { %v8461_v47 = vpop.f32.mrf.mxu0 }
 0x15e   : > { %10555 = vst [vmem:[#allocation86_spill] sm:$0xff] %v8461_v47  ;;  %6328 = vmatpush3.bf16.msra.mxu1 %v7118_v53 }
 0x15f   : > { %6329 = vmatprep.subr.bf16.mxu1 %v7119_v19  ;;  %v8469_v34 = vpop.f32.mrf.mxu0 }
 0x160   : > { %6706 = vmatmul.mubr.msk.bf16.gmra.mxu1 %vm10550_vm14, %v1932_v8  ;;  %v7120_v8 = vld [vmem:[%s9916_s7 + $0x28] sm:$0xff]   ;;  %10556 = vst [vmem:[#allocation87_spill] sm:$0xff] %v8469_v34  ;;  %vm10570_vm14 = vmmov %vm10549_vm7 }
 0x161   : > { %v8474_v44 = vpop.f32.mrf.mxu0 }
 0x162   : > { %6330 = vmatpush3.bf16.msra.mxu1 %v7120_v8  ;;  %10557 = vst [vmem:[#allocation88_spill] sm:$0xff] %v8474_v44 }
 0x163   : > { %6331 = vmatprep.subr.bf16.mxu1 %v7121_v39  ;;  %v8476_v3 = vpop.f32.mrf.mxu0 }
 0x164   : > { %10558 = vst [vmem:[#allocation89_spill] sm:$0xff] %v8476_v3 }
 0x166   : > { %6332 = vmatpush3.bf16.msra.mxu1 %v7122_v38 }
 0x1d1   : > { %v6575_v52 = vpop.f32.mrf.mxu1 }
 0x1d3   : > { %v6591_v0 = vpop.f32.mrf.mxu0  ;;  %v921_v25 = vpop.f32.mrf.mxu1 }
 0x1d4   : > { %v1031_v59 = vadd.f32 %v6591_v0, %v6575_v52 }
 0x1d5   : > { %v1022_v12 = vpop.f32.mrf.mxu0  ;;  %v6576_v20 = vpop.f32.mrf.mxu1 }
 0x1d6   : > { %v1023_v4 = vadd.f32 %v1022_v12, %v921_v25 }
 0x1d7   : > { %v6592_v57 = vpop.f32.mrf.mxu0  ;;  %v924_v53 = vpop.f32.mrf.mxu1 }
 0x1d8   : > { %v1034_v47 = vadd.f32 %v6592_v57, %v6576_v20 }
 0x1d9   : > { %v1025_v19 = vpop.f32.mrf.mxu0 }
 0x1da   : > { %v1026_v29 = vadd.f32 %v1025_v19, %v924_v53 }
 0x1db   : > { %v6579_v49 = vpop.f32.mrf.mxu1  ;;  %v6595_v8 = vpop.f32.mrf.mxu0 }
 0x1dc   : > { %v1047_v44 = vadd.f32 %v6595_v8, %v6579_v49 }
 0x1dd   : > { %v8478_v35 = vpop.f32.mrf.mxu1  ;;  %v8480_v62 = vpop.f32.mrf.mxu0 }
 0x1df   : > { %v6580_v39 = vpop.f32.mrf.mxu1  ;;  %v6596_v61 = vpop.f32.mrf.mxu0 }
 0x1e1   : > { %v8482_v55 = vpop.f32.mrf.mxu1  ;;  %v1041_v38 = vpop.f32.mrf.mxu0 }
 0x1e5   : > { %v6607_v27 = vpop.f32.mrf.mxu1 }
 0x1e6   : > { %v6623_v5 = vpop.f32.mrf.mxu0  ;;  %v1201_v25 = vadd.f32 %v6607_v27, %v1031_v59  ;;  %v1039_v27 = vadd.f32 %v8480_v62, %v8478_v35 }
 0x1e7   : > { %v1168_v1 = vpop.f32.mrf.mxu1 }
 0x1e8   : > { %v1306_v50 = vpop.f32.mrf.mxu0  ;;  %v1199_v32 = vadd.f32 %v1168_v1, %v1023_v4 }
 0x1e9   : > { %v6608_v18 = vpop.f32.mrf.mxu1 }
 0x1ea   : > { %v6624_v15 = vpop.f32.mrf.mxu0  ;;  %v1337_v34 = vadd.f32 %v1306_v50, %v1199_v32  ;;  %v1202_v33 = vadd.f32 %v6608_v18, %v1034_v47  ;;  %v1339_v32 = vadd.f32 %v6623_v5, %v1201_v25 }
 0x1eb   : > { %v1171_v9 = vpop.f32.mrf.mxu1 }
 0x1ec   : > { %v1309_v2 = vpop.f32.mrf.mxu0  ;;  %v1200_v14 = vadd.f32 %v1171_v9, %v1026_v29  ;;  %v1042_v29 = vadd.f32 %v1041_v38, %v8482_v55 }
 0x1ed   : > { %v6611_v26 = vpop.f32.mrf.mxu1 }
 0x1ee   : > { %v6627_v13 = vpop.f32.mrf.mxu0  ;;  %v1205_v46 = vadd.f32 %v6611_v26, %v1047_v44  ;;  %v1338_v12 = vadd.f32 %v1309_v2, %v1200_v14 }
 0x1ef   : > { %v8484_v48 = vpop.f32.mrf.mxu1 }
 0x1f0   : > { %v8486_v21 = vpop.f32.mrf.mxu0  ;;  %v1343_v53 = vadd.f32 %v6627_v13, %v1205_v46 }
 0x1f1   : > { %10559 = vst [vmem:[#allocation90_spill] sm:$0xff] %v8486_v21  ;;  %v6612_v24 = vpop.f32.mrf.mxu1  ;;  %v1340_v21 = vadd.f32 %v6624_v15, %v1202_v33  ;;  %v1203_v33 = vadd.f32 %v8484_v48, %v1039_v27 }
 0x1f2   : > { %v6628_v40 = vpop.f32.mrf.mxu0 }
 0x1f3   : > { %v1187_v30 = vpop.f32.mrf.mxu1 }
 0x1f4   : > { %v8488_v58 = vpop.f32.mrf.mxu0  ;;  %v1204_v2 = vadd.f32 %v1187_v30, %v1042_v29 }
 0x1f6   : > { %v6639_v37 = vpop.f32.mrf.mxu1 }
 0x1f7   : > { %v8490_v10 = vpop.f32.mrf.mxu0  ;;  %v1469_v59 = vadd.f32 %v6639_v37, %v1339_v32 }
 0x1f8   : > { %v1436_v22 = vpop.f32.mrf.mxu1  ;;  %v10564_v30 = vld [vmem:[#allocation90_spill] sm:$0xff] }
 0x1f9   : > { %v1574_v17 = vpop.f32.mrf.mxu0 }
 0x1fa   : > { %v6640_v45 = vpop.f32.mrf.mxu1 }
 0x1fb   : > { %v6656_v51 = vpop.f32.mrf.mxu0  ;;  %v1470_v9 = vadd.f32 %v6640_v45, %v1340_v21 }
 0x1fc   : > { %v1439_v7 = vpop.f32.mrf.mxu1 }
 0x1fd   : > { %v1577_v63 = vpop.f32.mrf.mxu0  ;;  %v1468_v20 = vadd.f32 %v1439_v7, %v1338_v12 }
 0x1fe   : > { %v6643_v6 = vpop.f32.mrf.mxu1 }
 0x1ff   : > { %v6659_v60 = vpop.f32.mrf.mxu0  ;;  %v1473_v50 = vadd.f32 %v6643_v6, %v1343_v53  ;;  %v1607_v6 = vadd.f32 %v8490_v10, %v1469_v59  ;;  %v10569_v59 = vmov 0  }
 0x200   : > { %v8492_v11 = vpop.f32.mrf.mxu1 }
 0x201   : > { %10560 = vst [vmem:[#allocation91_spill] sm:$0xff] %v8492_v11  ;;  %v8494_v54 = vpop.f32.mrf.mxu0  ;;  %v1611_v15 = vadd.f32 %v6659_v60, %v1473_v50 }
 0x202   : > { %10561 = vst [vmem:[#allocation92_spill] sm:$0xff] %v8494_v54  ;;  %v6644_v41 = vpop.f32.mrf.mxu1  ;;  %v1467_v54 = vadd.f32 %v1436_v22, %v1337_v34 }
 0x203   : > { %v6660_v16 = vpop.f32.mrf.mxu0 }
 0x204   : > { %v1455_v43 = vpop.f32.mrf.mxu1  ;;  %v1605_v19 = vadd.f32 %v1574_v17, %v1467_v54  ;;  %v1608_v17 = vadd.f32 %v6656_v51, %v1470_v9 }
 0x205   : > { %v8496_v42 = vpop.f32.mrf.mxu0 }
 0x206   : > { %10562 = vst [vmem:[#allocation93_spill] sm:$0xff] %v8496_v42  ;;  %v1050_v42 = vadd.f32 %v6596_v61, %v6580_v39 }
 0x207   : > { %v6671_v36 = vpop.f32.mrf.mxu1 }
 0x208   : > { %v8498_v28 = vpop.f32.mrf.mxu0  ;;  %v10565_v60 = vld [vmem:[#allocation91_spill] sm:$0xff] }
 0x209   : > { %10563 = vst [vmem:[#allocation94_spill] sm:$0xff] %v8498_v28  ;;  %v1728_v31 = vpop.f32.mrf.mxu1  ;;  %v1206_v28 = vadd.f32 %v6612_v24, %v1050_v42  ;;  %v1606_v24 = vadd.f32 %v1577_v63, %v1468_v20  ;;  %v10568_v57 = vld [vmem:[#allocation92_spill] sm:$0xff] }
 0x20a   : > { %v1866_v23 = vpop.f32.mrf.mxu0  ;;  %v1759_v18 = vadd.f32 %v1728_v31, %v1605_v19  ;;  %v1342_v31 = vadd.f32 %v8488_v58, %v1204_v2  ;;  %v5842_v58 = vld [vmem:[%s9913_s4] ss:$0 sm:$0xff] }
 0x20b   : > { %v6672_v3 = vpop.f32.mrf.mxu1  ;;  %v1344_v61 = vadd.f32 %v6628_v40, %v1206_v28  ;;  %v1341_v40 = vadd.f32 %v10564_v30, %v1203_v33  ;;  %v7127_v30 = vld [vmem:[%s9916_s7 + $0x48] sm:$0xff]  }
 0x20c   : > { %v6688_v4 = vpop.f32.mrf.mxu0  ;;  %v1897_v42 = vadd.f32 %v1866_v23, %v1759_v18  ;;  %v1762_v46 = vadd.f32 %v6672_v3, %v1608_v17  ;;  %v1472_v35 = vadd.f32 %v1455_v43, %v1342_v31 }
 0x20d   : > { %v1731_v56 = vpop.f32.mrf.mxu1  ;;  %v1474_v54 = vadd.f32 %v6644_v41, %v1344_v61  ;;  %v1761_v41 = vadd.f32 %v6671_v36, %v1607_v6  ;;  %v1471_v13 = vadd.f32 %v10565_v60, %v1341_v40  ;;  %v10566_v47 = vld [vmem:[#allocation93_spill] sm:$0xff]  ;;  %v7123_v6 = vld [vmem:[%s9916_s7 + $0x58] sm:$0xff]  }
 0x20e   : > { %v1869_v26 = vpop.f32.mrf.mxu0  ;;  %v1760_v55 = vadd.f32 %v1731_v56, %v1606_v24  ;;  %v1900_v10 = vadd.f32 %v6688_v4, %v1762_v46  ;;  %v1610_v34 = vadd.f32 %v10566_v47, %v1472_v35  ;;  %v7124_v46 = vld [vmem:[%s9916_s7 + $0x18] sm:$0xff]   ;;  %6333 = vmatprep.subr.bf16.mxu1 %v7123_v6  ;;  %v7128_v40 = vld [vmem:[%s9916_s7 + $0x8] sm:$0xff]   ;;  %v7130_v35 = vld [vmem:[%s9916_s7] sm:$0xff]  }
 0x20f   : > { %v6675_v11 = vpop.f32.mrf.mxu1  ;;  %v1612_v63 = vadd.f32 %v6660_v16, %v1474_v54  ;;  %v1609_v8 = vadd.f32 %v10568_v57, %v1471_v13  ;;  %6334 = vmatpush3.bf16.msra.mxu1 %v7124_v46  ;;  %v10578_v57 = vld [vmem:[#allocation85_spill] sm:$0xff] }
 0x210   : > { %v6691_v45 = vpop.f32.mrf.mxu0  ;;  %v1765_v62 = vadd.f32 %v6675_v11, %v1611_v15  ;;  %v1898_v48 = vadd.f32 %v1869_v26, %v1760_v55  ;;  %v10567_v43 = vld [vmem:[#allocation94_spill] sm:$0xff] }
 0x211   : > { %v1744_v1 = vpop.f32.mrf.mxu1  ;;  %v1899_v44 = vadd.f32 %v10567_v43, %v1761_v41  ;;  %v10576_v43 = vld [vmem:[#allocation84_spill] sm:$0xff] }
 0x212   : > { %v1882_v51 = vpop.f32.mrf.mxu0  ;;  %v1903_v56 = vadd.f32 %v6691_v45, %v1765_v62  ;;  %v1763_v19 = vadd.f32 %v1744_v1, %v1609_v8  ;;  %v7125_v62 = vld [vmem:[%s9916_s7 + $0x50] sm:$0xff]  }
 0x213   : > { %v6676_v49 = vpop.f32.mrf.mxu1  ;;  %6335 = vmatprep.subr.bf16.mxu1 %v7125_v62 }
 0x214   : > { %v1766_v5 = vadd.f32 %v6676_v49, %v1612_v63  ;;  %v6692_v36 = vpop.f32.mrf.mxu0  ;;  %v1901_v2 = vadd.f32 %v1882_v51, %v1763_v19  ;;  %v7129_v63 = vld [vmem:[%s9916_s7 + $0x40] sm:$0xff]  }
 0x215   : > { %v1747_v22 = vpop.f32.mrf.mxu1 }
 0x216   : > { %v1904_v39 = vadd.f32 %v6692_v36, %v1766_v5  ;;  %v1764_v25 = vadd.f32 %v1747_v22, %v1610_v34  ;;  %v1885_v50 = vpop.f32.mrf.mxu0  ;;  %v10575_v34 = vld [vmem:[#allocation83_spill] sm:$0xff] }
 0x218   : > { %v6703_v7 = vpop.f32.mrf.mxu1  ;;  %v1902_v26 = vadd.f32 %v1885_v50, %v1764_v25 }
 0x219   : > { %v2045_v12 = vadd.f32 %v6703_v7, %v1899_v44 }
 0x21a   : > { %v2012_v21 = vpop.f32.mrf.mxu1 }
 0x21b   : > { %v2043_v28 = vadd.f32 %v2012_v21, %v1897_v42  ;;  %v2059_v27 = vadd.f32 %v5842_v58, %v2045_v12 }
 0x21c   : > { %v6704_v37 = vpop.f32.mrf.mxu1 }
 0x21d   : > { %v2057_v11 = vadd.f32 %v5842_v58, %v2043_v28  ;;  %v2046_v3 = vadd.f32 %v6704_v37, %v1900_v10  ;;  %v2067_v1 = vmax.f32 %v2059_v27, 0.0  ;;  %v7126_v28 = vld [vmem:[%s9916_s7 + $0x10] sm:$0xff]   ;;  %v10572_v37 = vld [vmem:[#allocation13_spill] sm:$0xff] }
 0x21e   : > { %v2015_v23 = vpop.f32.mrf.mxu1  ;;  %6336 = vmatpush3.bf16.msra.mxu1 %v7126_v28  ;;  %v8546_v41 = vsub.s32 1, %v10572_v37  ;;  %v8552_v51 = vsub.s32 0, %v10572_v37  ;;  %v10652_v37 = vld [vmem:[#allocation32_spill] sm:$0xff] }
 0x21f   : > { %v2044_v14 = vadd.f32 %v2015_v23, %v1898_v48  ;;  %v2065_v53 = vmax.f32 %v2057_v11, 0.0  ;;  %v2060_v49 = vadd.f32 %v5842_v58, %v2046_v3  ;;  %6337 = vmatprep.subr.bf16.mxu1 %v7127_v30  ;;  %v2085_v48 = vld [vmem:[%s9915_s6] sm:$0x3]  ;;  %v10577_v3 = vld [vmem:[#allocation82_spill] sm:$0xff] }
 0x220   : > { %v6707_v16 = vpop.f32.mrf.mxu1  ;;  %10573 = vst [vmem:[#allocation90_spill] sm:$0xff] %v8546_v41  ;;  %10574 = vst [vmem:[#allocation91_spill] sm:$0xff] %v8552_v51  ;;  %v8555_v60 = vrot.slane %v2085_v48, %v8546_v41  ;;  %v8558_v13 = vrot.slane %v2085_v48, %v8552_v51  ;;  %v7243_v23 = vld [vmem:[%s9911_s2] sm:$0x7] }
 0x221   : > { %v2058_v52 = vadd.f32 %v5842_v58, %v2044_v14  ;;  %v2049_v0 = vadd.f32 %v6707_v16, %v1903_v56  ;;  %v2068_v22 = vmax.f32 %v2060_v49, 0.0  ;;  %v8564_v10 = vrot.slane %v7243_v23, %v8552_v51 }
 0x222   : > { %v2028_v38 = vpop.f32.mrf.mxu1  ;;  %6338 = vmatpush3.bf16.msra.mxu1 %v7128_v40  ;;  %v8567_v56 = vrot.slane %v7243_v23, %v8546_v41  ;;  %v10592_v23 = vld [vmem:[#allocation11_spill] sm:$0xff] }
 0x223   : > { %v2066_v4 = vmax.f32 %v2058_v52, 0.0  ;;  %v2063_v32 = vadd.f32 %v5842_v58, %v2049_v0  ;;  %v2047_v7 = vadd.f32 %v2028_v38, %v1901_v2  ;;  %v2074_v15 = vpack.c.bf16 %v2068_v22, %v2067_v1  ;;  %6339 = vmatprep.subr.bf16.mxu1 %v7129_v63 }
 0x224   : > { %v6708_v20 = vpop.f32.mrf.mxu1  ;;  %v652_v16 = vadd.f32 %v10575_v34, %v8567_v56  ;;  %v654_v44 = vadd.f32 %v10576_v43, %v8564_v10  ;;  %v650_v52 = vadd.f32 %v10577_v3, %v8564_v10  ;;  %v656_v8 = vadd.f32 %v10578_v57, %v8567_v56  ;;  %v10593_v34 = vld [vmem:[#allocation9_spill] sm:$0xff] }
 0x225   : > { %v2073_v29 = vpack.c.bf16 %v2066_v4, %v2065_v53  ;;  %v2050_v9 = vadd.f32 %v6708_v20, %v1904_v39  ;;  %v2071_v24 = vmax.f32 %v2063_v32, 0.0  ;;  %v2061_v55 = vadd.f32 %v5842_v58, %v2047_v7 }
 0x226   : > { %v2031_v18 = vpop.f32.mrf.mxu1  ;;  %6340 = vmatpush3.bf16.msra.mxu1 %v7130_v35 }
 0x227   : > { %v2064_v61 = vadd.f32 %v5842_v58, %v2050_v9  ;;  %5851 = vmatmul.mubr.msk.bf16.vlgmr.msra.gmra.mxu0 %vm10549_vm7, %v2073_v29  ;;  %v2048_v54 = vadd.f32 %v2031_v18, %v1902_v26  ;;  %v2069_v31 = vmax.f32 %v2061_v55, 0.0  ;;  %v10583_v26 = vld [vmem:[#allocation87_spill] sm:$0xff] }
 0x228   : > { %2191 = vmatprep.mubr.bf16.mxu0 %v10569_v59  ;;  %v662_v27 = vadd.f32 %v10583_v26, %v8567_v56 }
 0x229   : > { %v2072_v33 = vmax.f32 %v2064_v61, 0.0  ;;  %v2062_v42 = vadd.f32 %v5842_v58, %v2048_v54  ;;  %v10584_v61 = vld [vmem:[#allocation88_spill] sm:$0xff] }
 0x22a   : > { %v664_v2 = vadd.f32 %v10584_v61, %v8564_v10 }
 0x22b   : > { %v2076_v17 = vpack.c.bf16 %v2072_v33, %v2071_v24  ;;  %v2070_v45 = vmax.f32 %v2062_v42, 0.0  ;;  %v10585_v33 = vld [vmem:[#allocation86_spill] sm:$0xff] }
 0x22c   : > { %v660_v54 = vadd.f32 %v10585_v33, %v8564_v10  ;;  %v10600_v33 = vld [vmem:[#allocation16_spill] sm:$0xff] }
 0x22d   : > { %v2075_v21 = vpack.c.bf16 %v2070_v45, %v2069_v31 }
 0x22f   : > { %5852 = vmatmul.mubr.msk.bf16.gmra.mxu0 %vm10570_vm14, %v2074_v15  ;;  %vm10607_vm14 = vmmov %vm10571_vm3 }
 0x230   : > { %2201 = vmatprep.mubr.bf16.mxu0 %v10569_v59 }
 0x237   : > { %5853 = vmatmul.mubr.msk.bf16.gmra.mxu0 %vm10549_vm7, %v2075_v21 }
 0x238   : > { %2211 = vmatprep.mubr.bf16.mxu0 %v10569_v59 }
 0x23f   : > { %5854 = vmatmul.mubr.msk.bf16.gmra.mxu0 %vm10571_vm3, %v2076_v17  ;;  %v10586_v17 = vld [vmem:[#allocation89_spill] sm:$0xff] }
 0x240   : > { %v666_v15 = vadd.f32 %v10586_v17, %v8567_v56  ;;  %v10601_v17 = vld [vmem:[#allocation14_spill] sm:$0xff] }
 0x2e7   : > { %v2183_v5 = vpop.f32.mrf.mxu0 }
 0x2e8   : > { %v2184_v14 = vadd.f32 %v2183_v5, %v8558_v13  ;;  %v10591_v5 = vld [vmem:[#allocation10_spill] sm:$0xff] }
 0x2e9   : > { %v2185_v58 = vpop.f32.mrf.mxu0 }
 0x2ea   : > { %v2186_v11 = vadd.f32 %v2185_v58, %v8555_v60  ;;  %v8585_v12 = vadd.f32 %v2184_v14, %v650_v52  ;;  %v672_v58 = vadd.f32 %v10591_v5, %v8567_v56 }
 0x2eb   : > { %v2187_v47 = vpop.f32.mrf.mxu0 }
 0x2ec   : > { %v2188_v36 = vadd.f32 %v2187_v47, %v8558_v13  ;;  %v8580_v39 = vadd.f32 %v2186_v11, %v652_v16  ;;  %10581 = vst [vmem:[#allocation92_spill] sm:$0xff] %v8585_v12  ;;  %v10209_v9 = vmax.f32 %v8585_v12, 0.0  ;;  %v674_v11 = vadd.f32 %v10592_v23, %v8564_v10 }
 0x2ed   : > { %v2189_v0 = vpop.f32.mrf.mxu0  ;;  %v670_v16 = vadd.f32 %v10593_v34, %v8564_v10  ;;  %v7132_v34 = vld [vmem:[%s9918_s9 + $0x30] sm:$0xff]  }
 0x2ee   : > { %10579 = vst [vmem:[#allocation93_spill] sm:$0xff] %v8580_v39  ;;  %v8582_v38 = vadd.f32 %v2188_v36, %v654_v44  ;;  %v2190_v25 = vadd.f32 %v2189_v0, %v8555_v60  ;;  %v10211_v49 = vmax.f32 %v8580_v39, 0.0  ;;  %v10594_v36 = vld [vmem:[#allocation12_spill] sm:$0xff] }
 0x2ef   : > { %v2193_v53 = vpop.f32.mrf.mxu0  ;;  %v676_v3 = vadd.f32 %v10594_v36, %v8567_v56  ;;  %v7136_v36 = vld [vmem:[%s9918_s9 + $0x20] sm:$0xff]  }
 0x2f0   : > { %10580 = vst [vmem:[#allocation94_spill] sm:$0xff] %v8582_v38  ;;  %v8587_v4 = vadd.f32 %v2190_v25, %v656_v8  ;;  %v10210_v19 = vmax.f32 %v8582_v38, 0.0  ;;  %v2194_v50 = vadd.f32 %v2193_v53, %v8558_v13 }
 0x2f1   : > { %v2195_v20 = vpop.f32.mrf.mxu0 }
 0x2f2   : > { %10582 = vst [vmem:[#allocation83_spill] sm:$0xff] %v8587_v4  ;;  %v10208_v29 = vmax.f32 %v8587_v4, 0.0  ;;  %v2196_v32 = vadd.f32 %v2195_v20, %v8555_v60  ;;  %v2254_v1 = vpack.c.bf16 %v10210_v19, %v10209_v9  ;;  %v8617_v31 = vadd.f32 %v2194_v50, %v660_v54 }
 0x2f3   : > { %v2197_v18 = vpop.f32.mrf.mxu0  ;;  %v684_v54 = vadd.f32 %v10600_v33, %v8564_v10 }
 0x2f4   : > { %v2198_v22 = vadd.f32 %v2197_v18, %v8558_v13  ;;  %v2255_v24 = vpack.c.bf16 %v10208_v29, %v10211_v49  ;;  %v8612_v42 = vadd.f32 %v2196_v32, %v662_v27  ;;  %10589 = vst [vmem:[#allocation85_spill] sm:$0xff] %v8617_v31  ;;  %v10203_v63 = vmax.f32 %v8617_v31, 0.0 }
 0x2f5   : > { %v2199_v7 = vpop.f32.mrf.mxu0 }
 0x2f6   : > { %10587 = vst [vmem:[#allocation84_spill] sm:$0xff] %v8612_v42  ;;  %v8614_v55 = vadd.f32 %v2198_v22, %v664_v2  ;;  %v2200_v45 = vadd.f32 %v2199_v7, %v8555_v60  ;;  %2429 = vmatprep.mubr.bf16.mxu1 %v2255_v24  ;;  %v10207_v28 = vmax.f32 %v8612_v42, 0.0  ;;  %v10599_v22 = vld [vmem:[#allocation15_spill] sm:$0xff] }
 0x2f7   : > { %v2203_v21 = vpop.f32.mrf.mxu0  ;;  %2430 = vmatmul.mubr.bf16.vlgmr.msra.gmra.mxu1 %v2254_v1  ;;  %v682_v24 = vadd.f32 %v10599_v22, %v8567_v56 }
 0x2f8   : > { %10588 = vst [vmem:[#allocation82_spill] sm:$0xff] %v8614_v55  ;;  %v8619_v6 = vadd.f32 %v2200_v45, %v666_v15  ;;  %v10206_v46 = vmax.f32 %v8614_v55, 0.0  ;;  %v2204_v35 = vadd.f32 %v2203_v21, %v8558_v13  ;;  %v680_v15 = vadd.f32 %v10601_v17, %v8564_v10 }
 0x2f9   : > { %v2205_v62 = vpop.f32.mrf.mxu0 }
 0x2fa   : > { %10590 = vst [vmem:[#allocation87_spill] sm:$0xff] %v8619_v6  ;;  %v10202_v30 = vmax.f32 %v8619_v6, 0.0  ;;  %v2206_v40 = vadd.f32 %v2205_v62, %v8555_v60  ;;  %v2256_v44 = vpack.c.bf16 %v10206_v46, %v10203_v63  ;;  %v8649_v8 = vadd.f32 %v2204_v35, %v670_v16  ;;  %v10602_v62 = vld [vmem:[#allocation17_spill] sm:$0xff]  ;;  %v7133_v16 = vld [vmem:[%s9918_s9 + $0x58] sm:$0xff]  }
 0x2fb   : > { %v2207_v48 = vpop.f32.mrf.mxu0  ;;  %6741 = vmatprep.subr.bf16.mxu1 %v7133_v16  ;;  %v10645_v63 = vld [vmem:[#allocation40_spill] sm:$0xff] }
 0x2fc   : > { %v2208_v14 = vadd.f32 %v2207_v48, %v8558_v13  ;;  %v2257_v47 = vpack.c.bf16 %v10202_v30, %v10207_v28  ;;  %v8644_v52 = vadd.f32 %v2206_v40, %v672_v58  ;;  %10597 = vst [vmem:[#allocation89_spill] sm:$0xff] %v8649_v8  ;;  %v10199_v27 = vmax.f32 %v8649_v8, 0.0  ;;  %6742 = vmatpush3.bf16.msra.mxu1 %v7133_v16  ;;  %v10608_v16 = vld [vmem:[#allocation18_spill] sm:$0xff] }
 0x2fd   : > { %v2209_v43 = vpop.f32.mrf.mxu0  ;;  %v686_v40 = vadd.f32 %v10602_v62, %v8567_v56  ;;  %vm10609_vm7 = vnez %v10608_v16  ;;  %vm10646_vm12 = vnez %v10645_v63 }
 0x2fe   : > { %10595 = vst [vmem:[#allocation88_spill] sm:$0xff] %v8644_v52  ;;  %v8646_v0 = vadd.f32 %v2208_v14, %v674_v11  ;;  %v2210_v57 = vadd.f32 %v2209_v43, %v8555_v60  ;;  %2437 = vmatprep.mubr.bf16.mxu1 %v2257_v47  ;;  %v10201_v50 = vmax.f32 %v8644_v52, 0.0  ;;  %v7131_v47 = vld [vmem:[%s9918_s9 + $0x38] sm:$0xff]   ;;  %v7134_v43 = vld [vmem:[%s9918_s9 + $0x28] sm:$0xff]  }
 0x2ff   : > { %v2213_v25 = vpop.f32.mrf.mxu0  ;;  %2438 = vmatmul.mubr.bf16.gmra.mxu1 %v2256_v44  ;;  %6709 = vmatprep.subr.bf16.mxu0 %v7131_v47  ;;  %v7135_v44 = vld [vmem:[%s9918_s9 + $0x50] sm:$0xff]  }
 0x300   : > { %10596 = vst [vmem:[#allocation86_spill] sm:$0xff] %v8646_v0  ;;  %v8651_v53 = vadd.f32 %v2210_v57, %v676_v3  ;;  %v10200_v20 = vmax.f32 %v8646_v0, 0.0  ;;  %v2214_v61 = vadd.f32 %v2213_v25, %v8558_v13  ;;  %6710 = vmatpush3.bf16.msra.mxu0 %v7131_v47  ;;  %6743 = vmatprep.subr.bf16.mxu1 %v7135_v44  ;;  %v7137_v3 = vld [vmem:[%s9918_s9 + $0x48] sm:$0xff]   ;;  %v7138_v57 = vld [vmem:[%s9918_s9 + $0x40] sm:$0xff]   ;;  %v8724_v25 = vld [vmem:[%s9918_s9 + $0x18] sm:$0xff]  }
 0x301   : > { %v2215_v32 = vpop.f32.mrf.mxu0  ;;  %6711 = vmatprep.subr.bf16.mxu0 %v7132_v34  ;;  %6744 = vmatpush3.bf16.msra.mxu1 %v7135_v44 }
 0x302   : > { %10598 = vst [vmem:[#allocation10_spill] sm:$0xff] %v8651_v53  ;;  %v10198_v18 = vmax.f32 %v8651_v53, 0.0  ;;  %v2216_v26 = vadd.f32 %v2215_v32, %v8555_v60  ;;  %v2258_v21 = vpack.c.bf16 %v10200_v20, %v10199_v27  ;;  %v8681_v5 = vadd.f32 %v2214_v61, %v680_v15  ;;  %6745 = vmatprep.subr.bf16.mxu1 %v7137_v3  ;;  %v8730_v32 = vld [vmem:[%s9918_s9 + $0x98] sm:$0xff]   ;;  %v8736_v61 = vld [vmem:[%s9917_s8] ss:$0 sm:$0xff]  ;;  %v10639_v20 = vld [vmem:[#allocation22_spill] sm:$0xff] }
 0x303   : > { %v2217_v2 = vpop.f32.mrf.mxu0 }
 0x304   : > { %v2218_v1 = vadd.f32 %v2217_v2, %v8558_v13  ;;  %v2259_v7 = vpack.c.bf16 %v10198_v18, %v10201_v50  ;;  %v8676_v35 = vadd.f32 %v2216_v26, %v682_v24  ;;  %10605 = vst [vmem:[#allocation12_spill] sm:$0xff] %v8681_v5  ;;  %v10195_v56 = vmax.f32 %v8681_v5, 0.0  ;;  %6712 = vmatpush3.bf16.msra.mxu0 %v7132_v34  ;;  %v10643_v50 = vld [vmem:[#allocation35_spill] sm:$0xff] }
 0x305   : > { %v2219_v45 = vpop.f32.mrf.mxu0  ;;  %6713 = vmatprep.subr.bf16.mxu0 %v7134_v43  ;;  %6746 = vmatpush3.bf16.msra.mxu1 %v7137_v3 }
 0x306   : > { %10603 = vst [vmem:[#allocation11_spill] sm:$0xff] %v8676_v35  ;;  %v8678_v13 = vadd.f32 %v2218_v1, %v684_v54  ;;  %v2220_v48 = vadd.f32 %v2219_v45, %v8555_v60  ;;  %2445 = vmatprep.mubr.bf16.mxu1 %v2259_v7  ;;  %v10197_v23 = vmax.f32 %v8676_v35, 0.0  ;;  %6747 = vmatprep.subr.bf16.mxu1 %v7138_v57 }
 0x307   : > { %2446 = vmatmul.mubr.bf16.gmra.mxu1 %v2258_v21 }
 0x308   : > { %10604 = vst [vmem:[#allocation9_spill] sm:$0xff] %v8678_v13  ;;  %v8683_v10 = vadd.f32 %v2220_v48, %v686_v40  ;;  %v10196_v58 = vmax.f32 %v8678_v13, 0.0  ;;  %6714 = vmatpush3.bf16.msra.mxu0 %v7134_v43  ;;  %v2507_v48 = vld [vmem:[#allocation2 + $0x8] sm:$0xff] }
 0x309   : > { %6715 = vmatprep.subr.bf16.mxu0 %v7136_v36  ;;  %6748 = vmatpush3.bf16.msra.mxu1 %v7138_v57  ;;  %v2515_v43 = vsel %vm10609_vm7, %v2507_v48, 0.0  ;;  %v10610_v57 = vld [vmem:[#allocation20_spill] sm:$0xff]  ;;  %vm10613_vm7 = vmmov %vm10571_vm3 }
 0x30a   : > { %10606 = vst [vmem:[#allocation15_spill] sm:$0xff] %v8683_v10  ;;  %v10194_v11 = vmax.f32 %v8683_v10, 0.0  ;;  %v2260_v60 = vpack.c.bf16 %v10196_v58, %v10195_v56  ;;  %6773 = vmatprep.subr.bf16.mxu1 %v8730_v32  ;;  %vm10611_vm1 = vnez %v10610_v57  ;;  %v10631_v58 = vld [vmem:[#allocation29_spill] sm:$0xff] }
 0x30c   : > { %v2261_v14 = vpack.c.bf16 %v10194_v11, %v10197_v23  ;;  %6716 = vmatpush3.bf16.msra.mxu0 %v7136_v36 }
 0x30d   : > { %6725 = vmatprep.subr.bf16.mxu0 %v8724_v25 }
 0x30e   : > { %2453 = vmatprep.mubr.bf16.mxu1 %v2261_v14 }
 0x30f   : > { %2454 = vmatmul.mubr.bf16.gmra.mxu1 %v2260_v60 }
 0x3b7   : > { %v6341_v26 = vpop.f32.mrf.mxu1 }
 0x3b9   : > { %v6342_v2 = vpop.f32.mrf.mxu1 }
 0x3ba   : > { %v6343_v22 = vadd.f32 %v6342_v2, %v6341_v26 }
 0x3bb   : > { %v6344_v24 = vpop.f32.mrf.mxu1 }
 0x3bc   : > { %v2432_v33 = vadd.f32 %v6343_v22, %v8736_v61 }
 0x3bd   : > { %v6345_v54 = vpop.f32.mrf.mxu1 }
 0x3be   : > { %v2462_v1 = vmax.f32 %v2432_v33, 0.0  ;;  %v6346_v7 = vadd.f32 %v6345_v54, %v6344_v24 }
 0x3bf   : > { %v6347_v17 = vpop.f32.mrf.mxu1 }
 0x3c0   : > { %2471 = vst.msk [vmem:[#allocation2 + $0x10] sm:$0xff] %vm10571_vm3, %v2462_v1  ;;  %v2435_v15 = vadd.f32 %v6346_v7, %v8736_v61 }
 0x3c1   : > { %v6348_v45 = vpop.f32.mrf.mxu1 }
 0x3c2   : > { %v2463_v21 = vmax.f32 %v2435_v15, 0.0  ;;  %v6349_v62 = vadd.f32 %v6348_v45, %v6347_v17  ;;  %v10614_v15 = vld [vmem:[#allocation45_spill] sm:$0xff] }
 0x3c3   : > { %v6350_v40 = vpop.f32.mrf.mxu1 }
 0x3c4   : > { %2472 = vst.msk [vmem:[#allocation2 + $0x18] sm:$0xff] %vm10607_vm14, %v2463_v21  ;;  %v2440_v14 = vadd.f32 %v6349_v62, %v8736_v61  ;;  %vm10612_vm14 = vmmov %vm10571_vm3  ;;  %v10616_v21 = vld [vmem:[#allocation39_spill] sm:$0xff] }
 0x3c5   : > { %v6351_v60 = vpop.f32.mrf.mxu1 }
 0x3c6   : > { %v2464_v47 = vmax.f32 %v2440_v14, 0.0  ;;  %v6352_v34 = vadd.f32 %v6351_v60, %v6350_v40 }
 0x3c7   : > { %v6353_v44 = vpop.f32.mrf.mxu1  ;;  %v8745_v36 = vld [vmem:[#allocation2 + $0x10] sm:$0xff] }
 0x3c8   : > { %2473 = vst.msk [vmem:[#allocation2 + $0x20] sm:$0xff] %vm10571_vm3, %v2464_v47  ;;  %v2443_v3 = vadd.f32 %v6352_v34, %v8736_v61  ;;  %v2516_v26 = vsel %vm10611_vm1, %v8745_v36, 0.0  ;;  %v2738_v24 = vld [vmem:[#allocation2 + $0x9] sm:$0xff]  ;;  %vm10615_vm3 = vnez %v10614_v15  ;;  %vm10617_vm1 = vnez %v10616_v21 }
 0x3c9   : > { %v6354_v2 = vpop.f32.mrf.mxu1  ;;  %v2523_v22 = vpack.c.bf16 %v2516_v26, %v2515_v43  ;;  %v2746_v45 = vsel %vm10615_vm3, %v2738_v24, 0.0  ;;  %v8830_v18 = vld [vmem:[#allocation2 + $0xf] sm:$0xff] }
 0x3ca   : > { %v2465_v33 = vmax.f32 %v2443_v3, 0.0  ;;  %v6355_v54 = vadd.f32 %v6354_v2, %v6353_v44  ;;  %v10619_v3 = vld [vmem:[#allocation25_spill] sm:$0xff]  ;;  %v10621_v2 = vld [vmem:[#allocation23_spill] sm:$0xff] }
 0x3cb   : > { %v6356_v1 = vpop.f32.mrf.mxu1  ;;  %6717 = vmatprep.mubr.msk.bf16.mxu0 %vm10612_vm14, %v2523_v22  ;;  %v8753_v7 = vld [vmem:[#allocation2 + $0x11] sm:$0xff]  ;;  %vm10618_vm14 = vmmov %vm10613_vm7  ;;  %vm10620_vm3 = vnez %v10619_v3 }
 0x3cc   : > { %2474 = vst.msk [vmem:[#allocation2 + $0x28] sm:$0xff] %vm10613_vm7, %v2465_v33  ;;  %v2448_v17 = vadd.f32 %v6355_v54, %v8736_v61  ;;  %v2747_v62 = vsel %vm10617_vm1, %v8753_v7, 0.0  ;;  %v8762_v14 = vld [vmem:[#allocation2 + $0x18] sm:$0xff]  ;;  %vm10622_vm1 = vnez %v10621_v2 }
 0x3cd   : > { %v6357_v40 = vpop.f32.mrf.mxu1  ;;  %v2754_v48 = vpack.c.bf16 %v2747_v62, %v2746_v45  ;;  %v2517_v26 = vsel %vm10620_vm3, %v8762_v14, 0.0 }
 0x3ce   : > { %v2466_v60 = vmax.f32 %v2448_v17, 0.0  ;;  %v6358_v47 = vadd.f32 %v6357_v40, %v6356_v1  ;;  %v7140_v1 = vld [vmem:[%s9918_s9 + $0x10] sm:$0xff]  }
 0x3cf   : > { %v6359_v34 = vpop.f32.mrf.mxu1  ;;  %6749 = vmatprep.mubr.msk.bf16.mxu1 %vm10618_vm14, %v2754_v48  ;;  %v8765_v43 = vld [vmem:[#allocation2 + $0x20] sm:$0xff]  ;;  %vm10623_vm14 = vmmov %vm10613_vm7 }
 0x3d0   : > { %2475 = vst.msk [vmem:[#allocation2 + $0x30] sm:$0xff] %vm10613_vm7, %v2466_v60  ;;  %v2451_v44 = vadd.f32 %v6358_v47, %v8736_v61  ;;  %v2518_v22 = vsel %vm10622_vm1, %v8765_v43, 0.0  ;;  %v8775_v54 = vld [vmem:[#allocation2 + $0x19] sm:$0xff] }
 0x3d1   : > { %v6360_v24 = vpop.f32.mrf.mxu1  ;;  %v2524_v33 = vpack.c.bf16 %v2518_v22, %v2517_v26  ;;  %v10624_v60 = vld [vmem:[#allocation48_spill] sm:$0xff] }
 0x3d2   : > { %v2467_v17 = vmax.f32 %v2451_v44, 0.0  ;;  %v6361_v45 = vadd.f32 %v6360_v24, %v6359_v34  ;;  %vm10625_vm1 = vnez %v10624_v60  ;;  %v10626_v26 = vld [vmem:[#allocation52_spill] sm:$0xff] }
 0x3d3   : > { %v6362_v62 = vpop.f32.mrf.mxu1  ;;  %6718 = vmatmul.mubr.msk.bf16.vlgmr.msra.gmra.mxu0 %vm10623_vm14, %v2524_v33  ;;  %v8781_v40 = vld [vmem:[#allocation2 + $0x21] sm:$0xff]  ;;  %v2748_v47 = vsel %vm10625_vm1, %v8775_v54, 0.0  ;;  %vm10627_vm3 = vnez %v10626_v26  ;;  %vm10628_vm14 = vmmov %vm10613_vm7  ;;  %vm10632_vm1 = vnez %v10631_v58 }
 0x3d4   : > { %2476 = vst.msk [vmem:[#allocation2 + $0x38] sm:$0xff] %vm10613_vm7, %v2467_v17  ;;  %v2456_v48 = vadd.f32 %v6361_v45, %v8736_v61  ;;  %v2749_v22 = vsel %vm10627_vm3, %v8781_v40, 0.0  ;;  %6726 = vmatpush3.bf16.msra.mxu0 %v8724_v25  ;;  %v8792_v24 = vld [vmem:[#allocation2 + $0x28] sm:$0xff]  ;;  %v7143_v17 = vld [vmem:[%s9918_s9 + $0x90] sm:$0xff]   ;;  %v8862_v19 = vld [vmem:[#allocation2 + $0x1f] sm:$0xff] }
 0x3d5   : > { %v6363_v34 = vpop.f32.mrf.mxu1  ;;  %v2755_v44 = vpack.c.bf16 %v2749_v22, %v2748_v47  ;;  %6727 = vmatprep.subr.bf16.mxu0 %v7140_v1  ;;  %v7142_v33 = vld [vmem:[%s9918_s9 + $0x8] sm:$0xff]   ;;  %v10629_v47 = vld [vmem:[#allocation28_spill] sm:$0xff] }
 0x3d6   : > { %v2468_v45 = vmax.f32 %v2456_v48, 0.0  ;;  %v6364_v11 = vadd.f32 %v6363_v34, %v6362_v62  ;;  %vm10630_vm3 = vnez %v10629_v47  ;;  %v8878_v63 = vld [vmem:[#allocation2 + $0x27] sm:$0xff] }
 0x3d7   : > { %6750 = vmatmul.mubr.msk.bf16.vlgmr.msra.gmra.mxu1 %vm10628_vm14, %v2755_v44  ;;  %v8801_v56 = vld [vmem:[#allocation2 + $0x30] sm:$0xff]  ;;  %v2519_v22 = vsel %vm10630_vm3, %v8792_v24, 0.0  ;;  %vm10633_vm14 = vmmov %vm10613_vm7 }
 0x3d8   : > { %2477 = vst.msk [vmem:[#allocation2 + $0x40] sm:$0xff] %vm10613_vm7, %v2468_v45  ;;  %v2459_v25 = vadd.f32 %v6364_v11, %v8736_v61  ;;  %v2520_v23 = vsel %vm10632_vm1, %v8801_v56, 0.0  ;;  %6728 = vmatpush3.bf16.msra.mxu0 %v7140_v1  ;;  %6774 = vmatpush3.bf16.msra.mxu1 %v8730_v32  ;;  %v8812_v48 = vld [vmem:[#allocation2 + $0x29] sm:$0xff]  ;;  %v7144_v11 = vld [vmem:[%s9918_s9] sm:$0xff]   ;;  %v10636_v1 = vld [vmem:[#allocation51_spill] sm:$0xff] }
 0x3d9   : > { %v2525_v62 = vpack.c.bf16 %v2520_v23, %v2519_v22  ;;  %6729 = vmatprep.subr.bf16.mxu0 %v7142_v33  ;;  %6775 = vmatprep.subr.bf16.mxu1 %v7143_v17  ;;  %v7145_v61 = vld [vmem:[%s9918_s9 + $0x88] sm:$0xff]   ;;  %vm10637_vm3 = vnez %v10636_v1 }
 0x3da   : > { %v2469_v34 = vmax.f32 %v2459_v25, 0.0  ;;  %v10634_v23 = vld [vmem:[#allocation53_spill] sm:$0xff]  ;;  %v8871_v49 = vld [vmem:[#allocation2 + $0x2f] sm:$0xff] }
 0x3db   : > { %6721 = vmatprep.mubr.msk.bf16.mxu0 %vm10633_vm14, %v2525_v62  ;;  %v8821_v44 = vld [vmem:[#allocation2 + $0x31] sm:$0xff]  ;;  %vm10635_vm1 = vnez %v10634_v23  ;;  %v2479_v22 = vld [vmem:[#allocation2 + $0x7] sm:$0xff]  ;;  %vm10638_vm14 = vmmov %vm10613_vm7 }
 0x3dc   : > { %2478 = vst.msk [vmem:[#allocation2 + $0x48] sm:$0xff] %vm10613_vm7, %v2469_v34  ;;  %v2750_v32 = vsel %vm10635_vm1, %v8812_v48, 0.0  ;;  %v2751_v45 = vsel %vm10637_vm3, %v8821_v44, 0.0  ;;  %6730 = vmatpush3.bf16.msra.mxu0 %v7142_v33  ;;  %6776 = vmatpush3.bf16.msra.mxu1 %v7143_v17  ;;  %v8832_v27 = vld [vmem:[#allocation2 + $0x38] sm:$0xff]  ;;  %v7147_v34 = vld [vmem:[%s9918_s9 + $0x80] sm:$0xff]   ;;  %vm10640_vm7 = vnez %v10639_v20  ;;  %vm10644_vm1 = vnez %v10643_v50 }
 0x3dd   : > { %v2756_v25 = vpack.c.bf16 %v2751_v45, %v2750_v32  ;;  %6731 = vmatprep.subr.bf16.mxu0 %v7144_v11  ;;  %6777 = vmatprep.subr.bf16.mxu1 %v7145_v61  ;;  %v7146_v62 = vld [vmem:[%s9918_s9 + $0x78] sm:$0xff]   ;;  %v2487_v17 = vsel %vm10640_vm7, %v2479_v22, 0.0  ;;  %v2521_v30 = vsel %vm10644_vm1, %v8832_v27, 0.0  ;;  %vm10647_vm1 = vmmov %vm10638_vm14 }
 0x3de   : > { %v10641_v32 = vld [vmem:[#allocation24_spill] sm:$0xff] }
 0x3df   : > { %6753 = vmatprep.mubr.msk.bf16.mxu1 %vm10638_vm14, %v2756_v25  ;;  %v8841_v33 = vld [vmem:[#allocation2 + $0x40] sm:$0xff]  ;;  %vm10642_vm3 = vnez %v10641_v32  ;;  %v7149_v22 = vld [vmem:[%s9918_s9 + $0xd8] sm:$0xff]  }
 0x3e0   : > { %v2488_v45 = vsel %vm10642_vm3, %v8830_v18, 0.0  ;;  %v2522_v46 = vsel %vm10646_vm12, %v8841_v33, 0.0  ;;  %6732 = vmatpush3.bf16.msra.mxu0 %v7144_v11  ;;  %6778 = vmatpush3.bf16.msra.mxu1 %v7145_v61  ;;  %v8854_v28 = vld [vmem:[#allocation2 + $0x39] sm:$0xff] }
 0x3e1   : > { %v2526_v25 = vpack.c.bf16 %v2522_v46, %v2521_v30  ;;  %6757 = vmatprep.subr.bf16.mxu0 %v7146_v62  ;;  %6779 = vmatprep.subr.bf16.mxu1 %v7147_v34  ;;  %v2495_v29 = vpack.c.bf16 %v2488_v45, %v2487_v17  ;;  %v10648_v11 = vld [vmem:[#allocation56_spill] sm:$0xff]  ;;  %v10650_v30 = vld [vmem:[#allocation57_spill] sm:$0xff] }
 0x3e2   : > { %vm10649_vm12 = vnez %v10648_v11  ;;  %vm10651_vm3 = vnez %v10650_v30  ;;  %v2481_v45 = vld [vmem:[#allocation2 + $0x17] sm:$0xff] }
 0x3e3   : > { %6722 = vmatmul.mubr.msk.bf16.gmra.mxu0 %vm10638_vm14, %v2526_v25  ;;  %v8860_v9 = vld [vmem:[#allocation2 + $0x41] sm:$0xff]  ;;  %v2752_v46 = vsel %vm10649_vm12, %v8854_v28, 0.0  ;;  %v3022_v25 = vpack.c.bf16 %v8762_v14, %v8745_v36  ;;  %vm10656_vm12 = vmmov %vm10638_vm14  ;;  %v10659_v36 = vld [vmem:[#allocation34_spill] sm:$0xff] }
 0x3e4   : > { %6733 = vmatprep.mubr.msk.bf16.mxu0 %vm10647_vm1, %v2495_v29  ;;  %v2753_v61 = vsel %vm10651_vm3, %v8860_v9, 0.0  ;;  %6780 = vmatpush3.bf16.msra.mxu1 %v7147_v34  ;;  %vm10653_vm1 = vnez %v10652_v37  ;;  %v10654_v30 = vld [vmem:[#allocation36_spill] sm:$0xff]  ;;  %v10657_v34 = vld [vmem:[#allocation31_spill] sm:$0xff]  ;;  %vm10660_vm5 = vnez %v10659_v36  ;;  %v3024_v36 = vpack.c.bf16 %v8832_v27, %v8801_v56  ;;  %v8922_v23 = vld [vmem:[#allocation2 + $0x48] sm:$0xff] }
 0x3e5   : > { %v2757_v17 = vpack.c.bf16 %v2753_v61, %v2752_v46  ;;  %6805 = vmatprep.subr.bf16.mxu1 %v7149_v22  ;;  %v2490_v29 = vsel %vm10653_vm1, %v8862_v19, 0.0  ;;  %vm10655_vm3 = vnez %v10654_v30  ;;  %vm10658_vm7 = vnez %v10657_v34  ;;  %v7148_v37 = vld [vmem:[%s9918_s9 + $0x70] sm:$0xff]  }
 0x3e6   : > { %v2492_v11 = vsel %vm10655_vm3, %v8871_v49, 0.0  ;;  %v2489_v46 = vsel %vm10658_vm7, %v2481_v45, 0.0  ;;  %v2491_v50 = vsel %vm10660_vm5, %v8878_v63, 0.0  ;;  %vm10662_vm3 = vmmov %vm10656_vm12  ;;  %v10668_v34 = vld [vmem:[#allocation42_spill] sm:$0xff] }
 0x3e7   : > { %6754 = vmatmul.mubr.msk.bf16.gmra.mxu1 %vm10638_vm14, %v2757_v17  ;;  %v2496_v61 = vpack.c.bf16 %v2490_v29, %v2489_v46  ;;  %v2497_v32 = vpack.c.bf16 %v2492_v11, %v2491_v50  ;;  %vm10661_vm14 = vmmov %vm10656_vm12  ;;  %v8894_v17 = vld [vmem:[#allocation2 + $0x3f] sm:$0xff]  ;;  %v2485_v29 = vld [vmem:[#allocation2 + $0x37] sm:$0xff]  ;;  %vm10669_vm7 = vnez %v10668_v34 }
 0x3e8   : > { %6781 = vmatprep.mubr.msk.bf16.mxu1 %vm10656_vm12, %v3022_v25  ;;  %v3023_v25 = vpack.c.bf16 %v8792_v24, %v8765_v43  ;;  %v7150_v46 = vld [vmem:[%s9918_s9 + $0x68] sm:$0xff]   ;;  %v10663_v50 = vld [vmem:[#allocation44_spill] sm:$0xff]  ;;  %vm10667_vm5 = vmmov %vm10662_vm3  ;;  %v2493_v30 = vsel %vm10669_vm7, %v2485_v29, 0.0 }
 0x3e9   : > { %vm10664_vm12 = vnez %v10663_v50  ;;  %v10670_v50 = vld [vmem:[#allocation19_spill] sm:$0xff] }
 0x3ea   : > { %v2494_v11 = vsel %vm10664_vm12, %v8894_v17, 0.0  ;;  %vm10671_vm12 = vnez %v10670_v50 }
 0x3eb   : > { %6734 = vmatmul.mubr.msk.bf16.vlgmr.msra.gmra.mxu0 %vm10661_vm14, %v2496_v61  ;;  %v2498_v20 = vpack.c.bf16 %v2494_v11, %v2493_v30  ;;  %v2884_v1 = vsel %vm10671_vm12, %v8830_v18, 0.0  ;;  %v3025_v18 = vpack.c.bf16 %v8922_v23, %v8841_v33  ;;  %v7154_v11 = vld [vmem:[%s9918_s9 + $0xb8] sm:$0xff]  }
 0x3ec   : > { %6737 = vmatprep.mubr.msk.bf16.mxu0 %vm10662_vm3, %v2497_v32  ;;  %6758 = vmatpush3.bf16.msra.mxu0 %v7146_v62  ;;  %v7151_v62 = vld [vmem:[%s9918_s9 + $0xd0] sm:$0xff]   ;;  %v10665_v32 = vld [vmem:[#allocation21_spill] sm:$0xff] }
 0x3ed   : > { %6759 = vmatprep.subr.bf16.mxu0 %v7148_v37  ;;  %vm10666_vm14 = vnez %v10665_v32 }
 0x3ee   : > { %v2885_v61 = vsel %vm10666_vm14, %v2481_v45, 0.0 }
 0x3ef   : > { %6782 = vmatmul.mubr.msk.bf16.vlgmr.msra.gmra.mxu1 %vm10662_vm3, %v3023_v25  ;;  %v7152_v25 = vld [vmem:[%s9918_s9 + $0x60] sm:$0xff]   ;;  %v2892_v32 = vpack.c.bf16 %v2885_v61, %v2884_v1  ;;  %v10678_v61 = vld [vmem:[#allocation27_spill] sm:$0xff] }
 0x3f0   : > { %6760 = vmatpush3.bf16.msra.mxu0 %v7148_v37  ;;  %6785 = vmatprep.mubr.msk.bf16.mxu1 %vm10667_vm5, %v3024_v36  ;;  %v7153_v37 = vld [vmem:[%s9918_s9 + $0xc8] sm:$0xff]   ;;  %vm10672_vm5 = vmmov %vm10662_vm3  ;;  %v10676_v1 = vld [vmem:[#allocation60_spill] sm:$0xff] }
 0x3f1   : > { %6806 = vmatpush3.bf16.msra.mxu1 %v7149_v22  ;;  %6761 = vmatprep.subr.bf16.mxu0 %v7150_v46  ;;  %v10673_v22 = vld [vmem:[#allocation61_spill] sm:$0xff]  ;;  %vm10675_vm12 = vmmov %vm10672_vm5  ;;  %vm10677_vm7 = vnez %v10676_v1 }
 0x3f2   : > { %6807 = vmatprep.subr.bf16.mxu1 %v7151_v62  ;;  %vm10674_vm3 = vnez %v10673_v22  ;;  %v3290_v36 = vsel %vm10677_vm7, %v2481_v45, 0.0  ;;  %vm10682_vm7 = vmmov %vm10675_vm12  ;;  %v10683_v45 = vld [vmem:[#allocation26_spill] sm:$0xff] }
 0x3f3   : > { %6738 = vmatmul.mubr.msk.bf16.gmra.mxu0 %vm10672_vm5, %v2498_v20  ;;  %v3291_v30 = vsel %vm10674_vm3, %v8862_v19, 0.0  ;;  %vm10679_vm5 = vnez %v10678_v61  ;;  %vm10684_vm14 = vnez %v10683_v45  ;;  %v10685_v61 = vld [vmem:[#allocation30_spill] sm:$0xff] }
 0x3f4   : > { %6762 = vmatpush3.bf16.msra.mxu0 %v7150_v46  ;;  %6765 = vmatprep.mubr.msk.bf16.mxu0 %vm10675_vm12, %v2892_v32  ;;  %v3298_v20 = vpack.c.bf16 %v3291_v30, %v3290_v36  ;;  %v2887_v46 = vsel %vm10679_vm5, %v8878_v63, 0.0  ;;  %v10680_v32 = vld [vmem:[#allocation33_spill] sm:$0xff]  ;;  %v2886_v30 = vsel %vm10684_vm14, %v8862_v19, 0.0  ;;  %vm10686_vm5 = vnez %v10685_v61  ;;  %vm10689_vm14 = vmmov %vm10682_vm7 }
 0x3f5   : > { %6808 = vmatpush3.bf16.msra.mxu1 %v7151_v62  ;;  %6763 = vmatprep.subr.bf16.mxu0 %v7152_v25  ;;  %v7155_v62 = vld [vmem:[%s9918_s9 + $0xc0] sm:$0xff]   ;;  %vm10681_vm3 = vnez %v10680_v32  ;;  %v2893_v36 = vpack.c.bf16 %v2887_v46, %v2886_v30  ;;  %v2888_v22 = vsel %vm10686_vm5, %v8871_v49, 0.0 }
 0x3f6   : > { %6809 = vmatprep.subr.bf16.mxu1 %v7153_v37  ;;  %v2889_v1 = vsel %vm10681_vm3, %v2485_v29, 0.0  ;;  %v10687_v19 = vld [vmem:[#allocation65_spill] sm:$0xff]  ;;  %v10690_v46 = vld [vmem:[#allocation68_spill] sm:$0xff] }
 0x3f7   : > { %6786 = vmatmul.mubr.msk.bf16.gmra.mxu1 %vm10675_vm12, %v3025_v18  ;;  %v7156_v18 = vld [vmem:[%s9918_s9 + $0xb0] sm:$0xff]   ;;  %v2894_v32 = vpack.c.bf16 %v2889_v1, %v2888_v22  ;;  %vm10688_vm12 = vnez %v10687_v19  ;;  %vm10691_vm5 = vnez %v10690_v46  ;;  %v10692_v22 = vld [vmem:[#allocation69_spill] sm:$0xff] }
 0x3f8   : > { %6764 = vmatpush3.bf16.msra.mxu0 %v7152_v25  ;;  %6813 = vmatprep.mubr.msk.bf16.mxu1 %vm10682_vm7, %v3298_v20  ;;  %v7157_v25 = vld [vmem:[%s9918_s9 + $0x118] sm:$0xff]   ;;  %v2883_v20 = vld [vmem:[#allocation2 + $0x47] sm:$0xff]  ;;  %v3295_v30 = vsel %vm10691_vm5, %v8894_v17, 0.0  ;;  %vm10693_vm3 = vnez %v10692_v22 }
 0x3f9   : > { %6810 = vmatpush3.bf16.msra.mxu1 %v7153_v37  ;;  %6789 = vmatprep.subr.bf16.mxu0 %v7154_v11  ;;  %v3293_v37 = vsel %vm10688_vm12, %v8871_v49, 0.0  ;;  %v3292_v1 = vsel %vm10693_vm3, %v8878_v63, 0.0  ;;  %v2891_v45 = vsel %vm10440_vm9, %v2883_v20, 0.0  ;;  %v3153_v63 = vsel %vm10439_vm10, %v8775_v54, 0.0  ;;  %vm10700_vm9 = vmmov %vm10689_vm14 }
 0x3fa   : > { %6811 = vmatprep.subr.bf16.mxu1 %v7155_v62  ;;  %v3299_v61 = vpack.c.bf16 %v3293_v37, %v3292_v1  ;;  %v3289_v1 = vld [vmem:[#allocation2 + $0x4f] sm:$0xff] }
 0x3fb   : > { %6766 = vmatmul.mubr.msk.bf16.vlgmr.msra.gmra.mxu0 %vm10682_vm7, %v2893_v36  ;;  %v10694_v36 = vld [vmem:[#allocation67_spill] sm:$0xff] }
 0x3fc   : > { %6769 = vmatprep.mubr.msk.bf16.mxu0 %vm10689_vm14, %v2894_v32  ;;  %6790 = vmatpush3.bf16.msra.mxu0 %v7154_v11  ;;  %vm10695_vm7 = vnez %v10694_v36  ;;  %v7158_v11 = vld [vmem:[%s9918_s9 + $0xa8] sm:$0xff]  }
 0x3fd   : > { %6812 = vmatpush3.bf16.msra.mxu1 %v7155_v62  ;;  %6791 = vmatprep.subr.bf16.mxu0 %v7156_v18  ;;  %v3294_v19 = vsel %vm10695_vm7, %v2485_v29, 0.0  ;;  %v7159_v62 = vld [vmem:[%s9918_s9 + $0x110] sm:$0xff]  }
 0x3fe   : > { %6837 = vmatprep.subr.bf16.mxu1 %v7157_v25  ;;  %v3300_v32 = vpack.c.bf16 %v3295_v30, %v3294_v19  ;;  %v10698_v29 = vld [vmem:[#allocation38_spill] sm:$0xff]  ;;  %v3152_v19 = vsel %vm7827_vm15, %v8753_v7, 0.0  ;;  %v7160_v30 = vld [vmem:[%s9918_s9 + $0xa0] sm:$0xff]   ;;  %v10708_v7 = vld [vmem:[#allocation75_spill] sm:$0xff] }
 0x3ff   : > { %vm10699_vm7 = vnez %v10698_v29  ;;  %vm10709_vm10 = vnez %v10708_v7  ;;  %v3156_v7 = vsel %vm10527_vm11, %v8821_v44, 0.0 }
 0x400   : > { %6814 = vmatmul.mubr.msk.bf16.vlgmr.msra.gmra.mxu1 %vm10689_vm14, %v3299_v61  ;;  %6792 = vmatpush3.bf16.msra.mxu0 %v7156_v18  ;;  %v2890_v37 = vsel %vm10699_vm7, %v8894_v17, 0.0  ;;  %v3160_v61 = vpack.c.bf16 %v3153_v63, %v3152_v19  ;;  %v7161_v17 = vld [vmem:[%s9918_s9 + $0x108] sm:$0xff]   ;;  %vm10702_vm14 = vmmov %vm10700_vm9  ;;  %v10703_v18 = vld [vmem:[#allocation72_spill] sm:$0xff] }
 0x401   : > { %6817 = vmatprep.mubr.msk.bf16.mxu1 %vm10700_vm9, %v3300_v32  ;;  %6838 = vmatpush3.bf16.msra.mxu1 %v7157_v25  ;;  %v2895_v49 = vpack.c.bf16 %v2891_v45, %v2890_v37  ;;  %vm10704_vm9 = vnez %v10703_v18  ;;  %v10705_v25 = vld [vmem:[#allocation73_spill] sm:$0xff]  ;;  %vm10707_vm15 = vmmov %vm10702_vm14  ;;  %v3567_v37 = vsel %vm10709_vm10, %v8781_v40, 0.0  ;;  %v10710_v19 = vld [vmem:[#allocation74_spill] sm:$0xff] }
 0x402   : > { %6793 = vmatprep.subr.bf16.mxu0 %v7158_v11  ;;  %6839 = vmatprep.subr.bf16.mxu1 %v7159_v62  ;;  %v3296_v45 = vsel %vm10704_vm9, %v2883_v20, 0.0  ;;  %vm10706_vm7 = vnez %v10705_v25  ;;  %v3155_v25 = vsel %vm10523_vm0, %v8812_v48, 0.0  ;;  %vm10715_vm0 = vmmov %vm10707_vm15 }
 0x403   : > { %6770 = vmatmul.mubr.msk.bf16.gmra.mxu0 %vm10702_vm14, %v2895_v49  ;;  %v3297_v32 = vsel %vm10706_vm7, %v3289_v1, 0.0  ;;  %vm10711_vm14 = vnez %v10710_v19  ;;  %v7163_v1 = vld [vmem:[%s9918_s9 + $0x100] sm:$0xff]  }
 0x404   : > { %6794 = vmatpush3.bf16.msra.mxu0 %v7158_v11  ;;  %6797 = vmatprep.mubr.msk.bf16.mxu0 %vm10707_vm15, %v3160_v61  ;;  %v3301_v63 = vpack.c.bf16 %v3297_v32, %v3296_v45  ;;  %v3566_v49 = vsel %vm10711_vm14, %v8775_v54, 0.0  ;;  %v7162_v11 = vld [vmem:[%s9918_s9 + $0xf8] sm:$0xff]   ;;  %v3157_v45 = vsel %vm10536_vm13, %v8854_v28, 0.0  ;;  %v3154_v32 = vsel %vm10532_vm6, %v8781_v40, 0.0 }
 0x405   : > { %6840 = vmatpush3.bf16.msra.mxu1 %v7159_v62  ;;  %6795 = vmatprep.subr.bf16.mxu0 %v7160_v30  ;;  %v3574_v62 = vpack.c.bf16 %v3567_v37, %v3566_v49  ;;  %v3161_v20 = vpack.c.bf16 %v3155_v25, %v3154_v32  ;;  %v7164_v37 = vld [vmem:[%s9918_s9 + $0xf0] sm:$0xff]   ;;  %v3569_v40 = vsel %vm8349_vm2, %v8821_v44, 0.0  ;;  %v10723_v44 = vld [vmem:[#allocation77_spill] sm:$0xff] }
 0x406   : > { %6841 = vmatprep.subr.bf16.mxu1 %v7161_v17  ;;  %v10719_v25 = vld [vmem:[#allocation79_spill] sm:$0xff] }
 0x407   : > { %vm10720_vm11 = vnez %v10719_v25 }
 0x408   : > { %6818 = vmatmul.mubr.msk.bf16.gmra.mxu1 %vm10707_vm15, %v3301_v63  ;;  %6796 = vmatpush3.bf16.msra.mxu0 %v7160_v30  ;;  %v3162_v63 = vpack.c.bf16 %v3157_v45, %v3156_v7  ;;  %vm10717_vm15 = vmmov %vm10715_vm0  ;;  %v3571_v49 = vsel %vm10720_vm11, %v8860_v9, 0.0 }
 0x409   : > { %6842 = vmatpush3.bf16.msra.mxu1 %v7161_v17  ;;  %6845 = vmatprep.mubr.msk.bf16.mxu1 %vm10715_vm0, %v3574_v62  ;;  %v3151_v17 = vld [vmem:[#allocation2 + $0x49] sm:$0xff] }
 0x40a   : > { %6821 = vmatprep.subr.bf16.mxu0 %v7162_v11  ;;  %6843 = vmatprep.subr.bf16.mxu1 %v7163_v1  ;;  %v10721_v62 = vld [vmem:[#allocation78_spill] sm:$0xff] }
 0x40b   : > { %6798 = vmatmul.mubr.msk.bf16.vlgmr.msra.gmra.mxu0 %vm10717_vm15, %v3161_v20  ;;  %vm10722_vm6 = vnez %v10721_v62  ;;  %v7165_v20 = vld [vmem:[%s9918_s9 + $0xe8] sm:$0xff]   ;;  %vm10724_vm15 = vnez %v10723_v44  ;;  %v10727_v62 = vld [vmem:[#allocation59_spill] sm:$0xff] }
 0x40c   : > { %6801 = vmatprep.mubr.msk.bf16.mxu0 %vm10715_vm0, %v3162_v63  ;;  %6822 = vmatpush3.bf16.msra.mxu0 %v7162_v11  ;;  %v3568_v7 = vsel %vm10722_vm6, %v8812_v48, 0.0  ;;  %v3570_v32 = vsel %vm10724_vm15, %v8854_v28, 0.0  ;;  %v3158_v63 = vsel %vm10540_vm4, %v8860_v9, 0.0  ;;  %vm10728_vm0 = vnez %v10727_v62  ;;  %v10731_v28 = vld [vmem:[#allocation58_spill] sm:$0xff] }
 0x40d   : > { %6844 = vmatpush3.bf16.msra.mxu1 %v7163_v1  ;;  %6823 = vmatprep.subr.bf16.mxu0 %v7164_v37  ;;  %v3575_v45 = vpack.c.bf16 %v3569_v40, %v3568_v7  ;;  %v3159_v1 = vsel %vm10545_vm8, %v3151_v17, 0.0  ;;  %v3576_v30 = vpack.c.bf16 %v3571_v49, %v3570_v32  ;;  %v3429_v48 = vsel %vm10728_vm0, %v8765_v43, 0.0  ;;  %v3565_v40 = vld [vmem:[#allocation2 + $0x51] sm:$0xff]  ;;  %v7166_v49 = vld [vmem:[%s9918_s9 + $0xe0] sm:$0xff]  }
 0x40e   : > { %vm10729_vm6 = vcmask 523264   ;;  %v3163_v7 = vpack.c.bf16 %v3159_v1, %v3158_v63  ;;  %vm10732_vm15 = vnez %v10731_v28  ;;  %v10734_v43 = vld [vmem:[#allocation80_spill] sm:$0xff]  ;;  %v10741_v1 = vld [vmem:[#allocation66_spill] sm:$0xff] }
 0x40f   : > { %vm10730_vm11 = vmmov %vm10729_vm6  ;;  %v3428_v9 = vsel %vm10732_vm15, %v8762_v14, 0.0  ;;  %vm10735_vm4 = vnez %v10734_v43  ;;  %v10739_v14 = vld [vmem:[#allocation62_spill] sm:$0xff]  ;;  %vm10742_vm13 = vnez %v10741_v1 }
 0x410   : > { %6846 = vmatmul.mubr.msk.bf16.vlgmr.msra.gmra.mxu1 %vm10729_vm6, %v3575_v45  ;;  %6824 = vmatpush3.bf16.msra.mxu0 %v7164_v37  ;;  %v3436_v32 = vpack.c.bf16 %v3429_v48, %v3428_v9  ;;  %vm10733_vm8 = vmmov %vm10729_vm6  ;;  %v3572_v45 = vsel %vm10735_vm4, %v3151_v17, 0.0  ;;  %v10736_v37 = vld [vmem:[#allocation81_spill] sm:$0xff]  ;;  %vm10740_vm2 = vnez %v10739_v14  ;;  %v3433_v48 = vsel %vm10742_vm13, %v8841_v33, 0.0  ;;  %v10743_v17 = vld [vmem:[#allocation64_spill] sm:$0xff] }
 0x411   : > { %6849 = vmatprep.mubr.msk.bf16.mxu1 %vm10730_vm11, %v3576_v30  ;;  %6825 = vmatprep.subr.bf16.mxu0 %v7165_v20  ;;  %vm10737_vm6 = vnez %v10736_v37  ;;  %vm10738_vm11 = vmmov %vm10733_vm8  ;;  %v3431_v63 = vsel %vm10740_vm2, %v8801_v56, 0.0  ;;  %vm10744_vm4 = vnez %v10743_v17  ;;  %v3427_v56 = vld [vmem:[#allocation2 + $0x50] sm:$0xff] }
 0x412   : > { %v3573_v25 = vsel %vm10737_vm6, %v3565_v40, 0.0  ;;  %v3430_v40 = vsel %vm10744_vm4, %v8792_v24, 0.0  ;;  %vm10747_vm6 = vmmov %vm10733_vm8  ;;  %v10749_v33 = vld [vmem:[#allocation70_spill] sm:$0xff]  ;;  %v7169_v24 = vld [vmem:[%s9920_s11 + $0x34] ss:$8 sps:$4 sm:$0xff]  }
 0x413   : > { %6802 = vmatmul.mubr.msk.bf16.gmra.mxu0 %vm10733_vm8, %v3163_v7  ;;  %v3577_v30 = vpack.c.bf16 %v3573_v25, %v3572_v45  ;;  %v10745_v7 = vld [vmem:[#allocation63_spill] sm:$0xff]  ;;  %vm10748_vm14 = vmmov %vm10747_vm6  ;;  %vm10750_vm13 = vnez %v10749_v33 }
 0x414   : > { %6826 = vmatpush3.bf16.msra.mxu0 %v7165_v20  ;;  %6829 = vmatprep.mubr.msk.bf16.mxu0 %vm10738_vm11, %v3436_v32  ;;  %v3437_v20 = vpack.c.bf16 %v3431_v63, %v3430_v40  ;;  %vm10746_vm11 = vnez %v10745_v7  ;;  %v3434_v32 = vsel %vm10750_vm13, %v8922_v23, 0.0  ;;  %vm10753_vm10 = vmmov %vm10747_vm6  ;;  %v7170_v23 = vld [vmem:[%s9920_s11 + $0x20] ss:$8 sps:$4 sm:$0xff]   ;;  %v7172_v63 = vld [vmem:[%s9920_s11 + $0x24] ss:$8 sps:$4 sm:$0xff]  }
 0x415   : > { %6827 = vmatprep.subr.bf16.mxu0 %v7166_v49  ;;  %v3432_v25 = vsel %vm10746_vm11, %v8832_v27, 0.0  ;;  %v7167_v27 = vld [vmem:[%s9920_s11 + $0x30] ss:$8 sps:$4 sm:$0xff]  }
 0x416   : > { %v3438_v9 = vpack.c.bf16 %v3433_v48, %v3432_v25  ;;  %v7175_v48 = vld [vmem:[%s9920_s11 + $0x14] ss:$8 sps:$4 sm:$0xff]   ;;  %v7173_v40 = vld [vmem:[%s9920_s11 + $0x10] ss:$8 sps:$4 sm:$0xff]   ;;  %v7178_v25 = vld [vmem:[%s9920_s11 + $0x4] ss:$8 sps:$4 sm:$0xff]  }
 0x418   : > { %6850 = vmatmul.mubr.msk.bf16.gmra.mxu1 %vm10733_vm8, %v3577_v30  ;;  %6828 = vmatpush3.bf16.msra.mxu0 %v7166_v49  ;;  %v10751_v49 = vld [vmem:[#allocation71_spill] sm:$0xff] }
 0x419   : > { %vm10752_vm8 = vnez %v10751_v49  ;;  %3802 = vmatprep.subr.bf16.mxu0 %v7169_v24  ;;  %v7185_v24 = vld [vmem:[%s9916_s7 + $0xe0] sm:$0xff]  }
 0x41a   : > { %v3435_v45 = vsel %vm10752_vm8, %v3427_v56, 0.0  ;;  %v7180_v56 = vld [vmem:[%s9916_s7 + $0xb8] sm:$0xff]  }
 0x41b   : > { %6830 = vmatmul.mubr.msk.bf16.vlgmr.msra.gmra.mxu0 %vm10747_vm6, %v3437_v20  ;;  %v3439_v30 = vpack.c.bf16 %v3435_v45, %v3434_v32  ;;  %v7176_v20 = vld [vmem:[%s9920_s11] ss:$8 sps:$4 sm:$0xff]   ;;  %v7181_v32 = vld [vmem:[%s9916_s7 + $0xf0] sm:$0xff]  }
 0x41c   : > { %6833 = vmatprep.mubr.msk.bf16.mxu0 %vm10748_vm14, %v3438_v9  ;;  %3803 = vmatpush1.bf16.msra.mxu0 %v7167_v27  ;;  %v7179_v9 = vld [vmem:[%s9916_s7 + $0xf8] sm:$0xff]   ;;  %v7182_v45 = vld [vmem:[%s9916_s7 + $0xb0] sm:$0xff]   ;;  %v7184_v27 = vld [vmem:[%s9916_s7 + $0xa8] sm:$0xff]  }
 0x41d   : > { %3804 = vmatprep.subr.bf16.mxu0 %v7172_v63  ;;  %6437 = vmatprep.subr.bf16.mxu1 %v7179_v9  ;;  %vm10766_vm14 = vmmov %vm10747_vm6 }
 0x41e   : > { %6438 = vmatpush3.bf16.msra.mxu1 %v7180_v56 }
 0x41f   : > { %6439 = vmatprep.subr.bf16.mxu1 %v7181_v32 }
 0x420   : > { %3805 = vmatpush1.bf16.msra.mxu0 %v7170_v23  ;;  %v7186_v23 = vld [vmem:[%s9916_s7 + $0xa0] sm:$0xff]  }
 0x421   : > { %3806 = vmatprep.subr.bf16.mxu0 %v7175_v48 }
 0x422   : > { %6440 = vmatpush3.bf16.msra.mxu1 %v7182_v45 }
 0x423   : > { %6834 = vmatmul.mubr.msk.bf16.gmra.mxu0 %vm10753_vm10, %v3439_v30  ;;  %v7183_v30 = vld [vmem:[%s9916_s7 + $0xe8] sm:$0xff]   ;;  %vm10764_vm10 = vmmov %vm10747_vm6 }
 0x424   : > { %3826 = vmatprep.mubr.bf16.mxu0 %v10569_v59  ;;  %3807 = vmatpush1.bf16.msra.mxu0 %v7173_v40 }
 0x425   : > { %3808 = vmatprep.subr.bf16.mxu0 %v7178_v25  ;;  %6441 = vmatprep.subr.bf16.mxu1 %v7183_v30 }
 0x426   : > { %6442 = vmatpush3.bf16.msra.mxu1 %v7184_v27 }
 0x427   : > { %6443 = vmatprep.subr.bf16.mxu1 %v7185_v24 }
 0x428   : > { %3809 = vmatpush1.bf16.msra.mxu0 %v7176_v20 }
 0x42a   : > { %6444 = vmatpush3.bf16.msra.mxu1 %v7186_v23 }
 0x493   : > { %v6719_v63 = vpop.f32.mrf.mxu0 }
 0x495   : > { %v2606_v48 = vpop.f32.mrf.mxu0 }
 0x497   : > { %v6751_v40 = vpop.f32.mrf.mxu1  ;;  %v6720_v20 = vpop.f32.mrf.mxu0 }
 0x499   : > { %v2837_v25 = vpop.f32.mrf.mxu1  ;;  %v2609_v9 = vpop.f32.mrf.mxu0 }
 0x49b   : > { %v6752_v56 = vpop.f32.mrf.mxu1 }
 0x49d   : > { %v2840_v45 = vpop.f32.mrf.mxu1 }
 0x4a3   : > { %v6723_v32 = vpop.f32.mrf.mxu0 }
 0x4a5   : > { %v9143_v30 = vpop.f32.mrf.mxu0 }
 0x4a7   : > { %v6724_v49 = vpop.f32.mrf.mxu0  ;;  %v6755_v33 = vpop.f32.mrf.mxu1 }
 0x4a9   : > { %v2625_v27 = vpop.f32.mrf.mxu0  ;;  %v9145_v7 = vpop.f32.mrf.mxu1 }
 0x4ab   : > { %v6735_v1 = vpop.f32.mrf.mxu0  ;;  %v9147_v37 = vpop.f32.mrf.mxu1 }
 0x4ac   : > { %v2716_v55 = vadd.f32 %v6735_v1, %v6719_v63 }
 0x4ad   : > { %v2707_v24 = vpop.f32.mrf.mxu0  ;;  %v9149_v23 = vpop.f32.mrf.mxu1 }
 0x4ae   : > { %v2708_v13 = vadd.f32 %v2707_v24, %v2606_v48  ;;  %v2870_v59 = vadd.f32 %v6751_v40, %v2716_v55 }
 0x4af   : > { %v6736_v43 = vpop.f32.mrf.mxu0  ;;  %v9151_v11 = vpop.f32.mrf.mxu1 }
 0x4b0   : > { %v2719_v52 = vadd.f32 %v6736_v43, %v6720_v20  ;;  %v2868_v31 = vadd.f32 %v2837_v25, %v2708_v13 }
 0x4b1   : > { %v2710_v44 = vpop.f32.mrf.mxu0  ;;  %v3105_v19 = vpop.f32.mrf.mxu1 }
 0x4b2   : > { %v2711_v6 = vadd.f32 %v2710_v44, %v2609_v9  ;;  %v2871_v51 = vadd.f32 %v6752_v56, %v2719_v52 }
 0x4b3   : > { %v6739_v54 = vpop.f32.mrf.mxu0  ;;  %v6784_v61 = vpop.f32.mrf.mxu1 }
 0x4b4   : > { %v2732_v12 = vadd.f32 %v6739_v54, %v6723_v32  ;;  %v2869_v41 = vadd.f32 %v2840_v45, %v2711_v6 }
 0x4b5   : > { %v2723_v18 = vpop.f32.mrf.mxu0  ;;  %v3108_v36 = vpop.f32.mrf.mxu1 }
 0x4b6   : > { %v2724_v20 = vadd.f32 %v2723_v18, %v9143_v30 }
 0x4b7   : > { %v6740_v29 = vpop.f32.mrf.mxu0  ;;  %v6787_v22 = vpop.f32.mrf.mxu1 }
 0x4b9   : > { %v2726_v46 = vpop.f32.mrf.mxu0  ;;  %v9153_v50 = vpop.f32.mrf.mxu1 }
 0x4ba   : > { %10754 = vst [vmem:[#allocation16_spill] sm:$0xff] %v9153_v50  ;;  %v2874_v50 = vadd.f32 %v6755_v33, %v2732_v12  ;;  %v2727_v43 = vadd.f32 %v2726_v46, %v2625_v27 }
 0x4bb   : > { %v6767_v34 = vpop.f32.mrf.mxu0  ;;  %v9155_v17 = vpop.f32.mrf.mxu1 }
 0x4bc   : > { %v3008_v44 = vadd.f32 %v6767_v34, %v2870_v59  ;;  %v2873_v6 = vadd.f32 %v9149_v23, %v2727_v43 }
 0x4bd   : > { %v2975_v14 = vpop.f32.mrf.mxu0  ;;  %v9157_v58 = vpop.f32.mrf.mxu1 }
 0x4be   : > { %v3006_v38 = vadd.f32 %v2975_v14, %v2868_v31 }
 0x4bf   : > { %v6768_v47 = vpop.f32.mrf.mxu0 }
 0x4c0   : > { %v9159_v28 = vpop.f32.mrf.mxu1 }
 0x4c1   : > { %v2978_v62 = vpop.f32.mrf.mxu0 }
 0x4c2   : > { %v3381_v26 = vpop.f32.mrf.mxu1 }
 0x4c3   : > { %v6771_v60 = vpop.f32.mrf.mxu0 }
 0x4c4   : > { %v6816_v2 = vpop.f32.mrf.mxu1  ;;  %v3012_v1 = vadd.f32 %v6771_v60, %v2874_v50  ;;  %v2872_v60 = vadd.f32 %v9145_v7, %v2724_v20 }
 0x4c5   : > { %v2991_v3 = vpop.f32.mrf.mxu0 }
 0x4c6   : > { %v3384_v21 = vpop.f32.mrf.mxu1 }
 0x4c7   : > { %v6772_v15 = vpop.f32.mrf.mxu0 }
 0x4c8   : > { %v9161_v57 = vpop.f32.mrf.mxu1 }
 0x4c9   : > { %10755 = vst [vmem:[#allocation14_spill] sm:$0xff] %v9161_v57  ;;  %v2994_v16 = vpop.f32.mrf.mxu0  ;;  %v2735_v57 = vadd.f32 %v6740_v29, %v6724_v49 }
 0x4ca   : > { %v9163_v10 = vpop.f32.mrf.mxu1 }
 0x4cb   : > { %10756 = vst [vmem:[#allocation17_spill] sm:$0xff] %v9163_v10  ;;  %v6799_v5 = vpop.f32.mrf.mxu0  ;;  %v3009_v10 = vadd.f32 %v6768_v47, %v2871_v51  ;;  %v2875_v55 = vadd.f32 %v9147_v37, %v2735_v57  ;;  %v3142_v47 = vadd.f32 %v6787_v22, %v3012_v1 }
 0x4cc   : > { %v9165_v35 = vpop.f32.mrf.mxu1 }
 0x4cd   : > { %10757 = vst [vmem:[#allocation95_spill] sm:$0xff] %v9165_v35  ;;  %v3243_v53 = vpop.f32.mrf.mxu0  ;;  %v3007_v35 = vadd.f32 %v2978_v62, %v2869_v41  ;;  %v3139_v14 = vadd.f32 %v6784_v61, %v3009_v10  ;;  %v3138_v41 = vadd.f32 %v9151_v11, %v3008_v44 }
 0x4ce   : > { %v9167_v8 = vpop.f32.mrf.mxu1 }
 0x4cf   : > { %10758 = vst [vmem:[#allocation96_spill] sm:$0xff] %v9167_v8  ;;  %v6800_v0 = vpop.f32.mrf.mxu0  ;;  %v3136_v8 = vadd.f32 %v3105_v19, %v3006_v38  ;;  %v3137_v52 = vadd.f32 %v3108_v36, %v3007_v35  ;;  %v3276_v46 = vadd.f32 %v6799_v5, %v3138_v41  ;;  %v3010_v36 = vadd.f32 %v2991_v3, %v2872_v60  ;;  %v10760_v5 = vld [vmem:[#allocation16_spill] sm:$0xff] }
 0x4d0   : > { %v9169_v42 = vpop.f32.mrf.mxu1  ;;  %v3277_v38 = vadd.f32 %v6800_v0, %v3139_v14  ;;  %v10759_v62 = vld [vmem:[#allocation14_spill] sm:$0xff] }
 0x4d1   : > { %v3246_v4 = vpop.f32.mrf.mxu0  ;;  %v3274_v63 = vadd.f32 %v3243_v53, %v3136_v8  ;;  %v3013_v8 = vadd.f32 %v6772_v15, %v2875_v55  ;;  %v3011_v53 = vadd.f32 %v2994_v16, %v2873_v6  ;;  %v3414_v22 = vadd.f32 %v9159_v28, %v3276_v46 }
 0x4d2   : > { %v3657_v48 = vpop.f32.mrf.mxu1  ;;  %v3275_v12 = vadd.f32 %v3246_v4, %v3137_v52  ;;  %v3415_v18 = vadd.f32 %v6816_v2, %v3277_v38  ;;  %v10763_v14 = vld [vmem:[#allocation17_spill] sm:$0xff]  ;;  %v10765_v38 = vmov 0  }
 0x4d3   : > { %v6803_v39 = vpop.f32.mrf.mxu0  ;;  %v3412_v59 = vadd.f32 %v3381_v26, %v3274_v63  ;;  %v3143_v61 = vadd.f32 %v9155_v17, %v3013_v8  ;;  %v3141_v4 = vadd.f32 %v9157_v58, %v3011_v53 }
 0x4d4   : > { %v6848_v54 = vpop.f32.mrf.mxu1  ;;  %v3280_v10 = vadd.f32 %v6803_v39, %v3142_v47  ;;  %v3413_v19 = vadd.f32 %v3384_v21, %v3275_v12  ;;  %v3140_v39 = vadd.f32 %v10760_v5, %v3010_v36  ;;  %v6008_v21 = vld [vmem:[%s9919_s10] ss:$0 sm:$0xff]  ;;  %v10761_v32 = vld [vmem:[#allocation95_spill] sm:$0xff] }
 0x4d5   : > { %v3259_v24 = vpop.f32.mrf.mxu0 }
 0x4d6   : > { %v3660_v34 = vpop.f32.mrf.mxu1  ;;  %v3418_v11 = vadd.f32 %v10759_v62, %v3280_v10  ;;  %v3278_v28 = vadd.f32 %v3259_v24, %v3140_v39  ;;  %v10762_v43 = vld [vmem:[#allocation96_spill] sm:$0xff] }
 0x4d7   : > { %v6804_v13 = vpop.f32.mrf.mxu0 }
 0x4d8   : > { %v6851_v0 = vpop.f32.mrf.mxu1  ;;  %v3281_v37 = vadd.f32 %v6804_v13, %v3143_v61  ;;  %v3416_v52 = vadd.f32 %v10763_v14, %v3278_v28  ;;  %v7190_v61 = vld [vmem:[%s9916_s7 + $0x90] sm:$0xff]  }
 0x4d9   : > { %v3262_v31 = vpop.f32.mrf.mxu0 }
 0x4da   : > { %v3279_v3 = vadd.f32 %v3262_v31, %v3141_v4  ;;  %v3673_v49 = vpop.f32.mrf.mxu1  ;;  %v3419_v45 = vadd.f32 %v10761_v32, %v3281_v37  ;;  %v7192_v4 = vld [vmem:[%s9916_s7 + $0x88] sm:$0xff]  }
 0x4db   : > { %v6831_v51 = vpop.f32.mrf.mxu0 }
 0x4dc   : > { %v3552_v17 = vadd.f32 %v6831_v51, %v3414_v22  ;;  %v3417_v44 = vadd.f32 %v10762_v43, %v3279_v3  ;;  %v6852_v13 = vpop.f32.mrf.mxu1  ;;  %v7194_v22 = vld [vmem:[%s9916_s7 + $0x80] sm:$0xff]  }
 0x4dd   : > { %v3519_v50 = vpop.f32.mrf.mxu0 }
 0x4de   : > { %v3550_v35 = vadd.f32 %v3519_v50, %v3412_v59  ;;  %v3690_v27 = vadd.f32 %v9169_v42, %v3552_v17  ;;  %v3676_v51 = vpop.f32.mrf.mxu1 }
 0x4df   : > { %v6832_v57 = vpop.f32.mrf.mxu0 }
 0x4e0   : > { %v3688_v29 = vadd.f32 %v3657_v48, %v3550_v35  ;;  %v3553_v15 = vadd.f32 %v6832_v57, %v3415_v18  ;;  %v3704_v6 = vadd.f32 %v6008_v21, %v3690_v27  ;;  %v7188_v18 = vld [vmem:[%s9916_s7 + $0x98] sm:$0xff]  }
 0x4e1   : > { %v3522_v26 = vpop.f32.mrf.mxu0  ;;  %v10779_v27 = vld [vmem:[#allocation83_spill] sm:$0xff] }
 0x4e2   : > { %v3551_v16 = vadd.f32 %v3522_v26, %v3413_v19  ;;  %v3702_v7 = vadd.f32 %v6008_v21, %v3688_v29  ;;  %v3691_v25 = vadd.f32 %v6848_v54, %v3553_v15  ;;  %v3712_v8 = vmax.f32 %v3704_v6, 0.0  ;;  %v7187_v29 = vld [vmem:[%s9916_s7 + $0xd8] sm:$0xff]   ;;  %v7189_v19 = vld [vmem:[%s9916_s7 + $0xd0] sm:$0xff]   ;;  %v7193_v26 = vld [vmem:[%s9916_s7 + $0xc0] sm:$0xff]  }
 0x4e3   : > { %v6835_v2 = vpop.f32.mrf.mxu0  ;;  %6445 = vmatprep.subr.bf16.mxu1 %v7187_v29  ;;  %v3730_v15 = vld [vmem:[%s9921_s12] sm:$0x3] }
 0x4e4   : > { %v3689_v33 = vadd.f32 %v3660_v34, %v3551_v16  ;;  %v3556_v58 = vadd.f32 %v6835_v2, %v3418_v11  ;;  %v3710_v23 = vmax.f32 %v3702_v7, 0.0  ;;  %v3705_v20 = vadd.f32 %v6008_v21, %v3691_v25  ;;  %6446 = vmatpush3.bf16.msra.mxu1 %v7188_v18  ;;  %v10768_v16 = vld [vmem:[#allocation90_spill] sm:$0xff]  ;;  %v10769_v11 = vld [vmem:[#allocation91_spill] sm:$0xff]  ;;  %v10782_v6 = vld [vmem:[#allocation84_spill] sm:$0xff] }
 0x4e5   : > { %v3535_v40 = vpop.f32.mrf.mxu0  ;;  %6447 = vmatprep.subr.bf16.mxu1 %v7189_v19  ;;  %v9223_v62 = vrot.slane %v3730_v15, %v10768_v16  ;;  %v3735_v5 = vrot.slane %v3730_v15, %v10769_v11 }
 0x4e6   : > { %v3703_v9 = vadd.f32 %v6008_v21, %v3689_v33  ;;  %v3694_v56 = vadd.f32 %v6851_v0, %v3556_v58  ;;  %v3554_v41 = vadd.f32 %v3535_v40, %v3416_v52  ;;  %v3713_v12 = vmax.f32 %v3705_v20, 0.0  ;;  %v7191_v0 = vld [vmem:[%s9916_s7 + $0xc8] sm:$0xff]  }
 0x4e7   : > { %v6836_v30 = vpop.f32.mrf.mxu0  ;;  %v10770_v33 = vld [vmem:[#allocation93_spill] sm:$0xff]  ;;  %v10773_v40 = vld [vmem:[#allocation94_spill] sm:$0xff] }
 0x4e8   : > { %v3711_v48 = vmax.f32 %v3703_v9, 0.0  ;;  %v3557_v1 = vadd.f32 %v6836_v30, %v3419_v45  ;;  %v3708_v54 = vadd.f32 %v6008_v21, %v3694_v56  ;;  %v3692_v53 = vadd.f32 %v3673_v49, %v3554_v41  ;;  %6448 = vmatpush3.bf16.msra.mxu1 %v7190_v61  ;;  %v10776_v56 = vld [vmem:[#allocation92_spill] sm:$0xff] }
 0x4e9   : > { %v3538_v63 = vpop.f32.mrf.mxu0  ;;  %v3719_v50 = vpack.c.bf16 %v3713_v12, %v3712_v8  ;;  %6449 = vmatprep.subr.bf16.mxu1 %v7191_v0  ;;  %v10771_v58 = vmax.f32 %v10770_v33, 0.0  ;;  %v10774_v28 = vmax.f32 %v10773_v40, 0.0  ;;  %v10777_v32 = vmax.f32 %v10776_v56, 0.0  ;;  %v10800_v33 = vld [vmem:[#allocation89_spill] sm:$0xff] }
 0x4ea   : > { %v3718_v31 = vpack.c.bf16 %v3711_v48, %v3710_v23  ;;  %v3555_v24 = vadd.f32 %v3538_v63, %v3417_v44  ;;  %v3695_v55 = vadd.f32 %v6852_v13, %v3557_v1  ;;  %v3716_v59 = vmax.f32 %v3708_v54, 0.0 }
 0x4eb   : > { %v3706_v10 = vadd.f32 %v6008_v21, %v3692_v53  ;;  %v10780_v23 = vmax.f32 %v10779_v27, 0.0  ;;  %v10783_v41 = vmax.f32 %v10782_v6, 0.0 }
 0x4ec   : > { %6017 = vmatmul.mubr.msk.bf16.vlgmr.msra.gmra.mxu0 %vm10764_vm10, %v3718_v31  ;;  %v3709_v42 = vadd.f32 %v6008_v21, %v3695_v55  ;;  %v3693_v47 = vadd.f32 %v3676_v51, %v3555_v24  ;;  %vm10767_vm10 = vmmov %vm10747_vm6  ;;  %6450 = vmatpush3.bf16.msra.mxu1 %v7192_v4 }
 0x4ed   : > { %3836 = vmatprep.mubr.bf16.mxu0 %v10765_v38  ;;  %v3714_v36 = vmax.f32 %v3706_v10, 0.0  ;;  %6451 = vmatprep.subr.bf16.mxu1 %v7193_v26 }
 0x4ee   : > { %v3717_v60 = vmax.f32 %v3709_v42, 0.0  ;;  %v3707_v46 = vadd.f32 %v6008_v21, %v3693_v47  ;;  %v10785_v42 = vld [vmem:[#allocation82_spill] sm:$0xff] }
 0x4ef   : > { %v10786_v12 = vmax.f32 %v10785_v42, 0.0 }
 0x4f0   : > { %v3721_v34 = vpack.c.bf16 %v3717_v60, %v3716_v59  ;;  %v3715_v35 = vmax.f32 %v3707_v46, 0.0  ;;  %6452 = vmatpush3.bf16.msra.mxu1 %v7194_v22  ;;  %v10788_v60 = vld [vmem:[#allocation85_spill] sm:$0xff] }
 0x4f1   : > { %v10789_v8 = vmax.f32 %v10788_v60, 0.0 }
 0x4f2   : > { %v3720_v57 = vpack.c.bf16 %v3715_v35, %v3714_v36 }
 0x4f4   : > { %6018 = vmatmul.mubr.msk.bf16.gmra.mxu0 %vm10766_vm14, %v3719_v50  ;;  %v10791_v50 = vld [vmem:[#allocation87_spill] sm:$0xff]  ;;  %vm10818_vm14 = vmmov %vm10747_vm6 }
 0x4f5   : > { %3846 = vmatprep.mubr.bf16.mxu0 %v10765_v38  ;;  %v10792_v46 = vmax.f32 %v10791_v50, 0.0 }
 0x4fc   : > { %6019 = vmatmul.mubr.msk.bf16.gmra.mxu0 %vm10747_vm6, %v3720_v57 }
 0x4fd   : > { %3856 = vmatprep.mubr.bf16.mxu0 %v10765_v38 }
 0x504   : > { %6020 = vmatmul.mubr.msk.bf16.gmra.mxu0 %vm10767_vm10, %v3721_v34 }
 0x5ac   : > { %v3828_v39 = vpop.f32.mrf.mxu0 }
 0x5ad   : > { %v3829_v21 = vadd.f32 %v3828_v39, %v3735_v5  ;;  %v10794_v39 = vld [vmem:[#allocation88_spill] sm:$0xff] }
 0x5ae   : > { %v3830_v37 = vpop.f32.mrf.mxu0 }
 0x5af   : > { %v3831_v3 = vadd.f32 %v3830_v37, %v9223_v62  ;;  %v9238_v45 = vadd.f32 %v3829_v21, %v10777_v32  ;;  %v10795_v37 = vmax.f32 %v10794_v39, 0.0  ;;  %v10797_v21 = vld [vmem:[#allocation86_spill] sm:$0xff]  ;;  %v7195_v39 = vld [vmem:[%s9918_s9 + $0x158] sm:$0xff]  }
 0x5b0   : > { %v3832_v2 = vpop.f32.mrf.mxu0  ;;  %6853 = vmatprep.subr.bf16.mxu0 %v7195_v39 }
 0x5b1   : > { %v3833_v17 = vadd.f32 %v3832_v2, %v3735_v5  ;;  %v9229_v49 = vadd.f32 %v3831_v3, %v10771_v58  ;;  %10778 = vst [vmem:[#allocation95_spill] sm:$0xff] %v9238_v45  ;;  %v10260_v20 = vmax.f32 %v9238_v45, 0.0  ;;  %v10798_v2 = vmax.f32 %v10797_v21, 0.0  ;;  %6854 = vmatpush3.bf16.msra.mxu0 %v7195_v39  ;;  %v7197_v21 = vld [vmem:[%s9918_s9 + $0x178] sm:$0xff]  }
 0x5b2   : > { %v3834_v7 = vpop.f32.mrf.mxu0  ;;  %v10801_v58 = vmax.f32 %v10800_v33, 0.0  ;;  %6885 = vmatprep.subr.bf16.mxu1 %v7197_v21  ;;  %v7200_v33 = vld [vmem:[%s9918_s9 + $0x140] sm:$0xff]  }
 0x5b3   : > { %10772 = vst [vmem:[#allocation14_spill] sm:$0xff] %v9229_v49  ;;  %v9233_v25 = vadd.f32 %v3833_v17, %v10774_v28  ;;  %v3835_v9 = vadd.f32 %v3834_v7, %v9223_v62  ;;  %v10257_v13 = vmax.f32 %v9229_v49, 0.0 }
 0x5b4   : > { %v3838_v30 = vpop.f32.mrf.mxu0 }
 0x5b5   : > { %10775 = vst [vmem:[#allocation16_spill] sm:$0xff] %v9233_v25  ;;  %v9242_v48 = vadd.f32 %v3835_v9, %v10780_v23  ;;  %v10261_v43 = vmax.f32 %v9233_v25, 0.0  ;;  %v3839_v31 = vadd.f32 %v3838_v30, %v3735_v5  ;;  %v10803_v9 = vld [vmem:[#allocation10_spill] sm:$0xff] }
 0x5b6   : > { %v3840_v44 = vpop.f32.mrf.mxu0  ;;  %v10804_v56 = vmax.f32 %v10803_v9, 0.0  ;;  %v9373_v9 = vld [vmem:[%s9918_s9 + $0x138] sm:$0xff]  }
 0x5b7   : > { %10781 = vst [vmem:[#allocation96_spill] sm:$0xff] %v9242_v48  ;;  %v10259_v1 = vmax.f32 %v9242_v48, 0.0  ;;  %v3841_v63 = vadd.f32 %v3840_v44, %v9223_v62  ;;  %v3899_v54 = vpack.c.bf16 %v10261_v43, %v10260_v20  ;;  %v9268_v53 = vadd.f32 %v3839_v31, %v10789_v8 }
 0x5b8   : > { %v3842_v14 = vpop.f32.mrf.mxu0 }
 0x5b9   : > { %v3843_v52 = vadd.f32 %v3842_v14, %v3735_v5  ;;  %v3900_v24 = vpack.c.bf16 %v10259_v1, %v10257_v13  ;;  %v9259_v51 = vadd.f32 %v3841_v63, %v10783_v41  ;;  %10790 = vst [vmem:[#allocation94_spill] sm:$0xff] %v9268_v53  ;;  %v10258_v19 = vmax.f32 %v9268_v53, 0.0  ;;  %v10806_v41 = vld [vmem:[#allocation11_spill] sm:$0xff] }
 0x5ba   : > { %v3844_v55 = vpop.f32.mrf.mxu0  ;;  %v10807_v42 = vmax.f32 %v10806_v41, 0.0 }
 0x5bb   : > { %10784 = vst [vmem:[#allocation17_spill] sm:$0xff] %v9259_v51  ;;  %v9263_v47 = vadd.f32 %v3843_v52, %v10786_v12  ;;  %v3845_v59 = vadd.f32 %v3844_v55, %v9223_v62  ;;  %4076 = vmatprep.mubr.bf16.mxu1 %v3900_v24  ;;  %v10256_v57 = vmax.f32 %v9259_v51, 0.0 }
 0x5bc   : > { %v3848_v34 = vpop.f32.mrf.mxu0  ;;  %4077 = vmatmul.mubr.bf16.vlgmr.msra.gmra.mxu1 %v3899_v54 }
 0x5bd   : > { %10787 = vst [vmem:[#allocation93_spill] sm:$0xff] %v9263_v47  ;;  %v9272_v10 = vadd.f32 %v3845_v59, %v10792_v46  ;;  %v10255_v35 = vmax.f32 %v9263_v47, 0.0  ;;  %v3849_v61 = vadd.f32 %v3848_v34, %v3735_v5  ;;  %v10809_v59 = vld [vmem:[#allocation9_spill] sm:$0xff]  ;;  %v10812_v34 = vld [vmem:[#allocation12_spill] sm:$0xff]  ;;  %6886 = vmatpush3.bf16.msra.mxu1 %v7197_v21 }
 0x5be   : > { %v3850_v36 = vpop.f32.mrf.mxu0  ;;  %v10810_v60 = vmax.f32 %v10809_v59, 0.0  ;;  %v10813_v50 = vmax.f32 %v10812_v34, 0.0 }
 0x5bf   : > { %10793 = vst [vmem:[#allocation92_spill] sm:$0xff] %v9272_v10  ;;  %v10254_v29 = vmax.f32 %v9272_v10, 0.0  ;;  %v3851_v18 = vadd.f32 %v3850_v36, %v9223_v62  ;;  %v3901_v15 = vpack.c.bf16 %v10255_v35, %v10258_v19  ;;  %v9298_v40 = vadd.f32 %v3849_v61, %v10801_v58  ;;  %v10815_v36 = vld [vmem:[#allocation15_spill] sm:$0xff]  ;;  %v7201_v58 = vld [vmem:[%s9918_s9 + $0x168] sm:$0xff]  }
 0x5c0   : > { %v3852_v0 = vpop.f32.mrf.mxu0 }
 0x5c1   : > { %v3853_v4 = vadd.f32 %v3852_v0, %v3735_v5  ;;  %v3902_v26 = vpack.c.bf16 %v10254_v29, %v10256_v57  ;;  %v9289_v3 = vadd.f32 %v3851_v18, %v10795_v37  ;;  %10802 = vst [vmem:[#allocation82_spill] sm:$0xff] %v9298_v40  ;;  %v10253_v31 = vmax.f32 %v9298_v40, 0.0  ;;  %v7196_v37 = vld [vmem:[%s9918_s9 + $0x150] sm:$0xff]  }
 0x5c2   : > { %v3854_v22 = vpop.f32.mrf.mxu0  ;;  %v10816_v18 = vmax.f32 %v10815_v36, 0.0  ;;  %6855 = vmatprep.subr.bf16.mxu0 %v7196_v37  ;;  %v4156_v36 = vld [vmem:[#allocation2 + $0x8] sm:$0xff] }
 0x5c3   : > { %10796 = vst [vmem:[#allocation83_spill] sm:$0xff] %v9289_v3  ;;  %v9293_v17 = vadd.f32 %v3853_v4, %v10798_v2  ;;  %v3855_v7 = vadd.f32 %v3854_v22, %v9223_v62  ;;  %4084 = vmatprep.mubr.bf16.mxu1 %v3902_v26  ;;  %v10252_v23 = vmax.f32 %v9289_v3, 0.0  ;;  %6856 = vmatpush3.bf16.msra.mxu0 %v7196_v37  ;;  %v7198_v2 = vld [vmem:[%s9918_s9 + $0x148] sm:$0xff]  }
 0x5c4   : > { %v3858_v28 = vpop.f32.mrf.mxu0  ;;  %4085 = vmatmul.mubr.bf16.gmra.mxu1 %v3901_v15  ;;  %6857 = vmatprep.subr.bf16.mxu0 %v7198_v2  ;;  %v10819_v37 = vld [vmem:[#allocation18_spill] sm:$0xff] }
 0x5c5   : > { %10799 = vst [vmem:[#allocation84_spill] sm:$0xff] %v9293_v17  ;;  %v9302_v32 = vadd.f32 %v3855_v7, %v10804_v56  ;;  %v10251_v30 = vmax.f32 %v9293_v17, 0.0  ;;  %v3859_v14 = vadd.f32 %v3858_v28, %v3735_v5  ;;  %v7199_v7 = vld [vmem:[%s9918_s9 + $0x170] sm:$0xff]   ;;  %v7202_v28 = vld [vmem:[%s9918_s9 + $0x160] sm:$0xff]   ;;  %v9379_v56 = vld [vmem:[%s9918_s9 + $0x1b8] sm:$0xff]   ;;  %vm10820_vm10 = vnez %v10819_v37 }
 0x5c6   : > { %v3860_v27 = vpop.f32.mrf.mxu0  ;;  %6887 = vmatprep.subr.bf16.mxu1 %v7199_v7  ;;  %v4164_v21 = vsel %vm10820_vm10, %v4156_v36, 0.0  ;;  %vm10824_vm10 = vmmov %vm10747_vm6 }
 0x5c7   : > { %10805 = vst [vmem:[#allocation85_spill] sm:$0xff] %v9302_v32  ;;  %v10250_v44 = vmax.f32 %v9302_v32, 0.0  ;;  %v3861_v63 = vadd.f32 %v3860_v27, %v9223_v62  ;;  %v3903_v55 = vpack.c.bf16 %v10251_v30, %v10253_v31  ;;  %v9328_v46 = vadd.f32 %v3859_v14, %v10813_v50  ;;  %6858 = vmatpush3.bf16.msra.mxu0 %v7198_v2 }
 0x5c8   : > { %v3862_v52 = vpop.f32.mrf.mxu0  ;;  %6888 = vmatpush3.bf16.msra.mxu1 %v7199_v7  ;;  %6859 = vmatprep.subr.bf16.mxu0 %v7200_v33 }
 0x5c9   : > { %v3863_v24 = vadd.f32 %v3862_v52, %v3735_v5  ;;  %v3904_v54 = vpack.c.bf16 %v10250_v44, %v10252_v23  ;;  %v9319_v12 = vadd.f32 %v3861_v63, %v10807_v42  ;;  %10814 = vst [vmem:[#allocation86_spill] sm:$0xff] %v9328_v46  ;;  %v10249_v22 = vmax.f32 %v9328_v46, 0.0  ;;  %6889 = vmatprep.subr.bf16.mxu1 %v7201_v58  ;;  %v9385_v63 = vld [vmem:[%s9917_s8 + $0x1] ss:$0 sm:$0xff] }
 0x5ca   : > { %v3864_v6 = vpop.f32.mrf.mxu0 }
 0x5cb   : > { %10808 = vst [vmem:[#allocation87_spill] sm:$0xff] %v9319_v12  ;;  %v9323_v8 = vadd.f32 %v3863_v24, %v10810_v60  ;;  %v3865_v5 = vadd.f32 %v3864_v6, %v9223_v62  ;;  %4092 = vmatprep.mubr.bf16.mxu1 %v3904_v54  ;;  %v10248_v4 = vmax.f32 %v9319_v12, 0.0  ;;  %6860 = vmatpush3.bf16.msra.mxu0 %v7200_v33 }
 0x5cc   : > { %4093 = vmatmul.mubr.bf16.gmra.mxu1 %v3903_v55  ;;  %6869 = vmatprep.subr.bf16.mxu0 %v9373_v9 }
 0x5cd   : > { %10811 = vst [vmem:[#allocation88_spill] sm:$0xff] %v9323_v8  ;;  %v9332_v61 = vadd.f32 %v3865_v5, %v10816_v18  ;;  %v10247_v0 = vmax.f32 %v9323_v8, 0.0  ;;  %6890 = vmatpush3.bf16.msra.mxu1 %v7201_v58  ;;  %v10822_v58 = vld [vmem:[#allocation20_spill] sm:$0xff] }
 0x5ce   : > { %6891 = vmatprep.subr.bf16.mxu1 %v7202_v28  ;;  %vm10823_vm8 = vnez %v10822_v58 }
 0x5cf   : > { %10817 = vst [vmem:[#allocation89_spill] sm:$0xff] %v9332_v61  ;;  %v10246_v26 = vmax.f32 %v9332_v61, 0.0  ;;  %v3905_v15 = vpack.c.bf16 %v10247_v0, %v10249_v22  ;;  %v7212_v0 = vld [vmem:[%s9918_s9 + $0x190] sm:$0xff]  }
 0x5d1   : > { %v3906_v62 = vpack.c.bf16 %v10246_v26, %v10248_v4  ;;  %6892 = vmatpush3.bf16.msra.mxu1 %v7202_v28 }
 0x5d2   : > { %6917 = vmatprep.subr.bf16.mxu1 %v9379_v56 }
 0x5d3   : > { %4100 = vmatprep.mubr.bf16.mxu1 %v3906_v62 }
 0x5d4   : > { %4101 = vmatmul.mubr.bf16.gmra.mxu1 %v3905_v15 }
 0x67c   : > { %v6453_v27 = vpop.f32.mrf.mxu1 }
 0x67e   : > { %v6454_v14 = vpop.f32.mrf.mxu1 }
 0x67f   : > { %v6455_v52 = vadd.f32 %v6454_v14, %v6453_v27 }
 0x680   : > { %v6456_v24 = vpop.f32.mrf.mxu1 }
 0x681   : > { %v4079_v54 = vadd.f32 %v6455_v52, %v9385_v63 }
 0x682   : > { %v6457_v55 = vpop.f32.mrf.mxu1 }
 0x683   : > { %v4109_v6 = vmax.f32 %v4079_v54, 0.0  ;;  %v6458_v41 = vadd.f32 %v6457_v55, %v6456_v24 }
 0x684   : > { %v6459_v42 = vpop.f32.mrf.mxu1 }
 0x685   : > { %4119 = vst.msk [vmem:[#allocation2 + $0x10] sm:$0xff] %vm10818_vm14, %v4109_v6  ;;  %v4082_v59 = vadd.f32 %v6458_v41, %v9385_v63  ;;  %vm10821_vm14 = vmmov %vm10747_vm6 }
 0x686   : > { %v6460_v60 = vpop.f32.mrf.mxu1 }
 0x687   : > { %v4110_v5 = vmax.f32 %v4082_v59, 0.0  ;;  %v6461_v34 = vadd.f32 %v6460_v60, %v6459_v42  ;;  %v10825_v42 = vld [vmem:[#allocation45_spill] sm:$0xff]  ;;  %v10827_v60 = vld [vmem:[#allocation39_spill] sm:$0xff] }
 0x688   : > { %v6462_v50 = vpop.f32.mrf.mxu1 }
 0x689   : > { %4120 = vst.msk [vmem:[#allocation2 + $0x18] sm:$0xff] %vm10747_vm6, %v4110_v5  ;;  %v4087_v18 = vadd.f32 %v6461_v34, %v9385_v63 }
 0x68a   : > { %v6463_v62 = vpop.f32.mrf.mxu1 }
 0x68b   : > { %v4111_v15 = vmax.f32 %v4087_v18, 0.0  ;;  %v6464_v39 = vadd.f32 %v6463_v62, %v6462_v50 }
 0x68c   : > { %v6465_v2 = vpop.f32.mrf.mxu1  ;;  %v9394_v7 = vld [vmem:[#allocation2 + $0x10] sm:$0xff] }
 0x68d   : > { %4121 = vst.msk [vmem:[#allocation2 + $0x20] sm:$0xff] %vm10821_vm14, %v4111_v15  ;;  %v4090_v33 = vadd.f32 %v6464_v39, %v9385_v63  ;;  %v4165_v28 = vsel %vm10823_vm8, %v9394_v7, 0.0  ;;  %v4387_v52 = vld [vmem:[#allocation2 + $0x9] sm:$0xff]  ;;  %vm10826_vm14 = vnez %v10825_v42  ;;  %vm10828_vm8 = vnez %v10827_v60 }
 0x68e   : > { %v6466_v27 = vpop.f32.mrf.mxu1  ;;  %v4172_v14 = vpack.c.bf16 %v4165_v28, %v4164_v21  ;;  %v4395_v59 = vsel %vm10826_vm14, %v4387_v52, 0.0  ;;  %v10830_v21 = vld [vmem:[#allocation25_spill] sm:$0xff]  ;;  %v7204_v52 = vld [vmem:[%s9918_s9 + $0x130] sm:$0xff]  }
 0x68f   : > { %v4112_v24 = vmax.f32 %v4090_v33, 0.0  ;;  %v6467_v54 = vadd.f32 %v6466_v27, %v6465_v2  ;;  %vm10831_vm14 = vnez %v10830_v21  ;;  %v10832_v33 = vld [vmem:[#allocation23_spill] sm:$0xff]  ;;  %v7206_v21 = vld [vmem:[%s9918_s9 + $0x128] sm:$0xff]  }
 0x690   : > { %v6468_v55 = vpop.f32.mrf.mxu1  ;;  %6861 = vmatprep.mubr.msk.bf16.mxu0 %vm10747_vm6, %v4172_v14  ;;  %v9402_v6 = vld [vmem:[#allocation2 + $0x11] sm:$0xff] }
 0x691   : > { %4122 = vst.msk [vmem:[#allocation2 + $0x28] sm:$0xff] %vm10824_vm10, %v4112_v24  ;;  %v4095_v41 = vadd.f32 %v6467_v54, %v9385_v63  ;;  %v4396_v5 = vsel %vm10828_vm8, %v9402_v6, 0.0  ;;  %v9411_v36 = vld [vmem:[#allocation2 + $0x18] sm:$0xff]  ;;  %vm10829_vm10 = vmmov %vm10747_vm6  ;;  %vm10833_vm8 = vnez %v10832_v33 }
 0x692   : > { %v6469_v34 = vpop.f32.mrf.mxu1  ;;  %v4403_v50 = vpack.c.bf16 %v4396_v5, %v4395_v59  ;;  %v4166_v2 = vsel %vm10831_vm14, %v9411_v36, 0.0  ;;  %v10835_v59 = vld [vmem:[#allocation48_spill] sm:$0xff] }
 0x693   : > { %v4113_v18 = vmax.f32 %v4095_v41, 0.0  ;;  %v6470_v62 = vadd.f32 %v6469_v34, %v6468_v55  ;;  %vm10836_vm14 = vnez %v10835_v59  ;;  %v10837_v5 = vld [vmem:[#allocation52_spill] sm:$0xff] }
 0x694   : > { %v6471_v15 = vpop.f32.mrf.mxu1  ;;  %6893 = vmatprep.mubr.msk.bf16.mxu1 %vm10747_vm6, %v4403_v50  ;;  %v9414_v39 = vld [vmem:[#allocation2 + $0x20] sm:$0xff]  ;;  %v7209_v50 = vld [vmem:[%s9918_s9 + $0x1a8] sm:$0xff]  }
 0x695   : > { %4123 = vst.msk [vmem:[#allocation2 + $0x30] sm:$0xff] %vm10829_vm10, %v4113_v18  ;;  %v4098_v37 = vadd.f32 %v6470_v62, %v9385_v63  ;;  %v4167_v58 = vsel %vm10833_vm8, %v9414_v39, 0.0  ;;  %v9424_v14 = vld [vmem:[#allocation2 + $0x19] sm:$0xff]  ;;  %vm10834_vm10 = vmmov %vm10747_vm6  ;;  %vm10838_vm8 = vnez %v10837_v5  ;;  %v5078_v18 = vsel %vm10728_vm0, %v9414_v39, 0.0 }
 0x696   : > { %v6472_v28 = vpop.f32.mrf.mxu1  ;;  %v4173_v27 = vpack.c.bf16 %v4167_v58, %v4166_v2  ;;  %v4397_v60 = vsel %vm10836_vm14, %v9424_v14, 0.0  ;;  %v7207_v2 = vld [vmem:[%s9918_s9 + $0x1b0] sm:$0xff]   ;;  %vm10841_vm0 = vmmov %vm10747_vm6  ;;  %v10843_v59 = vld [vmem:[#allocation28_spill] sm:$0xff] }
 0x697   : > { %v4114_v24 = vmax.f32 %v4098_v37, 0.0  ;;  %v6473_v54 = vadd.f32 %v6472_v28, %v6471_v15  ;;  %v5077_v28 = vsel %vm10732_vm15, %v9411_v36, 0.0  ;;  %vm10847_vm15 = vmmov %vm10841_vm0 }
 0x698   : > { %v6474_v55 = vpop.f32.mrf.mxu1  ;;  %6862 = vmatmul.mubr.msk.bf16.vlgmr.msra.gmra.mxu0 %vm10747_vm6, %v4173_v27  ;;  %v9430_v41 = vld [vmem:[#allocation2 + $0x21] sm:$0xff]  ;;  %vm10842_vm6 = vmmov %vm10841_vm0 }
 0x699   : > { %4124 = vst.msk [vmem:[#allocation2 + $0x38] sm:$0xff] %vm10834_vm10, %v4114_v24  ;;  %v4103_v42 = vadd.f32 %v6473_v54, %v9385_v63  ;;  %v4398_v34 = vsel %vm10838_vm8, %v9430_v41, 0.0  ;;  %6870 = vmatpush3.bf16.msra.mxu0 %v9373_v9  ;;  %v9444_v37 = vld [vmem:[#allocation2 + $0x28] sm:$0xff]  ;;  %v9458_v24 = vpack.c.bf16 %v5078_v18, %v5077_v28  ;;  %vm10844_vm10 = vnez %v10843_v59  ;;  %vm10849_vm8 = vmmov %vm10841_vm0 }
 0x69a   : > { %v6475_v62 = vpop.f32.mrf.mxu1  ;;  %v4404_v15 = vpack.c.bf16 %v4398_v34, %v4397_v60  ;;  %6871 = vmatprep.subr.bf16.mxu0 %v7204_v52  ;;  %v4168_v60 = vsel %vm10844_vm10, %v9444_v37, 0.0  ;;  %v4127_v28 = vld [vmem:[#allocation2 + $0x7] sm:$0xff] }
 0x69b   : > { %v4115_v33 = vmax.f32 %v4103_v42, 0.0  ;;  %v6476_v58 = vadd.f32 %v6475_v62, %v6474_v55  ;;  %v10845_v55 = vld [vmem:[#allocation29_spill] sm:$0xff] }
 0x69c   : > { %6894 = vmatmul.mubr.msk.bf16.vlgmr.msra.gmra.mxu1 %vm10841_vm0, %v4404_v15  ;;  %v9456_v27 = vld [vmem:[#allocation2 + $0x30] sm:$0xff]  ;;  %vm10846_vm14 = vnez %v10845_v55  ;;  %v10850_v15 = vld [vmem:[#allocation53_spill] sm:$0xff]  ;;  %v7210_v55 = vld [vmem:[%s9918_s9 + $0x198] sm:$0xff]  }
 0x69d   : > { %4125 = vst.msk [vmem:[#allocation2 + $0x40] sm:$0xff] %vm10842_vm6, %v4115_v33  ;;  %v4106_v54 = vadd.f32 %v6476_v58, %v9385_v63  ;;  %v4169_v42 = vsel %vm10846_vm14, %v9456_v27, 0.0  ;;  %6872 = vmatpush3.bf16.msra.mxu0 %v7204_v52  ;;  %6918 = vmatpush3.bf16.msra.mxu1 %v9379_v56  ;;  %v9469_v34 = vld [vmem:[#allocation2 + $0x29] sm:$0xff]  ;;  %v7208_v63 = vld [vmem:[%s9918_s9 + $0x120] sm:$0xff]   ;;  %v5080_v52 = vsel %vm10740_vm2, %v9456_v27, 0.0  ;;  %vm10851_vm0 = vnez %v10850_v15  ;;  %v10852_v58 = vld [vmem:[#allocation51_spill] sm:$0xff] }
 0x69e   : > { %v4174_v5 = vpack.c.bf16 %v4169_v42, %v4168_v60  ;;  %6873 = vmatprep.subr.bf16.mxu0 %v7206_v21  ;;  %6919 = vmatprep.subr.bf16.mxu1 %v7207_v2  ;;  %v4399_v33 = vsel %vm10851_vm0, %v9469_v34, 0.0  ;;  %vm10853_vm6 = vnez %v10852_v58  ;;  %v7211_v42 = vld [vmem:[%s9918_s9 + $0x1a0] sm:$0xff]   ;;  %vm10855_vm2 = vmmov %vm10849_vm8  ;;  %v10856_v56 = vld [vmem:[#allocation22_spill] sm:$0xff] }
 0x69f   : > { %v4116_v18 = vmax.f32 %v4106_v54, 0.0  ;;  %v9490_v54 = vld [vmem:[#allocation2 + $0xf] sm:$0xff]  ;;  %vm10857_vm10 = vnez %v10856_v56  ;;  %vm10865_vm0 = vmmov %vm10855_vm2  ;;  %v9543_v4 = vld [vmem:[#allocation2 + $0x27] sm:$0xff] }
 0x6a0   : > { %6865 = vmatprep.mubr.msk.bf16.mxu0 %vm10847_vm15, %v4174_v5  ;;  %v9478_v62 = vld [vmem:[#allocation2 + $0x31] sm:$0xff]  ;;  %v4135_v15 = vsel %vm10857_vm10, %v4127_v28, 0.0  ;;  %v10862_v5 = vld [vmem:[#allocation40_spill] sm:$0xff]  ;;  %vm10871_vm10 = vmmov %vm10865_vm0 }
 0x6a1   : > { %4126 = vst.msk [vmem:[#allocation2 + $0x48] sm:$0xff] %vm10849_vm8, %v4116_v18  ;;  %v4400_v9 = vsel %vm10853_vm6, %v9478_v62, 0.0  ;;  %6874 = vmatpush3.bf16.msra.mxu0 %v7206_v21  ;;  %6920 = vmatpush3.bf16.msra.mxu1 %v7207_v2  ;;  %v9492_v60 = vld [vmem:[#allocation2 + $0x38] sm:$0xff]  ;;  %v5079_v21 = vsel %vm10744_vm4, %v9444_v37, 0.0  ;;  %vm10863_vm4 = vnez %v10862_v5  ;;  %vm10864_vm8 = vmmov %vm10855_vm2 }
 0x6a2   : > { %v4405_v59 = vpack.c.bf16 %v4400_v9, %v4399_v33  ;;  %6875 = vmatprep.subr.bf16.mxu0 %v7208_v63  ;;  %6921 = vmatprep.subr.bf16.mxu1 %v7209_v50  ;;  %v9503_v18 = vpack.c.bf16 %v5080_v52, %v5079_v21  ;;  %v10858_v33 = vld [vmem:[#allocation24_spill] sm:$0xff]  ;;  %v10860_v9 = vld [vmem:[#allocation35_spill] sm:$0xff] }
 0x6a3   : > { %vm10859_vm14 = vnez %v10858_v33  ;;  %vm10861_vm15 = vnez %v10860_v9  ;;  %v7213_v28 = vld [vmem:[%s9918_s9 + $0x1f8] sm:$0xff]  }
 0x6a4   : > { %6897 = vmatprep.mubr.msk.bf16.mxu1 %vm10855_vm2, %v4405_v59  ;;  %v9506_v2 = vld [vmem:[#allocation2 + $0x40] sm:$0xff]  ;;  %v4136_v58 = vsel %vm10859_vm14, %v9490_v54, 0.0  ;;  %v4170_v26 = vsel %vm10861_vm15, %v9492_v60, 0.0  ;;  %vm10874_vm15 = vmmov %vm10865_vm0 }
 0x6a5   : > { %v4171_v52 = vsel %vm10863_vm4, %v9506_v2, 0.0  ;;  %6876 = vmatpush3.bf16.msra.mxu0 %v7208_v63  ;;  %6922 = vmatpush3.bf16.msra.mxu1 %v7209_v50  ;;  %v9519_v21 = vld [vmem:[#allocation2 + $0x39] sm:$0xff]  ;;  %v4143_v56 = vpack.c.bf16 %v4136_v58, %v4135_v15  ;;  %v10868_v50 = vld [vmem:[#allocation57_spill] sm:$0xff] }
 0x6a6   : > { %v4175_v59 = vpack.c.bf16 %v4171_v52, %v4170_v26  ;;  %6901 = vmatprep.subr.bf16.mxu0 %v7210_v55  ;;  %6923 = vmatprep.subr.bf16.mxu1 %v7211_v42  ;;  %v9527_v9 = vld [vmem:[#allocation2 + $0x1f] sm:$0xff]  ;;  %vm10869_vm2 = vnez %v10868_v50  ;;  %v9536_v52 = vld [vmem:[#allocation2 + $0x2f] sm:$0xff]  ;;  %v4129_v58 = vld [vmem:[#allocation2 + $0x17] sm:$0xff] }
 0x6a7   : > { %v10866_v63 = vld [vmem:[#allocation56_spill] sm:$0xff] }
 0x6a8   : > { %6866 = vmatmul.mubr.msk.bf16.gmra.mxu0 %vm10864_vm8, %v4175_v59  ;;  %v9525_v33 = vld [vmem:[#allocation2 + $0x41] sm:$0xff]  ;;  %vm10867_vm6 = vnez %v10866_v63  ;;  %v4671_v59 = vpack.c.bf16 %v9411_v36, %v9394_v7  ;;  %v10877_v7 = vld [vmem:[#allocation34_spill] sm:$0xff] }
 0x6a9   : > { %6877 = vmatprep.mubr.msk.bf16.mxu0 %vm10865_vm0, %v4143_v56  ;;  %v4401_v26 = vsel %vm10867_vm6, %v9519_v21, 0.0  ;;  %v4402_v5 = vsel %vm10869_vm2, %v9525_v33, 0.0  ;;  %6924 = vmatpush3.bf16.msra.mxu1 %v7211_v42  ;;  %v4138_v56 = vsel %vm10653_vm1, %v9527_v9, 0.0  ;;  %v10872_v63 = vld [vmem:[#allocation36_spill] sm:$0xff]  ;;  %v10875_v42 = vld [vmem:[#allocation31_spill] sm:$0xff]  ;;  %vm10878_vm8 = vnez %v10877_v7  ;;  %vm10879_vm1 = vmmov %vm10865_vm0 }
 0x6aa   : > { %v4406_v15 = vpack.c.bf16 %v4402_v5, %v4401_v26  ;;  %6949 = vmatprep.subr.bf16.mxu1 %v7213_v28  ;;  %vm10873_vm14 = vnez %v10872_v63  ;;  %vm10876_vm4 = vnez %v10875_v42  ;;  %v4139_v36 = vsel %vm10878_vm8, %v9543_v4, 0.0  ;;  %v7214_v63 = vld [vmem:[%s9918_s9 + $0x188] sm:$0xff]   ;;  %vm10882_vm2 = vmmov %vm10865_vm0  ;;  %v10888_v7 = vld [vmem:[#allocation19_spill] sm:$0xff] }
 0x6ab   : > { %v4140_v50 = vsel %vm10873_vm14, %v9536_v52, 0.0  ;;  %v4137_v26 = vsel %vm10876_vm4, %v4129_v58, 0.0  ;;  %v4673_v42 = vpack.c.bf16 %v9492_v60, %v9456_v27  ;;  %vm10885_vm14 = vmmov %vm10865_vm0  ;;  %vm10889_vm4 = vnez %v10888_v7  ;;  %v10898_v7 = vld [vmem:[#allocation33_spill] sm:$0xff] }
 0x6ac   : > { %6898 = vmatmul.mubr.msk.bf16.gmra.mxu1 %vm10871_vm10, %v4406_v15  ;;  %v4144_v5 = vpack.c.bf16 %v4138_v56, %v4137_v26  ;;  %v4145_v22 = vpack.c.bf16 %v4140_v50, %v4139_v36  ;;  %v9559_v15 = vld [vmem:[#allocation2 + $0x3f] sm:$0xff]  ;;  %v4133_v56 = vld [vmem:[#allocation2 + $0x37] sm:$0xff]  ;;  %v4533_v36 = vsel %vm10889_vm4, %v9490_v54, 0.0  ;;  %vm10890_vm8 = vmmov %vm10865_vm0 }
 0x6ad   : > { %6925 = vmatprep.mubr.msk.bf16.mxu1 %vm10874_vm15, %v4671_v59  ;;  %v4672_v59 = vpack.c.bf16 %v9444_v37, %v9414_v39  ;;  %v10880_v50 = vld [vmem:[#allocation44_spill] sm:$0xff]  ;;  %v10886_v37 = vld [vmem:[#allocation42_spill] sm:$0xff] }
 0x6ae   : > { %vm10881_vm6 = vnez %v10880_v50  ;;  %vm10887_vm15 = vnez %v10886_v37  ;;  %v7218_v37 = vld [vmem:[%s9918_s9 + $0x1d8] sm:$0xff]  }
 0x6af   : > { %v4142_v26 = vsel %vm10881_vm6, %v9559_v15, 0.0 }
 0x6b0   : > { %6878 = vmatmul.mubr.msk.bf16.vlgmr.msra.gmra.mxu0 %vm10879_vm1, %v4144_v5  ;;  %v4141_v5 = vsel %vm10887_vm15, %v4133_v56, 0.0  ;;  %vm10900_vm15 = vmmov %vm10865_vm0 }
 0x6b1   : > { %6881 = vmatprep.mubr.msk.bf16.mxu0 %vm10865_vm0, %v4145_v22  ;;  %6902 = vmatpush3.bf16.msra.mxu0 %v7210_v55  ;;  %v7215_v22 = vld [vmem:[%s9918_s9 + $0x1f0] sm:$0xff]   ;;  %v10883_v55 = vld [vmem:[#allocation21_spill] sm:$0xff]  ;;  %v4146_v27 = vpack.c.bf16 %v4142_v26, %v4141_v5  ;;  %v10893_v26 = vld [vmem:[#allocation60_spill] sm:$0xff] }
 0x6b2   : > { %6903 = vmatprep.subr.bf16.mxu0 %v7212_v0  ;;  %vm10884_vm10 = vnez %v10883_v55  ;;  %v9587_v55 = vld [vmem:[#allocation2 + $0x48] sm:$0xff]  ;;  %vm10894_vm6 = vnez %v10893_v26 }
 0x6b3   : > { %v4534_v39 = vsel %vm10884_vm10, %v4129_v58, 0.0  ;;  %v4674_v54 = vpack.c.bf16 %v9587_v55, %v9506_v2  ;;  %vm10897_vm10 = vmmov %vm10865_vm0 }
 0x6b4   : > { %6926 = vmatmul.mubr.msk.bf16.vlgmr.msra.gmra.mxu1 %vm10882_vm2, %v4672_v59  ;;  %v7216_v59 = vld [vmem:[%s9918_s9 + $0x180] sm:$0xff]   ;;  %v4541_v50 = vpack.c.bf16 %v4534_v39, %v4533_v36  ;;  %v4939_v39 = vsel %vm10894_vm6, %v4129_v58, 0.0  ;;  %v10901_v58 = vld [vmem:[#allocation26_spill] sm:$0xff] }
 0x6b5   : > { %6904 = vmatpush3.bf16.msra.mxu0 %v7212_v0  ;;  %6929 = vmatprep.mubr.msk.bf16.mxu1 %vm10885_vm14, %v4673_v42  ;;  %v7217_v0 = vld [vmem:[%s9918_s9 + $0x1e8] sm:$0xff]   ;;  %vm10899_vm14 = vnez %v10898_v7  ;;  %vm10902_vm4 = vnez %v10901_v58  ;;  %v10919_v7 = vld [vmem:[#allocation43_spill] sm:$0xff] }
 0x6b6   : > { %6950 = vmatpush3.bf16.msra.mxu1 %v7213_v28  ;;  %6905 = vmatprep.subr.bf16.mxu0 %v7214_v63  ;;  %v10891_v28 = vld [vmem:[#allocation61_spill] sm:$0xff]  ;;  %v4538_v36 = vsel %vm10899_vm14, %v4133_v56, 0.0  ;;  %vm10920_vm14 = vnez %v10919_v7 }
 0x6b7   : > { %6951 = vmatprep.subr.bf16.mxu1 %v7215_v22  ;;  %vm10892_vm1 = vnez %v10891_v28 }
 0x6b8   : > { %6882 = vmatmul.mubr.msk.bf16.gmra.mxu0 %vm10890_vm8, %v4146_v27  ;;  %v4940_v42 = vsel %vm10892_vm1, %v9527_v9, 0.0  ;;  %v10895_v27 = vld [vmem:[#allocation27_spill] sm:$0xff]  ;;  %vm10905_vm1 = vmmov %vm10865_vm0 }
 0x6b9   : > { %6906 = vmatpush3.bf16.msra.mxu0 %v7214_v63  ;;  %6909 = vmatprep.mubr.msk.bf16.mxu0 %vm10865_vm0, %v4541_v50  ;;  %v4947_v5 = vpack.c.bf16 %v4940_v42, %v4939_v39  ;;  %vm10896_vm2 = vnez %v10895_v27  ;;  %v4535_v50 = vsel %vm10902_vm4, %v9527_v9, 0.0  ;;  %v10903_v42 = vld [vmem:[#allocation30_spill] sm:$0xff]  ;;  %vm10924_vm4 = vmmov %vm10865_vm0 }
 0x6ba   : > { %6952 = vmatpush3.bf16.msra.mxu1 %v7215_v22  ;;  %6907 = vmatprep.subr.bf16.mxu0 %v7216_v59  ;;  %v4536_v63 = vsel %vm10896_vm2, %v9543_v4, 0.0  ;;  %v7219_v22 = vld [vmem:[%s9918_s9 + $0x1e0] sm:$0xff]   ;;  %vm10904_vm8 = vnez %v10903_v42 }
 0x6bb   : > { %6953 = vmatprep.subr.bf16.mxu1 %v7217_v0  ;;  %v4542_v28 = vpack.c.bf16 %v4536_v63, %v4535_v50  ;;  %v4537_v26 = vsel %vm10904_vm8, %v9536_v52, 0.0  ;;  %v4944_v63 = vsel %vm10691_vm5, %v9559_v15, 0.0  ;;  %v10909_v50 = vld [vmem:[#allocation67_spill] sm:$0xff]  ;;  %vm10915_vm5 = vmmov %vm10865_vm0 }
 0x6bc   : > { %6930 = vmatmul.mubr.msk.bf16.gmra.mxu1 %vm10897_vm10, %v4674_v54  ;;  %v7220_v54 = vld [vmem:[%s9918_s9 + $0x1d0] sm:$0xff]   ;;  %v4543_v39 = vpack.c.bf16 %v4538_v36, %v4537_v26  ;;  %v4941_v36 = vsel %vm10693_vm3, %v9543_v4, 0.0  ;;  %vm10910_vm6 = vnez %v10909_v50  ;;  %vm10918_vm10 = vmmov %vm10865_vm0 }
 0x6bd   : > { %6908 = vmatpush3.bf16.msra.mxu0 %v7216_v59  ;;  %6957 = vmatprep.mubr.msk.bf16.mxu1 %vm10900_vm15, %v4947_v5  ;;  %v7221_v59 = vld [vmem:[%s9918_s9 + $0x238] sm:$0xff]   ;;  %v4532_v5 = vld [vmem:[#allocation2 + $0x47] sm:$0xff]  ;;  %vm10921_vm15 = vmmov %vm10865_vm0 }
 0x6be   : > { %6954 = vmatpush3.bf16.msra.mxu1 %v7217_v0  ;;  %6933 = vmatprep.subr.bf16.mxu0 %v7218_v37  ;;  %v4942_v0 = vsel %vm10688_vm12, %v9536_v52, 0.0  ;;  %v10911_v52 = vld [vmem:[#allocation41_spill] sm:$0xff]  ;;  %v10942_v50 = vld [vmem:[#allocation79_spill] sm:$0xff] }
 0x6bf   : > { %6955 = vmatprep.subr.bf16.mxu1 %v7219_v22  ;;  %v4948_v58 = vpack.c.bf16 %v4942_v0, %v4941_v36  ;;  %vm10912_vm12 = vnez %v10911_v52  ;;  %v4938_v0 = vld [vmem:[#allocation2 + $0x4f] sm:$0xff]  ;;  %v7224_v36 = vld [vmem:[%s9918_s9 + $0x1c0] sm:$0xff]  }
 0x6c0   : > { %6910 = vmatmul.mubr.msk.bf16.vlgmr.msra.gmra.mxu0 %vm10905_vm1, %v4542_v28  ;;  %v4943_v28 = vsel %vm10910_vm6, %v4133_v56, 0.0  ;;  %v4540_v42 = vsel %vm10912_vm12, %v4532_v5, 0.0  ;;  %v10916_v56 = vld [vmem:[#allocation38_spill] sm:$0xff]  ;;  %vm10935_vm12 = vmmov %vm10865_vm0 }
 0x6c1   : > { %6913 = vmatprep.mubr.msk.bf16.mxu0 %vm10865_vm0, %v4543_v39  ;;  %6934 = vmatpush3.bf16.msra.mxu0 %v7218_v37  ;;  %v7222_v37 = vld [vmem:[%s9918_s9 + $0x1c8] sm:$0xff]   ;;  %v4949_v26 = vpack.c.bf16 %v4944_v63, %v4943_v28  ;;  %vm10917_vm2 = vnez %v10916_v56  ;;  %v4801_v63 = vsel %vm10920_vm14, %v9402_v6, 0.0  ;;  %v4946_v28 = vsel %vm10706_vm7, %v4938_v0, 0.0  ;;  %v10925_v6 = vld [vmem:[#allocation75_spill] sm:$0xff]  ;;  %v7227_v56 = vld [vmem:[%s9918_s9 + $0x220] sm:$0xff]  }
 0x6c2   : > { %6956 = vmatpush3.bf16.msra.mxu1 %v7219_v22  ;;  %6935 = vmatprep.subr.bf16.mxu0 %v7220_v54  ;;  %v7223_v22 = vld [vmem:[%s9918_s9 + $0x230] sm:$0xff]   ;;  %v10913_v39 = vld [vmem:[#allocation37_spill] sm:$0xff]  ;;  %v4539_v9 = vsel %vm10917_vm2, %v9559_v15, 0.0  ;;  %vm10926_vm8 = vnez %v10925_v6  ;;  %vm10943_vm14 = vnez %v10942_v50 }
 0x6c3   : > { %6981 = vmatprep.subr.bf16.mxu1 %v7221_v59  ;;  %vm10914_vm3 = vnez %v10913_v39  ;;  %v4544_v27 = vpack.c.bf16 %v4540_v42, %v4539_v9  ;;  %v7225_v15 = vld [vmem:[%s9918_s9 + $0x228] sm:$0xff]   ;;  %v5216_v52 = vsel %vm10926_vm8, %v9430_v41, 0.0  ;;  %v10966_v50 = vld [vmem:[#allocation71_spill] sm:$0xff] }
 0x6c4   : > { %v4802_v4 = vsel %vm10914_vm3, %v9424_v14, 0.0  ;;  %v10931_v9 = vld [vmem:[#allocation50_spill] sm:$0xff] }
 0x6c5   : > { %6958 = vmatmul.mubr.msk.bf16.vlgmr.msra.gmra.mxu1 %vm10915_vm5, %v4948_v58  ;;  %6936 = vmatpush3.bf16.msra.mxu0 %v7220_v54  ;;  %v4809_v54 = vpack.c.bf16 %v4802_v4, %v4801_v63  ;;  %vm10932_vm7 = vnez %v10931_v9  ;;  %v10936_v63 = vld [vmem:[#allocation49_spill] sm:$0xff]  ;;  %v7228_v58 = vld [vmem:[%s9918_s9 + $0x210] sm:$0xff]   ;;  %vm10938_vm5 = vmmov %vm10865_vm0 }
 0x6c6   : > { %6961 = vmatprep.mubr.msk.bf16.mxu1 %vm10918_vm10, %v4949_v26  ;;  %6982 = vmatpush3.bf16.msra.mxu1 %v7221_v59  ;;  %v4945_v59 = vsel %vm10704_vm9, %v4532_v5, 0.0  ;;  %v10927_v26 = vld [vmem:[#allocation74_spill] sm:$0xff]  ;;  %v10929_v5 = vld [vmem:[#allocation47_spill] sm:$0xff]  ;;  %v4806_v0 = vsel %vm10932_vm7, %v9519_v21, 0.0  ;;  %vm10937_vm3 = vnez %v10936_v63  ;;  %vm10941_vm10 = vmmov %vm10865_vm0 }
 0x6c7   : > { %6937 = vmatprep.subr.bf16.mxu0 %v7222_v37  ;;  %6983 = vmatprep.subr.bf16.mxu1 %v7223_v22  ;;  %v4950_v42 = vpack.c.bf16 %v4946_v28, %v4945_v59  ;;  %vm10928_vm1 = vnez %v10927_v26  ;;  %vm10930_vm9 = vnez %v10929_v5  ;;  %v5220_v28 = vsel %vm10943_vm14, %v9525_v33, 0.0  ;;  %v10944_v6 = vld [vmem:[#allocation78_spill] sm:$0xff]  ;;  %vm10953_vm7 = vmmov %vm10865_vm0 }
 0x6c8   : > { %6914 = vmatmul.mubr.msk.bf16.gmra.mxu0 %vm10921_vm15, %v4544_v27  ;;  %v5215_v39 = vsel %vm10928_vm1, %v9424_v14, 0.0  ;;  %v4804_v4 = vsel %vm10930_vm9, %v9469_v34, 0.0  ;;  %v10933_v14 = vld [vmem:[#allocation46_spill] sm:$0xff]  ;;  %vm10945_vm15 = vnez %v10944_v6  ;;  %vm10952_vm9 = vmmov %vm10865_vm0 }
 0x6c9   : > { %6938 = vmatpush3.bf16.msra.mxu0 %v7222_v37  ;;  %6941 = vmatprep.mubr.msk.bf16.mxu0 %vm10924_vm4, %v4809_v54  ;;  %v7226_v37 = vld [vmem:[%s9918_s9 + $0x218] sm:$0xff]   ;;  %vm10934_vm6 = vnez %v10933_v14  ;;  %v4805_v54 = vsel %vm10937_vm3, %v9478_v62, 0.0  ;;  %v10948_v5 = vld [vmem:[#allocation54_spill] sm:$0xff]  ;;  %v10956_v14 = vld [vmem:[#allocation81_spill] sm:$0xff] }
 0x6ca   : > { %6984 = vmatpush3.bf16.msra.mxu1 %v7223_v22  ;;  %6939 = vmatprep.subr.bf16.mxu0 %v7224_v36  ;;  %v5223_v22 = vpack.c.bf16 %v5216_v52, %v5215_v39  ;;  %v4803_v27 = vsel %vm10934_vm6, %v9430_v41, 0.0  ;;  %v4811_v59 = vpack.c.bf16 %v4806_v0, %v4805_v54  ;;  %v5217_v52 = vsel %vm10945_vm15, %v9469_v34, 0.0  ;;  %v5214_v34 = vld [vmem:[#allocation2 + $0x51] sm:$0xff]  ;;  %v10954_v0 = vld [vmem:[#allocation80_spill] sm:$0xff]  ;;  %vm10958_vm3 = vmmov %vm10865_vm0 }
 0x6cb   : > { %6985 = vmatprep.subr.bf16.mxu1 %v7225_v15  ;;  %v4810_v7 = vpack.c.bf16 %v4804_v4, %v4803_v27  ;;  %vm10949_vm8 = vnez %v10948_v5  ;;  %vm10955_vm6 = vnez %v10954_v0  ;;  %v10959_v63 = vld [vmem:[#allocation66_spill] sm:$0xff]  ;;  %vm10964_vm14 = vmmov %vm10865_vm0  ;;  %vm10967_vm15 = vnez %v10966_v50 }
 0x6cc   : > { %v4807_v4 = vsel %vm10949_vm8, %v9525_v33, 0.0  ;;  %v7236_v6 = vld [vmem:[%s9920_s11 + $0x64] ss:$8 sps:$4 sm:$0xff]   ;;  %vm10982_vm8 = vmmov %vm10865_vm0 }
 0x6cd   : > { %6962 = vmatmul.mubr.msk.bf16.gmra.mxu1 %vm10865_vm0, %v4950_v42  ;;  %6940 = vmatpush3.bf16.msra.mxu0 %v7224_v36  ;;  %v10939_v36 = vld [vmem:[#allocation76_spill] sm:$0xff]  ;;  %v7229_v42 = vld [vmem:[%s9918_s9 + $0x208] sm:$0xff]  }
 0x6ce   : > { %6986 = vmatpush3.bf16.msra.mxu1 %v7225_v15  ;;  %6989 = vmatprep.mubr.msk.bf16.mxu1 %vm10935_vm12, %v5223_v22  ;;  %vm10940_vm2 = vnez %v10939_v36  ;;  %v4800_v15 = vld [vmem:[#allocation2 + $0x49] sm:$0xff]  ;;  %vm10957_vm12 = vnez %v10956_v14 }
 0x6cf   : > { %6965 = vmatprep.subr.bf16.mxu0 %v7226_v37  ;;  %6987 = vmatprep.subr.bf16.mxu1 %v7227_v56  ;;  %v5218_v41 = vsel %vm10940_vm2, %v9478_v62, 0.0  ;;  %v10946_v62 = vld [vmem:[#allocation77_spill] sm:$0xff]  ;;  %v5221_v33 = vsel %vm10955_vm6, %v4800_v15, 0.0  ;;  %v5222_v27 = vsel %vm10957_vm12, %v5214_v34, 0.0  ;;  %vm10961_vm2 = vmmov %vm10865_vm0 }
 0x6d0   : > { %6942 = vmatmul.mubr.msk.bf16.vlgmr.msra.gmra.mxu0 %vm10938_vm5, %v4810_v7  ;;  %v5224_v26 = vpack.c.bf16 %v5218_v41, %v5217_v52  ;;  %vm10947_vm4 = vnez %v10946_v62  ;;  %v5226_v7 = vpack.c.bf16 %v5222_v27, %v5221_v33  ;;  %vm10960_vm5 = vnez %v10959_v63  ;;  %v5076_v41 = vld [vmem:[#allocation2 + $0x50] sm:$0xff]  ;;  %v7242_v62 = vld [vmem:[%s9920_s11 + $0x44] ss:$8 sps:$4 sm:$0xff]  }
 0x6d1   : > { %6945 = vmatprep.mubr.msk.bf16.mxu0 %vm10941_vm10, %v4811_v59  ;;  %6966 = vmatpush3.bf16.msra.mxu0 %v7226_v37  ;;  %v5219_v39 = vsel %vm10947_vm4, %v9519_v21, 0.0  ;;  %v10950_v37 = vld [vmem:[#allocation55_spill] sm:$0xff]  ;;  %v7230_v21 = vld [vmem:[%s9918_s9 + $0x200] sm:$0xff]   ;;  %v5082_v54 = vsel %vm10960_vm5, %v9506_v2, 0.0  ;;  %v5081_v59 = vsel %vm10746_vm11, %v9492_v60, 0.0  ;;  %vm10963_vm10 = vmmov %vm10865_vm0  ;;  %v5084_v2 = vsel %vm10967_vm15, %v5076_v41, 0.0 }
 0x6d2   : > { %6988 = vmatpush3.bf16.msra.mxu1 %v7227_v56  ;;  %6967 = vmatprep.subr.bf16.mxu0 %v7228_v58  ;;  %vm10951_vm1 = vnez %v10950_v37  ;;  %v5225_v22 = vpack.c.bf16 %v5220_v28, %v5219_v39  ;;  %v5087_v36 = vpack.c.bf16 %v5082_v54, %v5081_v59  ;;  %vm10968_vm4 = vmmov %vm10865_vm0  ;;  %v7231_v60 = vld [vmem:[%s9920_s11 + $0x70] ss:$8 sps:$4 sm:$0xff]   ;;  %v7239_v52 = vld [vmem:[%s9920_s11 + $0x54] ss:$8 sps:$4 sm:$0xff]  }
 0x6d3   : > { %v4808_v56 = vsel %vm10951_vm1, %v4800_v15, 0.0  ;;  %v5083_v15 = vsel %vm10750_vm13, %v9587_v55, 0.0  ;;  %v7234_v55 = vld [vmem:[%s9920_s11 + $0x60] ss:$8 sps:$4 sm:$0xff]   ;;  %vm10979_vm13 = vmmov %vm10865_vm0 }
 0x6d4   : > { %v4812_v9 = vpack.c.bf16 %v4808_v56, %v4807_v4  ;;  %v5088_v28 = vpack.c.bf16 %v5084_v2, %v5083_v15  ;;  %vm10981_vm11 = vmmov %vm10865_vm0 }
 0x6d5   : > { %6990 = vmatmul.mubr.msk.bf16.vlgmr.msra.gmra.mxu1 %vm10952_vm9, %v5224_v26  ;;  %6968 = vmatpush3.bf16.msra.mxu0 %v7228_v58  ;;  %v7240_v26 = vld [vmem:[%s9920_s11 + $0x40] ss:$8 sps:$4 sm:$0xff]   ;;  %vm10983_vm1 = vmmov %vm10865_vm0 }
 0x6d6   : > { %6993 = vmatprep.mubr.msk.bf16.mxu1 %vm10953_vm7, %v5225_v22  ;;  %6969 = vmatprep.subr.bf16.mxu0 %v7229_v42 }
 0x6d8   : > { %6946 = vmatmul.mubr.msk.bf16.gmra.mxu0 %vm10865_vm0, %v4812_v9 }
 0x6d9   : > { %6970 = vmatpush3.bf16.msra.mxu0 %v7229_v42  ;;  %6973 = vmatprep.mubr.msk.bf16.mxu0 %vm10958_vm3, %v9458_v24  ;;  %v7237_v42 = vld [vmem:[%s9920_s11 + $0x50] ss:$8 sps:$4 sm:$0xff]  }
 0x6da   : > { %6971 = vmatprep.subr.bf16.mxu0 %v7230_v21 }
 0x6dd   : > { %6994 = vmatmul.mubr.msk.bf16.gmra.mxu1 %vm10961_vm2, %v5226_v7  ;;  %6972 = vmatpush3.bf16.msra.mxu0 %v7230_v21 }
 0x6e0   : > { %6974 = vmatmul.mubr.msk.bf16.vlgmr.msra.gmra.mxu0 %vm10963_vm10, %v9503_v18  ;;  %v7233_v18 = vld [vmem:[%s9920_s11 + $0x74] ss:$8 sps:$4 sm:$0xff]  }
 0x6e1   : > { %6977 = vmatprep.mubr.msk.bf16.mxu0 %vm10964_vm14, %v5087_v36  ;;  %5453 = vmatprep.subr.bf16.mxu0 %v7233_v18 }
 0x6e2   : > { %5454 = vmatpush1.bf16.msra.mxu0 %v7231_v60 }
 0x6e3   : > { %5455 = vmatprep.subr.bf16.mxu0 %v7236_v6 }
 0x6e6   : > { %5456 = vmatpush1.bf16.msra.mxu0 %v7234_v55 }
 0x6e7   : > { %5457 = vmatprep.subr.bf16.mxu0 %v7239_v52 }
 0x6e8   : > { %6978 = vmatmul.mubr.msk.bf16.gmra.mxu0 %vm10968_vm4, %v5088_v28 }
 0x6e9   : > { %5477 = vmatprep.mubr.bf16.mxu0 %v10765_v38 }
 0x6ea   : > { %5458 = vmatpush1.bf16.msra.mxu0 %v7237_v42 }
 0x6eb   : > { %5459 = vmatprep.subr.bf16.mxu0 %v7242_v62 }
 0x6ee   : > { %5460 = vmatpush1.bf16.msra.mxu0 %v7240_v26 }
 0x758   : > { %v6863_v39 = vpop.f32.mrf.mxu0 }
 0x75a   : > { %v4255_v5 = vpop.f32.mrf.mxu0 }
 0x75c   : > { %v6895_v4 = vpop.f32.mrf.mxu1  ;;  %v6864_v37 = vpop.f32.mrf.mxu0 }
 0x75e   : > { %v4486_v56 = vpop.f32.mrf.mxu1  ;;  %v4258_v22 = vpop.f32.mrf.mxu0 }
 0x760   : > { %v6896_v34 = vpop.f32.mrf.mxu1 }
 0x762   : > { %v4489_v21 = vpop.f32.mrf.mxu1 }
 0x768   : > { %v6867_v9 = vpop.f32.mrf.mxu0 }
 0x76a   : > { %v9774_v0 = vpop.f32.mrf.mxu0 }
 0x76c   : > { %v6868_v33 = vpop.f32.mrf.mxu0  ;;  %v6899_v14 = vpop.f32.mrf.mxu1 }
 0x76e   : > { %v4274_v27 = vpop.f32.mrf.mxu0  ;;  %v9776_v7 = vpop.f32.mrf.mxu1 }
 0x770   : > { %v6879_v63 = vpop.f32.mrf.mxu0  ;;  %v9778_v54 = vpop.f32.mrf.mxu1 }
 0x771   : > { %v4365_v51 = vadd.f32 %v6879_v63, %v6863_v39 }
 0x772   : > { %v4356_v58 = vpop.f32.mrf.mxu0  ;;  %v9780_v59 = vpop.f32.mrf.mxu1 }
 0x773   : > { %v4357_v12 = vadd.f32 %v4356_v58, %v4255_v5  ;;  %v4519_v38 = vadd.f32 %v6895_v4, %v4365_v51 }
 0x774   : > { %v6880_v36 = vpop.f32.mrf.mxu0  ;;  %v9782_v41 = vpop.f32.mrf.mxu1 }
 0x775   : > { %v4368_v40 = vadd.f32 %v6880_v36, %v6864_v37  ;;  %v4517_v47 = vadd.f32 %v4486_v56, %v4357_v12 }
 0x776   : > { %v4359_v24 = vpop.f32.mrf.mxu0  ;;  %v4754_v15 = vpop.f32.mrf.mxu1 }
 0x777   : > { %v4360_v10 = vadd.f32 %v4359_v24, %v4258_v22  ;;  %v4520_v16 = vadd.f32 %v6896_v34, %v4368_v40 }
 0x778   : > { %v6883_v50 = vpop.f32.mrf.mxu0  ;;  %v6928_v2 = vpop.f32.mrf.mxu1 }
 0x779   : > { %v4381_v48 = vadd.f32 %v6883_v50, %v6867_v9  ;;  %v4518_v11 = vadd.f32 %v4489_v21, %v4360_v10 }
 0x77a   : > { %v4372_v28 = vpop.f32.mrf.mxu0  ;;  %v4757_v60 = vpop.f32.mrf.mxu1 }
 0x77b   : > { %v4373_v63 = vadd.f32 %v4372_v28, %v9774_v0 }
 0x77c   : > { %v6884_v18 = vpop.f32.mrf.mxu0  ;;  %v6931_v55 = vpop.f32.mrf.mxu1 }
 0x77e   : > { %v4375_v6 = vpop.f32.mrf.mxu0  ;;  %v9784_v52 = vpop.f32.mrf.mxu1 }
 0x77f   : > { %10969 = vst [vmem:[#allocation10_spill] sm:$0xff] %v9784_v52  ;;  %v4523_v52 = vadd.f32 %v6899_v14, %v4381_v48  ;;  %v4376_v37 = vadd.f32 %v4375_v6, %v4274_v27 }
 0x780   : > { %v6911_v42 = vpop.f32.mrf.mxu0  ;;  %v9786_v26 = vpop.f32.mrf.mxu1 }
 0x781   : > { %v4657_v22 = vadd.f32 %v6911_v42, %v4519_v38  ;;  %v4522_v10 = vadd.f32 %v9780_v59, %v4376_v37 }
 0x782   : > { %v4624_v62 = vpop.f32.mrf.mxu0  ;;  %v9788_v44 = vpop.f32.mrf.mxu1 }
 0x783   : > { %v4655_v45 = vadd.f32 %v4624_v62, %v4517_v47 }
 0x784   : > { %v6912_v30 = vpop.f32.mrf.mxu0 }
 0x785   : > { %v9790_v23 = vpop.f32.mrf.mxu1 }
 0x786   : > { %v4627_v31 = vpop.f32.mrf.mxu0 }
 0x787   : > { %v5030_v29 = vpop.f32.mrf.mxu1 }
 0x788   : > { %v6915_v35 = vpop.f32.mrf.mxu0 }
 0x789   : > { %v6960_v57 = vpop.f32.mrf.mxu1  ;;  %v4661_v39 = vadd.f32 %v6915_v35, %v4523_v52  ;;  %v4521_v35 = vadd.f32 %v9776_v7, %v4373_v63 }
 0x78a   : > { %v4640_v13 = vpop.f32.mrf.mxu0 }
 0x78b   : > { %v5033_v19 = vpop.f32.mrf.mxu1  ;;  %v4659_v21 = vadd.f32 %v4640_v13, %v4521_v35 }
 0x78c   : > { %v6916_v1 = vpop.f32.mrf.mxu0 }
 0x78d   : > { %v9792_v20 = vpop.f32.mrf.mxu1 }
 0x78e   : > { %10970 = vst [vmem:[#allocation11_spill] sm:$0xff] %v9792_v20  ;;  %v4643_v43 = vpop.f32.mrf.mxu0  ;;  %v4384_v20 = vadd.f32 %v6884_v18, %v6868_v33 }
 0x78f   : > { %v9794_v61 = vpop.f32.mrf.mxu1 }
 0x790   : > { %10971 = vst [vmem:[#allocation9_spill] sm:$0xff] %v9794_v61  ;;  %v6943_v8 = vpop.f32.mrf.mxu0  ;;  %v4658_v61 = vadd.f32 %v6912_v30, %v4520_v16  ;;  %v4524_v51 = vadd.f32 %v9778_v54, %v4384_v20  ;;  %v4787_v16 = vadd.f32 %v9782_v41, %v4657_v22  ;;  %v4791_v30 = vadd.f32 %v6931_v55, %v4661_v39 }
 0x791   : > { %v9796_v46 = vpop.f32.mrf.mxu1 }
 0x792   : > { %10972 = vst [vmem:[#allocation12_spill] sm:$0xff] %v9796_v46  ;;  %v4892_v32 = vpop.f32.mrf.mxu0  ;;  %v4656_v46 = vadd.f32 %v4627_v31, %v4518_v11  ;;  %v4788_v36 = vadd.f32 %v6928_v2, %v4658_v61  ;;  %v4925_v34 = vadd.f32 %v6943_v8, %v4787_v16  ;;  %v10975_v8 = vld [vmem:[#allocation10_spill] sm:$0xff] }
 0x793   : > { %v9798_v17 = vpop.f32.mrf.mxu1 }
 0x794   : > { %10973 = vst [vmem:[#allocation15_spill] sm:$0xff] %v9798_v17  ;;  %v6944_v3 = vpop.f32.mrf.mxu0  ;;  %v4785_v17 = vadd.f32 %v4754_v15, %v4655_v45  ;;  %v4786_v40 = vadd.f32 %v4757_v60, %v4656_v46  ;;  %v5063_v7 = vadd.f32 %v9790_v23, %v4925_v34 }
 0x795   : > { %v9800_v49 = vpop.f32.mrf.mxu1  ;;  %v4926_v45 = vadd.f32 %v6944_v3, %v4788_v36  ;;  %v10974_v54 = vld [vmem:[#allocation11_spill] sm:$0xff] }
 0x796   : > { %v4895_v53 = vpop.f32.mrf.mxu0  ;;  %v4923_v56 = vadd.f32 %v4892_v32, %v4785_v17  ;;  %v4662_v17 = vadd.f32 %v6916_v1, %v4524_v51  ;;  %v4660_v32 = vadd.f32 %v4643_v43, %v4522_v10 }
 0x797   : > { %v5306_v5 = vpop.f32.mrf.mxu1  ;;  %v4924_v48 = vadd.f32 %v4895_v53, %v4786_v40  ;;  %v5064_v33 = vadd.f32 %v6960_v57, %v4926_v45  ;;  %v6216_v57 = vld [vmem:[%s9919_s10 + $0x1] ss:$0 sm:$0xff]  ;;  %v10978_v36 = vld [vmem:[#allocation9_spill] sm:$0xff]  ;;  %v10980_v45 = vmov 0  }
 0x798   : > { %v6947_v25 = vpop.f32.mrf.mxu0  ;;  %v5061_v38 = vadd.f32 %v5030_v29, %v4923_v56  ;;  %v4792_v27 = vadd.f32 %v9786_v26, %v4662_v17  ;;  %v4790_v53 = vadd.f32 %v9788_v44, %v4660_v32 }
 0x799   : > { %v6992_v9 = vpop.f32.mrf.mxu1  ;;  %v4929_v61 = vadd.f32 %v6947_v25, %v4791_v30  ;;  %v5062_v14 = vadd.f32 %v5033_v19, %v4924_v48  ;;  %v4789_v25 = vadd.f32 %v10975_v8, %v4659_v21  ;;  %v10976_v6 = vld [vmem:[#allocation12_spill] sm:$0xff] }
 0x79a   : > { %v4908_v58 = vpop.f32.mrf.mxu0 }
 0x79b   : > { %v5309_v31 = vpop.f32.mrf.mxu1  ;;  %v5067_v59 = vadd.f32 %v10974_v54, %v4929_v61  ;;  %v4927_v23 = vadd.f32 %v4908_v58, %v4789_v25  ;;  %v10977_v37 = vld [vmem:[#allocation15_spill] sm:$0xff] }
 0x79c   : > { %v6948_v12 = vpop.f32.mrf.mxu0 }
 0x79d   : > { %v6995_v3 = vpop.f32.mrf.mxu1  ;;  %v4930_v41 = vadd.f32 %v6948_v12, %v4792_v27  ;;  %v5065_v40 = vadd.f32 %v10978_v36, %v4927_v23 }
 0x79e   : > { %v4911_v47 = vpop.f32.mrf.mxu0 }
 0x79f   : > { %v4928_v13 = vadd.f32 %v4911_v47, %v4790_v53  ;;  %v5322_v2 = vpop.f32.mrf.mxu1  ;;  %v5068_v52 = vadd.f32 %v10976_v6, %v4930_v41  ;;  %v10984_v53 = vld [vmem:[#allocation91_spill] sm:$0xff] }
 0x7a0   : > { %v6975_v11 = vpop.f32.mrf.mxu0 }
 0x7a1   : > { %v5201_v24 = vadd.f32 %v6975_v11, %v5063_v7  ;;  %v5066_v22 = vadd.f32 %v10977_v37, %v4928_v13  ;;  %v6996_v12 = vpop.f32.mrf.mxu1  ;;  %v10994_v37 = vld [vmem:[#allocation14_spill] sm:$0xff] }
 0x7a2   : > { %v5168_v4 = vpop.f32.mrf.mxu0 }
 0x7a3   : > { %v5199_v46 = vadd.f32 %v5168_v4, %v5061_v38  ;;  %v5339_v26 = vadd.f32 %v9800_v49, %v5201_v24  ;;  %v5325_v11 = vpop.f32.mrf.mxu1 }
 0x7a4   : > { %v6976_v20 = vpop.f32.mrf.mxu0 }
 0x7a5   : > { %v5337_v0 = vadd.f32 %v5306_v5, %v5199_v46  ;;  %v5202_v1 = vadd.f32 %v6976_v20, %v5064_v33  ;;  %v5353_v10 = vadd.f32 %v6216_v57, %v5339_v26 }
 0x7a6   : > { %v5171_v29 = vpop.f32.mrf.mxu0 }
 0x7a7   : > { %v5200_v43 = vadd.f32 %v5171_v29, %v5062_v14  ;;  %v5351_v15 = vadd.f32 %v6216_v57, %v5337_v0  ;;  %v5340_v60 = vadd.f32 %v6992_v9, %v5202_v1  ;;  %v5361_v17 = vmax.f32 %v5353_v10, 0.0  ;;  %v6225_v14 = vld [vmem:[%s9921_s12 + $0x2] sm:$0x3]  ;;  %v10985_v1 = vld [vmem:[#allocation90_spill] sm:$0xff] }
 0x7a8   : > { %v6979_v19 = vpop.f32.mrf.mxu0  ;;  %v5386_v29 = vrot.slane %v6225_v14, %v10984_v53 }
 0x7a9   : > { %v5338_v50 = vadd.f32 %v5309_v31, %v5200_v43  ;;  %v5205_v44 = vadd.f32 %v6979_v19, %v5067_v59  ;;  %v5359_v62 = vmax.f32 %v5351_v15, 0.0  ;;  %v5354_v63 = vadd.f32 %v6216_v57, %v5340_v60  ;;  %v10986_v19 = vld [vmem:[#allocation16_spill] sm:$0xff] }
 0x7aa   : > { %v5184_v28 = vpop.f32.mrf.mxu0  ;;  %v9831_v43 = vrot.slane %v6225_v14, %v10985_v1  ;;  %v10987_v24 = vmax.f32 %v10986_v19, 0.0  ;;  %v11006_v14 = vld [vmem:[#allocation84_spill] sm:$0xff] }
 0x7ab   : > { %v5352_v18 = vadd.f32 %v6216_v57, %v5338_v50  ;;  %v5343_v55 = vadd.f32 %v6995_v3, %v5205_v44  ;;  %v5203_v16 = vadd.f32 %v5184_v28, %v5065_v40  ;;  %v5362_v48 = vmax.f32 %v5354_v63, 0.0  ;;  %v10988_v28 = vld [vmem:[#allocation95_spill] sm:$0xff]  ;;  %v10996_v63 = vld [vmem:[#allocation17_spill] sm:$0xff] }
 0x7ac   : > { %v6980_v42 = vpop.f32.mrf.mxu0  ;;  %v10989_v23 = vmax.f32 %v10988_v28, 0.0  ;;  %v10998_v40 = vld [vmem:[#allocation93_spill] sm:$0xff] }
 0x7ad   : > { %v5360_v5 = vmax.f32 %v5352_v18, 0.0  ;;  %v5206_v39 = vadd.f32 %v6980_v42, %v5068_v52  ;;  %v5357_v9 = vadd.f32 %v6216_v57, %v5343_v55  ;;  %v5341_v32 = vadd.f32 %v5322_v2, %v5203_v16  ;;  %v10990_v18 = vld [vmem:[#allocation96_spill] sm:$0xff]  ;;  %v10992_v52 = vld [vmem:[#allocation94_spill] sm:$0xff] }
 0x7ae   : > { %v5187_v56 = vpop.f32.mrf.mxu0  ;;  %v5368_v4 = vpack.c.bf16 %v5362_v48, %v5361_v17  ;;  %v10991_v55 = vmax.f32 %v10990_v18, 0.0  ;;  %v10993_v42 = vmax.f32 %v10992_v52, 0.0 }
 0x7af   : > { %v5367_v47 = vpack.c.bf16 %v5360_v5, %v5359_v62  ;;  %v5204_v58 = vadd.f32 %v5187_v56, %v5066_v22  ;;  %v5344_v51 = vadd.f32 %v6996_v12, %v5206_v39  ;;  %v5365_v38 = vmax.f32 %v5357_v9, 0.0 }
 0x7b0   : > { %v5355_v61 = vadd.f32 %v6216_v57, %v5341_v32  ;;  %v10995_v22 = vmax.f32 %v10994_v37, 0.0 }
 0x7b1   : > { %6234 = vmatmul.mubr.msk.bf16.vlgmr.msra.gmra.mxu0 %vm10979_vm13, %v5367_v47  ;;  %v5358_v49 = vadd.f32 %v6216_v57, %v5344_v51  ;;  %v5342_v30 = vadd.f32 %v5325_v11, %v5204_v58  ;;  %v10997_v47 = vmax.f32 %v10996_v63, 0.0  ;;  %v10999_v58 = vmax.f32 %v10998_v40, 0.0  ;;  %v11014_v63 = vld [vmem:[#allocation88_spill] sm:$0xff] }
 0x7b2   : > { %5487 = vmatprep.mubr.bf16.mxu0 %v10980_v45  ;;  %v5363_v21 = vmax.f32 %v5355_v61, 0.0 }
 0x7b3   : > { %v5366_v35 = vmax.f32 %v5358_v49, 0.0  ;;  %v5356_v34 = vadd.f32 %v6216_v57, %v5342_v30 }
 0x7b5   : > { %v5370_v31 = vpack.c.bf16 %v5366_v35, %v5365_v38  ;;  %v5364_v46 = vmax.f32 %v5356_v34, 0.0  ;;  %v11002_v38 = vld [vmem:[#allocation82_spill] sm:$0xff] }
 0x7b6   : > { %v11003_v35 = vmax.f32 %v11002_v38, 0.0 }
 0x7b7   : > { %v5369_v20 = vpack.c.bf16 %v5364_v46, %v5363_v21  ;;  %v11004_v21 = vld [vmem:[#allocation83_spill] sm:$0xff] }
 0x7b9   : > { %6235 = vmatmul.mubr.msk.bf16.gmra.mxu0 %vm10981_vm11, %v5368_v4 }
 0x7ba   : > { %5497 = vmatprep.mubr.bf16.mxu0 %v10980_v45 }
 0x7c1   : > { %6236 = vmatmul.mubr.msk.bf16.gmra.mxu0 %vm10982_vm8, %v5369_v20  ;;  %v11005_v20 = vmax.f32 %v11004_v21, 0.0 }
 0x7c2   : > { %5507 = vmatprep.mubr.bf16.mxu0 %v10980_v45  ;;  %v11000_v45 = vld [vmem:[#allocation92_spill] sm:$0xff] }
 0x7c3   : > { %v11001_v48 = vmax.f32 %v11000_v45, 0.0 }
 0x7c9   : > { %6237 = vmatmul.mubr.msk.bf16.gmra.mxu0 %vm10983_vm1, %v5370_v31 }
 0x871   : > { %v5479_v0 = vpop.f32.mrf.mxu0 }
 0x872   : > { %v5480_v8 = vadd.f32 %v5479_v0, %v5386_v29 }
 0x873   : > { %v5481_v33 = vpop.f32.mrf.mxu0 }
 0x874   : > { %v5482_v57 = vadd.f32 %v5481_v33, %v9831_v43  ;;  %v5518_v60 = vadd.f32 %v5480_v8, %v10989_v23 }
 0x875   : > { %v5483_v27 = vpop.f32.mrf.mxu0 }
 0x876   : > { %v5484_v54 = vadd.f32 %v5483_v27, %v5386_v29  ;;  %v5519_v12 = vadd.f32 %v5482_v57, %v10995_v22  ;;  %v5534_v10 = vmax.f32 %v5518_v60, 0.0  ;;  %v11007_v27 = vmax.f32 %v11006_v14, 0.0 }
 0x877   : > { %v5485_v3 = vpop.f32.mrf.mxu0 }
 0x878   : > { %v5486_v25 = vadd.f32 %v5485_v3, %v9831_v43  ;;  %v5520_v15 = vadd.f32 %v5484_v54, %v10987_v24  ;;  %v5535_v31 = vmax.f32 %v5519_v12, 0.0 }
 0x879   : > { %v5489_v7 = vpop.f32.mrf.mxu0 }
 0x87a   : > { %v5490_v41 = vadd.f32 %v5489_v7, %v5386_v29  ;;  %v5521_v6 = vadd.f32 %v5486_v25, %v10991_v55  ;;  %v5536_v56 = vmax.f32 %v5520_v15, 0.0  ;;  %v11008_v25 = vld [vmem:[#allocation85_spill] sm:$0xff] }
 0x87b   : > { %v5491_v59 = vpop.f32.mrf.mxu0 }
 0x87c   : > { %v5492_v50 = vadd.f32 %v5491_v59, %v9831_v43  ;;  %v5522_v26 = vadd.f32 %v5490_v41, %v10993_v42  ;;  %v5537_v11 = vmax.f32 %v5521_v6, 0.0  ;;  %v5550_v34 = vadd.f32 %v5536_v56, %v5534_v10  ;;  %v11016_v10 = vld [vmem:[#allocation89_spill] sm:$0xff] }
 0x87d   : > { %v5493_v13 = vpop.f32.mrf.mxu0  ;;  %v11009_v41 = vmax.f32 %v11008_v25, 0.0 }
 0x87e   : > { %v5494_v44 = vadd.f32 %v5493_v13, %v5386_v29  ;;  %v5523_v36 = vadd.f32 %v5492_v50, %v10997_v47  ;;  %v5538_v49 = vmax.f32 %v5522_v26, 0.0  ;;  %v5563_v7 = vadd.f32 %v5537_v11, %v5535_v31  ;;  %v11012_v26 = vld [vmem:[#allocation87_spill] sm:$0xff] }
 0x87f   : > { %v5495_v2 = vpop.f32.mrf.mxu0  ;;  %v11015_v47 = vmax.f32 %v11014_v63, 0.0 }
 0x880   : > { %v5496_v62 = vadd.f32 %v5495_v2, %v9831_v43  ;;  %v5524_v9 = vadd.f32 %v5494_v44, %v10999_v58  ;;  %v5539_v61 = vmax.f32 %v5523_v36, 0.0  ;;  %v5551_v1 = vadd.f32 %v5550_v34, %v5538_v49  ;;  %v11010_v2 = vld [vmem:[#allocation86_spill] sm:$0xff] }
 0x881   : > { %v5499_v5 = vpop.f32.mrf.mxu0  ;;  %v11011_v28 = vmax.f32 %v11010_v2, 0.0 }
 0x882   : > { %v5500_v39 = vadd.f32 %v5499_v5, %v5386_v29  ;;  %v5525_v30 = vadd.f32 %v5496_v62, %v11001_v48  ;;  %v5540_v46 = vmax.f32 %v5524_v9, 0.0  ;;  %v5564_v19 = vadd.f32 %v5563_v7, %v5539_v61 }
 0x883   : > { %v5501_v51 = vpop.f32.mrf.mxu0  ;;  %v11013_v62 = vmax.f32 %v11012_v26, 0.0 }
 0x884   : > { %v5502_v16 = vadd.f32 %v5501_v51, %v9831_v43  ;;  %v5526_v17 = vadd.f32 %v5500_v39, %v11003_v35  ;;  %v5541_v54 = vmax.f32 %v5525_v30, 0.0  ;;  %v5552_v24 = vadd.f32 %v5551_v1, %v5540_v46 }
 0x885   : > { %v5503_v32 = vpop.f32.mrf.mxu0 }
 0x886   : > { %v5504_v4 = vadd.f32 %v5503_v32, %v5386_v29  ;;  %v5527_v0 = vadd.f32 %v5502_v16, %v11005_v20  ;;  %v5542_v59 = vmax.f32 %v5526_v17, 0.0  ;;  %v5565_v18 = vadd.f32 %v5564_v19, %v5541_v54 }
 0x887   : > { %v5505_v33 = vpop.f32.mrf.mxu0  ;;  %v11017_v16 = vmax.f32 %v11016_v10, 0.0  ;;  %v11019_v54 = vlaneseq }
 0x888   : > { %v5528_v3 = vadd.f32 %v5504_v4, %v11007_v27  ;;  %v5506_v53 = vadd.f32 %v5505_v33, %v9831_v43  ;;  %v5543_v15 = vmax.f32 %v5527_v0, 0.0  ;;  %v5553_v55 = vadd.f32 %v5552_v24, %v5542_v59 }
 0x889   : > { %v5509_v8 = vpop.f32.mrf.mxu0  ;;  %vm5598_vm9 = vcmp.lt.s32.totalorder %v11019_v54, 256 }
 0x88a   : > { %v5529_v13 = vadd.f32 %v5506_v53, %v11009_v41  ;;  %v5510_v57 = vadd.f32 %v5509_v8, %v5386_v29  ;;  %v5544_v44 = vmax.f32 %v5528_v3, 0.0  ;;  %v5566_v22 = vadd.f32 %v5565_v18, %v5543_v15  ;;  %v11018_v3 = vld [vmem:[#allocation13_spill] sm:$0xff] }
 0x88b   : > { %v5511_v50 = vpop.f32.mrf.mxu0 }
 0x88c   : > { %v5530_v23 = vadd.f32 %v5510_v57, %v11011_v28  ;;  %v5512_v60 = vadd.f32 %v5511_v50, %v9831_v43  ;;  %v5545_v52 = vmax.f32 %v5529_v13, 0.0  ;;  %v5554_v39 = vadd.f32 %v5553_v55, %v5544_v44 }
 0x88d   : > { %v5513_v6 = vpop.f32.mrf.mxu0 }
 0x88e   : > { %v5546_v42 = vmax.f32 %v5530_v23, 0.0  ;;  %v5531_v5 = vadd.f32 %v5512_v60, %v11013_v62  ;;  %v5514_v37 = vadd.f32 %v5513_v6, %v5386_v29  ;;  %v5567_v58 = vadd.f32 %v5566_v22, %v5545_v52 }
 0x88f   : > { %v5515_v12 = vpop.f32.mrf.mxu0 }
 0x890   : > { %v5547_v56 = vmax.f32 %v5531_v5, 0.0  ;;  %v5532_v36 = vadd.f32 %v5514_v37, %v11015_v47  ;;  %v5516_v40 = vadd.f32 %v5515_v12, %v9831_v43  ;;  %v5555_v9 = vadd.f32 %v5554_v39, %v5546_v42 }
 0x891   : > { %v7308_v43 = vmov 1966171168  }
 0x892   : > { %v5548_v51 = vmax.f32 %v5532_v36, 0.0  ;;  %v5533_v11 = vadd.f32 %v5516_v40, %v11017_v16  ;;  %v5568_v49 = vadd.f32 %v5567_v58, %v5547_v56  ;;  %v5582_v34 = vunpack.c.l.s4 %v7308_v43 }
 0x894   : > { %v5556_v45 = vadd.f32 %v5555_v9, %v5548_v51  ;;  %v5549_v48 = vmax.f32 %v5533_v11, 0.0  ;;  %v5583_v0 = vunpack.c.0.s8 %v5582_v34 }
 0x896   : > { %v5557_v29 = vrot.slane %v5556_v45, 4  ;;  %v5569_v30 = vadd.f32 %v5568_v49, %v5549_v48  ;;  %v5586_v53 = vsub.s32 %v5583_v0, %v11018_v3 }
 0x898   : > { %v5558_v38 = vadd.f32 %v5557_v29, %v5556_v45  ;;  %v5570_v35 = vrot.slane %v5569_v30, 4 }
 0x89a   : > { %v5559_v17 = vrot.slane %v5558_v38, 2  ;;  %v5571_v32 = vadd.f32 %v5570_v35, %v5569_v30 }
 0x89c   : > { %v5560_v31 = vadd.f32 %v5559_v17, %v5558_v38  ;;  %v5572_v4 = vrot.slane %v5571_v32, 2 }
 0x89e   : > { %v5561_v61 = vrot.slane %v5560_v31, 1  ;;  %v5573_v46 = vadd.f32 %v5572_v4, %v5571_v32 }
 0x8a0   : > { %v5562_v21 = vadd.f32 %v5561_v61, %v5560_v31  ;;  %v5574_v20 = vrot.slane %v5573_v46, 1 }
 0x8a2   : > { %v5575_v33 = vadd.f32 %v5574_v20, %v5573_v46  ;;  %v5576_v14 = vmul.f32 0.015625, %v5562_v21 }
 0x8a4   : > { %v5577_v27 = vmul.f32 0.015625, %v5575_v33 }
 0x8a6   : > { %v5580_v7 = vcombine.low %v5576_v14, %v5577_v27 }
 0x8a8   : > { %v5587_v1 = vrot.slane %v5580_v7, %v5586_v53 }
 0x8aa   : > { %v5594_v59 = vrot.slane %v5587_v1, %v5586_v53 }
 0x8ac   : > { %5600 = vst.msk [vmem:[%s433_s20] sm:$0x3] %vm5598_vm9, %v5594_v59 }
 0x8ad   : > { %7257 = shalt.err (!%p7254_p3)
}
 0x8ae   : > { %s7258_s0 = scalar_lea.hbm %s5614_s27, 32  ;;  %s7262_s20 = scalar_lea.hbm %s9922_s13, 64 }
 0x8af   : > { %p7259_p4 = scmp.ne.s32.totalorder %s5614_s27, %s7258_s0  ;;  %p7263_p9 = scmp.lt.s32.totalorder %s5614_s27, %s9922_s13 }
 0x8b0   : > { %p7264_p10 = scmp.lt.s32.totalorder %s7262_s20, %s7258_s0 }
 0x8b1   : > { %p7260_p7 = pnand %p7259_p4, %p7418_p5 }
 0x8b2   : > { %p7265_p11 = por %p7264_p10, %p7263_p9 }
 0x8b3   : > { %p7261_p8 = pneg %p7260_p7 }
 0x8b5   : > { %p7266_p12 = pnand %p7265_p11, %p7261_p8 }
 0x8b7   : > { %7269 = shalt.err (!%p7266_p12)
}
 0x8b8   : > { %7005 = dma.vmem_to_hbm [thread:$0]  (%p7418_p5), %s5617_s24, 32, %s5614_s27, %s5602_s17  }
 0x8b9 PF: > { %p7011_p13 = scmp.ge.s32.totalorder %s7304_s28, 2  ;;  %s5628_s14 = sand.u32 1, %s7292_s25  }
 0x8ba   : > { %s5629_s22 = scalar_lea.sflag [#allocation4], %s5628_s14 }
 0x8bb   : > { %p7008_p0 = pnand %p7011_p13, %p7422_p6 }
 0x8bd   : > { %p7009_p1 = pneg %p7008_p0 }
 0x8bf   : > { %7287 = dma.done.wait (%p7009_p1), %s5629_s22, 32  }
 0x8c0   : > { %7289 = vsyncadd (%p7009_p1), %s5629_s22, 4294967264  ;;  %s11020_s28 = sld [smem:[#allocation7_spill]]  ;;  %s11023_s25 = smov %s7296_s26 }
 0x8c1   : > { %s11021_s0 = sld [smem:[#allocation6_spill]] }
 0x8c2   : > { %s11022_s27 = sld [smem:[#allocation8_spill]] }
 0x8c6   : > { %p23_p2 = scmp.ge.s32.totalorder %s11020_s28, 4  }
 0x8c7   : > { %s11024_s26 = smov %s11021_s0 }
 0x8c8   :  { %25 = sbr.rel (!%p23_p2) target bundleno = 5 (0x5), region = 137 }
 0x8cd   :  { %5634 = vsyncpa [#allocation4], 1 }
 0x8ce   :  { %5636 = vsyncpa [#allocation4 + $0x1], 1 }

</bundles_post_ra>
